<compile_context>
chip_gen: v6e
topology: v6e:2x2x1
jax: 0.10.0
libtpu: 0.0.40
codegen_flags: <defaults>
</compile_context>

<pallas_src>
import functools

import jax
import jax.numpy as jnp
from jax.experimental import pallas as pl
from jax.experimental.pallas import tpu as pltpu


# ---------------------------------------------------------------------------
# Fused Glance_branch kernel (one batch element per grid step).
# ---------------------------------------------------------------------------
def _glance_kernel(x_ref, mag_ref, in_w1_ref, in_w2_ref, in_b_ref,
                   w_in_s_ref, w_dd_s_ref, w_out_s_ref, pvec_s_ref,
                   mag_w_ref, mag_b_ref, out_ref,
                   shift_ref, s_ref, h_ref, acc_ref,
                   *, dilas_full, kd1, cd1, d_feat, n_dil, T, T_pad, guard,
                   acti, eps):
    f32 = jnp.float32
    cdt = in_w1_ref.dtype                    # matmul compute dtype (bf16)
    kc = kd1 * cd1
    inv_T = 1.0 / T

    # Lane mask for InstanceNorm stats over the real (unpadded) T range.
    # Hoisted: built once per grid step.
    if T_pad != T:
        lane = jax.lax.broadcasted_iota(jnp.int32, (1, T_pad), 1)
        tmask = (lane < T).astype(f32)
    else:
        tmask = None

    def prelu_instnorm(v, p, gw, gb):
        # PReLU + single-pass masked InstanceNorm folded into scale/shift.
        # NOTE: var = E[x^2] - mu^2 in f32; fine unless |mean| >> std over
        # very long T (validate at production T or switch to two-pass).
        a = jnp.where(v >= 0.0, v, p * v)                   # (cd1, T_pad)
        am = a if tmask is None else a * tmask
        s1 = jnp.sum(am, axis=1, keepdims=True)             # sum over real T
        s2 = jnp.sum(am * a, axis=1, keepdims=True)         # sum of squares
        mu = s1 * inv_T
        var = s2 * inv_T - mu * mu                          # biased variance
        scale = gw * jax.lax.rsqrt(var + eps)
        shift = gb - mu * scale
        return a * scale + shift

    def pad_lanes(v):
        # In-kernel lane padding (no host-side copy); pad region only has to
        # stay finite — it is masked out of stats and never read causally.
        if T_pad == T:
            return v
        return jnp.concatenate(
            [v, jnp.zeros((v.shape[0], T_pad - T), v.dtype)], axis=1)

    # --- head 1x1 conv, split over the two un-concatenated inputs ---------
    x1 = pad_lanes(x_ref[0].astype(cdt))                    # (C1, T_pad) bf16
    x2 = pad_lanes(mag_ref[0].astype(cdt))                  # (C2, T_pad) bf16
    h_ref[...] = (jnp.dot(in_w1_ref[...], x1, preferred_element_type=f32)
                  + jnp.dot(in_w2_ref[...], x2, preferred_element_type=f32)
                  + in_b_ref[...])
    acc_ref[...] = jnp.zeros((d_feat, T_pad), f32)

    # Zero the causal guard columns once per step; only the data region
    # [guard:guard+T_pad] is overwritten by the GLUs, so the guard stays 0.
    if guard > 0:
        shift_ref[0:2 * cd1, 0:guard] = jnp.zeros((2 * cd1, guard), cdt)

    for g, dil in enumerate(dilas_full):                    # unrolled GLU stack
        pv = pvec_s_ref[g]                                  # (cd1, 9) f32
        h = h_ref[...]                                      # residual source
        u = jnp.dot(w_in_s_ref[g], h.astype(cdt),
                    preferred_element_type=f32)             # (cd1, T_pad)

        nm = prelu_instnorm(u, pv[:, 0:1], pv[:, 1:2], pv[:, 2:3])
        ng = prelu_instnorm(u, pv[:, 3:4], pv[:, 4:5], pv[:, 5:6])

        # bf16 causal shifts via the persistent zero-guarded scratch:
        #   shift_ref[:, guard + t] = n[:, t]; cols for tap k start at
        #   guard - (kd1-1-k)*dil (zeros from the guard provide the causal
        #   left padding).  Aligned stores, no per-GLU zero-pad copies.
        shift_ref[0:cd1, guard:guard + T_pad] = nm.astype(cdt)
        shift_ref[cd1:2 * cd1, guard:guard + T_pad] = ng.astype(cdt)
        for k in range(kd1):
            off = guard - (kd1 - 1 - k) * dil
            s_ref[k * cd1:(k + 1) * cd1, :] = (
                shift_ref[0:cd1, off:off + T_pad])
            s_ref[kc + k * cd1:kc + (k + 1) * cd1, :] = (
                shift_ref[cd1:2 * cd1, off:off + T_pad])

        # Fused main+gate dilated conv: one block-diagonal matmul on bf16 S.
        dd = jnp.dot(w_dd_s_ref[g], s_ref[...],
                     preferred_element_type=f32)            # (2*cd1, T_pad)
        mid = dd[:cd1] * jax.nn.sigmoid(dd[cd1:])

        no = prelu_instnorm(mid, pv[:, 6:7], pv[:, 7:8], pv[:, 8:9])
        h_ref[...] = jnp.dot(w_out_s_ref[g], no.astype(cdt),
                             preferred_element_type=f32) + h   # residual add

        if (g + 1) % n_dil == 0:                            # end of a Tcm_list
            acc_ref[...] = acc_ref[...] + h_ref[...]

    # Tail 1x1 conv (with bias) + activation; store only the real T range.
    y = jnp.dot(mag_w_ref[...], acc_ref[...].astype(cdt),
                preferred_element_type=f32) + mag_b_ref[...]
    if acti == "sigmoid":
        y = jax.nn.sigmoid(y)
    elif acti == "relu":
        y = jnp.maximum(y, 0.0)
    elif acti == "tanh":
        y = jnp.tanh(y)
    if T_pad != T:
        out_ref[0] = y[:, :T].astype(out_ref.dtype)
    else:
        out_ref[0] = y.astype(out_ref.dtype)


# ---------------------------------------------------------------------------
# Parameter packing: stack per-GLU weights, build im2col / block-diag weights,
# pack the 9 per-channel vectors per GLU into one array (one DMA, not 9*n_glu).
# ---------------------------------------------------------------------------
def _pack_glu_params(params, kd1, cd1, compute_dtype):
    glus = [g for tcm in params["tcms"] for g in tcm]
    kc = kd1 * cd1

    def im2col_w(w):  # (kd1, cout, cin) -> (cout, kd1*cin), col = k*cd1 + cin
        return jnp.transpose(w, (1, 0, 2)).reshape(cd1, kc)

    w_in_s = jnp.stack([g["w_in"] for g in glus]).astype(compute_dtype)
    w_out_s = jnp.stack([g["w_out"] for g in glus]).astype(compute_dtype)

    # Block-diagonal fused main/gate weight; K = 2*kd1*cd1 (96 for the demo,
    # a single contraction slab even on v5e's 128-deep MXU).
    w_dd_list = []
    for g in glus:
        w = jnp.zeros((2 * cd1, 2 * kc), jnp.float32)
        w = w.at[:cd1, :kc].set(im2col_w(g["w_m"]))
        w = w.at[cd1:, kc:].set(im2col_w(g["w_g"]))
        w_dd_list.append(w)
    w_dd_s = jnp.stack(w_dd_list).astype(compute_dtype)

    pvec_s = jnp.stack([
        jnp.stack([g["prelu_m"], g["in_w_m"], g["in_b_m"],
                   g["prelu_g"], g["in_w_g"], g["in_b_g"],
                   g["prelu_o"], g["in_w_o"], g["in_b_o"]], axis=1)
        for g in glus]).astype(jnp.float32)                 # (n_glu, cd1, 9)

    return w_in_s, w_dd_s, w_out_s, pvec_s


# ---------------------------------------------------------------------------
# Glance_branch forward (single pallas_call).
# ---------------------------------------------------------------------------
def glance_branch_forward(x, mag_x, params, *, kd1, cd1, d_feat, dilas,
                          tcm_num, fft_num, acti_type="sigmoid",
                          compute_dtype=jnp.bfloat16):
    B, c1, T = x.shape
    half = fft_num // 2 + 1
    c2 = mag_x.shape[1]
    T_pad = ((T + 127) // 128) * 128                        # lane-dense T
    kc = kd1 * cd1
    n_glu = tcm_num * len(dilas)
    n_dil = len(dilas)
    dilas_full = tuple(dilas) * tcm_num

    # Causal guard for the shift scratch: >= max left pad, rounded to a lane
    # tile so the data-region store stays aligned/unmasked.
    max_lpad = (kd1 - 1) * max(dilas)
    guard = 0 if max_lpad == 0 else ((max_lpad + 127) // 128) * 128

    w_in_s, w_dd_s, w_out_s, pvec_s = _pack_glu_params(params, kd1, cd1,
                                                       compute_dtype)
    in_w1 = params["in_w"][:, :c1].astype(compute_dtype)    # head conv, x part
    in_w2 = params["in_w"][:, c1:].astype(compute_dtype)    # head conv, mag_x
    in_b = params["in_b"].reshape(d_feat, 1).astype(jnp.float32)
    mag_w = params["mag_w"].astype(compute_dtype)
    mag_b = params["mag_b"].reshape(half, 1).astype(jnp.float32)

    # Explicit VMEM budget (review #3): blocks x2 buffers + weight stacks x2
    # + persistent scratch + per-GLU live f32 temporaries (with slack for the
    # static unroll).  TODO(synk): for production-scale T on v7x (64 MiB
    # physical VMEM), cap T_pad / split the sequence upstream if this exceeds
    # the budget.
    bpe = jnp.dtype(compute_dtype).itemsize
    in_bytes = (c1 + c2) * T * 4
    out_bytes = half * T * 4
    w_bytes = ((d_feat * (c1 + c2) + half * d_feat) * bpe
               + (d_feat + half) * 4
               + n_glu * (cd1 * d_feat + 2 * cd1 * 2 * kc + d_feat * cd1) * bpe
               + n_glu * cd1 * 9 * 4)
    scratch_bytes = ((2 * cd1 * (guard + T_pad) + 2 * kc * T_pad) * bpe
                     + 2 * d_feat * T_pad * 4)
    live_bytes = (8 * cd1 + 4 * d_feat) * T_pad * 4
    est = 2 * (in_bytes + out_bytes + w_bytes) + scratch_bytes + 4 * live_bytes
    vmem_limit = int(min(max(est, 32 * 1024 * 1024), 100 * 1024 * 1024))

    kernel = functools.partial(
        _glance_kernel, dilas_full=dilas_full, kd1=kd1, cd1=cd1, d_feat=d_feat,
        n_dil=n_dil, T=T, T_pad=T_pad, guard=guard, acti=acti_type, eps=1e-5)

    out = pl.pallas_call(
        kernel,
        out_shape=jax.ShapeDtypeStruct((B, half, T), jnp.float32),
        grid=(B,),
        in_specs=[
            pl.BlockSpec((1, c1, T), lambda b: (b, 0, 0)),       # x (raw f32)
            pl.BlockSpec((1, c2, T), lambda b: (b, 0, 0)),       # mag_x
            pl.BlockSpec((d_feat, c1), lambda b: (0, 0)),
            pl.BlockSpec((d_feat, c2), lambda b: (0, 0)),
            pl.BlockSpec((d_feat, 1), lambda b: (0, 0)),
            pl.BlockSpec((n_glu, cd1, d_feat), lambda b: (0, 0, 0)),
            pl.BlockSpec((n_glu, 2 * cd1, 2 * kc), lambda b: (0, 0, 0)),
            pl.BlockSpec((n_glu, d_feat, cd1), lambda b: (0, 0, 0)),
            pl.BlockSpec((n_glu, cd1, 9), lambda b: (0, 0, 0)),
            pl.BlockSpec((half, d_feat), lambda b: (0, 0)),
            pl.BlockSpec((half, 1), lambda b: (0, 0)),
        ],
        out_specs=pl.BlockSpec((1, half, T), lambda b: (b, 0, 0)),
        scratch_shapes=[
            pltpu.VMEM((2 * cd1, guard + T_pad), compute_dtype),  # shift buf
            pltpu.VMEM((2 * kc, T_pad), compute_dtype),           # im2col S
            pltpu.VMEM((d_feat, T_pad), jnp.float32),              # h
            pltpu.VMEM((d_feat, T_pad), jnp.float32),              # acc
        ],
        compiler_params=pltpu.CompilerParams(
            # B is the only megacore axis; use B >= 2 per chip on v7x.
            dimension_semantics=("parallel",),
            vmem_limit_bytes=vmem_limit),
    )(x, mag_x, in_w1, in_w2, in_b, w_in_s, w_dd_s, w_out_s, pvec_s,
      mag_w, mag_b)

    return out


# ---------------------------------------------------------------------------
# Pure-JAX f32 reference (same math, for a loose sanity check).
# ---------------------------------------------------------------------------
def _reference_forward(x, mag_x, params, kd1, dilas, tcm_num, acti_type,
                       eps=1e-5):
    P = jax.lax.Precision.HIGHEST
    xc = jnp.concatenate([x, mag_x], axis=1)
    h = jnp.einsum("oc,bct->bot", params["in_w"], xc, precision=P) \
        + params["in_b"][None, :, None]

    def prelu(v, p):
        return jnp.where(v >= 0, v, p[None, :, None] * v)

    def instnorm(v, w, b):
        mu = jnp.mean(v, axis=2, keepdims=True)
        var = jnp.mean((v - mu) ** 2, axis=2, keepdims=True)
        return (v - mu) * jax.lax.rsqrt(var + eps) * w[None, :, None] \
            + b[None, :, None]

    def dconv(v, w, dil):                                   # causal, no bias
        T = v.shape[-1]
        vp = jnp.pad(v, ((0, 0), (0, 0), ((kd1 - 1) * dil, 0)))
        out = 0.0
        for k in range(kd1):
            out = out + jnp.einsum("oc,bct->bot", w[k],
                                   vp[:, :, k * dil:k * dil + T], precision=P)
        return out

    glus = [g for tcm in params["tcms"] for g in tcm]
    dil_full = list(dilas) * tcm_num
    n_dil = len(dilas)
    acc = jnp.zeros_like(h)
    for i, (g, dil) in enumerate(zip(glus, dil_full)):
        resi = h
        u = jnp.einsum("oc,bct->bot", g["w_in"], h, precision=P)
        nm = instnorm(prelu(u, g["prelu_m"]), g["in_w_m"], g["in_b_m"])
        ng = instnorm(prelu(u, g["prelu_g"]), g["in_w_g"], g["in_b_g"])
        mid = dconv(nm, g["w_m"], dil) * jax.nn.sigmoid(dconv(ng, g["w_g"], dil))
        no = instnorm(prelu(mid, g["prelu_o"]), g["in_w_o"], g["in_b_o"])
        h = jnp.einsum("oc,bct->bot", g["w_out"], no, precision=P) + resi
        if (i + 1) % n_dil == 0:
            acc = acc + h
    y = jnp.einsum("oc,bct->bot", params["mag_w"], acc, precision=P) \
        + params["mag_b"][None, :, None]
    if acti_type == "sigmoid":
        y = jax.nn.sigmoid(y)
    elif acti_type == "relu":
        y = jnp.maximum(y, 0.0)
    elif acti_type == "tanh":
        y = jnp.tanh(y)
    return y


# ---------------------------------------------------------------------------
# Parameter initialization (deterministic, synthetic; PyTorch defaults for
# PReLU slope 0.25 and affine InstanceNorm weight=1 / bias=0).
# ---------------------------------------------------------------------------
def init_params(key, d_feat, kd1, cd1, tcm_num, dilas, fft_num, head_type="RI"):
    half = fft_num // 2 + 1
    if head_type in ("RI", "MAG"):
        cin = half + d_feat
    else:  # 'RI+MAG' / 'PHASE+MAG'
        cin = half + d_feat * 2

    n_glu = tcm_num * len(dilas)
    keys = iter(jax.random.split(key, 4 + n_glu * 4))
    nrm = lambda k, s: 0.1 * jax.random.normal(k, s, jnp.float32)

    params = {
        "in_w": nrm(next(keys), (d_feat, cin)),
        "in_b": nrm(next(keys), (d_feat,)),
        "mag_w": nrm(next(keys), (half, d_feat)),
        "mag_b": nrm(next(keys), (half,)),
        "tcms": [],
    }
    for _ in range(tcm_num):
        glus = []
        for _ in dilas:
            glus.append({
                "w_in": nrm(next(keys), (cd1, d_feat)),
                "w_m": nrm(next(keys), (kd1, cd1, cd1)),
                "w_g": nrm(next(keys), (kd1, cd1, cd1)),
                "w_out": nrm(next(keys), (d_feat, cd1)),
                "prelu_m": jnp.full((cd1,), 0.25, jnp.float32),
                "prelu_g": jnp.full((cd1,), 0.25, jnp.float32),
                "prelu_o": jnp.full((cd1,), 0.25, jnp.float32),
                "in_w_m": jnp.ones((cd1,), jnp.float32),
                "in_b_m": jnp.zeros((cd1,), jnp.float32),
                "in_w_g": jnp.ones((cd1,), jnp.float32),
                "in_b_g": jnp.zeros((cd1,), jnp.float32),
                "in_w_o": jnp.ones((cd1,), jnp.float32),
                "in_b_o": jnp.zeros((cd1,), jnp.float32),
            })
        params["tcms"].append(glus)
    return params


if __name__ == "__main__":
    # Small, forward-consistent shapes (T deliberately not a multiple of 128
    # to exercise the in-kernel lane padding + masked InstanceNorm path,
    # B=2 so the megacore/batch grid axis has work for both TCs on v7x).
    d_feat, kd1, cd1 = 16, 3, 16
    tcm_num, dilas = 2, (1, 2)
    fft_num = 16
    half = fft_num // 2 + 1          # 9
    acti_type = "sigmoid"
    head_type = "RI"
    B, T = 2, 100

    key = jax.random.PRNGKey(0)
    kx, km, kp = jax.random.split(key, 3)
    x = jax.random.normal(kx, (B, d_feat, T), jnp.float32)      # (B, C1, T)
    mag_x = jax.random.normal(km, (B, half, T), jnp.float32)    # (B, C2, T)

    params = init_params(kp, d_feat, kd1, cd1, tcm_num, dilas, fft_num,
                         head_type)

    out = glance_branch_forward(
        x, mag_x, params, kd1=kd1, cd1=cd1, d_feat=d_feat, dilas=dilas,
        tcm_num=tcm_num, fft_num=fft_num, acti_type=acti_type)
    out = jax.block_until_ready(out)

    assert out.shape == (B, half, T), out.shape
    assert bool(jnp.all(jnp.isfinite(out)))

    # Loose sanity check against a pure-JAX f32 reference (kernel uses bf16
    # MXU operands; outputs are sigmoid-bounded, so 5e-2 is a wide margin).
    ref = _reference_forward(x, mag_x, params, kd1, dilas, tcm_num, acti_type)
    max_diff = float(jnp.max(jnp.abs(out - ref)))
    assert max_diff < 5e-2, max_diff

    print("KERNEL_OK")
</pallas_src>

<mosaic_0001>
module attributes {stable_mosaic.version = 11 : i64} {
  func.func @_glance_kernel(%arg0: i32, %arg1: memref<1x16x100xf32, #tpu.memory_space<vmem>>, %arg2: memref<1x9x100xf32, #tpu.memory_space<vmem>>, %arg3: memref<16x16xbf16, #tpu.memory_space<vmem>>, %arg4: memref<16x9xbf16, #tpu.memory_space<vmem>>, %arg5: memref<16x1xf32, #tpu.memory_space<vmem>>, %arg6: memref<4x16x16xbf16, #tpu.memory_space<vmem>>, %arg7: memref<4x32x96xbf16, #tpu.memory_space<vmem>>, %arg8: memref<4x16x16xbf16, #tpu.memory_space<vmem>>, %arg9: memref<4x16x9xf32, #tpu.memory_space<vmem>>, %arg10: memref<9x16xbf16, #tpu.memory_space<vmem>>, %arg11: memref<9x1xf32, #tpu.memory_space<vmem>>, %arg12: memref<1x9x100xf32, #tpu.memory_space<vmem>>, %arg13: memref<32x256xbf16, #tpu.memory_space<vmem>>, %arg14: memref<96x128xbf16, #tpu.memory_space<vmem>>, %arg15: memref<16x128xf32, #tpu.memory_space<vmem>>, %arg16: memref<16x128xf32, #tpu.memory_space<vmem>>) attributes {dimension_semantics = [#tpu.dimension_semantics<parallel>], iteration_bounds = array<i64: 2>, scalar_prefetch = 0 : i64, scratch_operands = 4 : i64, tpu.core_type = #tpu.core_type<tc>, window_params = [{transform_indices = @transform_0, window_bounds = array<i64: 1, 16, 100>}, {transform_indices = @transform_1, window_bounds = array<i64: 1, 9, 100>}, {pipeline_mode = #tpu.pipeline_mode<synchronous>, transform_indices = @transform_2, window_bounds = array<i64: 16, 16>}, {pipeline_mode = #tpu.pipeline_mode<synchronous>, transform_indices = @transform_3, window_bounds = array<i64: 16, 9>}, {pipeline_mode = #tpu.pipeline_mode<synchronous>, transform_indices = @transform_4, window_bounds = array<i64: 16, 1>}, {pipeline_mode = #tpu.pipeline_mode<synchronous>, transform_indices = @transform_5, window_bounds = array<i64: 4, 16, 16>}, {pipeline_mode = #tpu.pipeline_mode<synchronous>, transform_indices = @transform_6, window_bounds = array<i64: 4, 32, 96>}, {pipeline_mode = #tpu.pipeline_mode<synchronous>, transform_indices = @transform_7, window_bounds = array<i64: 4, 16, 16>}, {pipeline_mode = #tpu.pipeline_mode<synchronous>, transform_indices = @transform_8, window_bounds = array<i64: 4, 16, 9>}, {pipeline_mode = #tpu.pipeline_mode<synchronous>, transform_indices = @transform_9, window_bounds = array<i64: 9, 16>}, {pipeline_mode = #tpu.pipeline_mode<synchronous>, transform_indices = @transform_10, window_bounds = array<i64: 9, 1>}, {transform_indices = @transform_11, window_bounds = array<i64: 1, 9, 100>}]} {
    %0 = tpu.iota {dimensions = array<i32: 1>} : vector<1x128xi32>
    %c100_i32 = arith.constant 100 : i32
    %1 = vector.broadcast %c100_i32 : i32 to vector<1x128xi32>
    %2 = arith.cmpi slt, %0, %1 : vector<1x128xi32>
    %3 = arith.extui %2 : vector<1x128xi1> to vector<1x128xi32>
    %4 = arith.sitofp %3 : vector<1x128xi32> to vector<1x128xf32>
    %c0 = arith.constant 0 : index
    %c0_0 = arith.constant 0 : index
    %c0_1 = arith.constant 0 : index
    %5 = vector.load %arg1[%c0, %c0_0, %c0_1] : memref<1x16x100xf32, #tpu.memory_space<vmem>>, vector<1x16x100xf32>
    %6 = vector.shape_cast %5 : vector<1x16x100xf32> to vector<16x100xf32>
    %7 = arith.truncf %6 : vector<16x100xf32> to vector<16x100xbf16>
    %cst = arith.constant 0.000000e+00 : bf16
    %8 = vector.broadcast %cst : bf16 to vector<16x28xbf16>
    %9 = tpu.concatenate %7, %8 in 1 : vector<16x100xbf16>, vector<16x28xbf16> -> vector<16x128xbf16>
    %c0_2 = arith.constant 0 : index
    %c0_3 = arith.constant 0 : index
    %c0_4 = arith.constant 0 : index
    %10 = vector.load %arg2[%c0_2, %c0_3, %c0_4] : memref<1x9x100xf32, #tpu.memory_space<vmem>>, vector<1x9x100xf32>
    %11 = vector.shape_cast %10 : vector<1x9x100xf32> to vector<9x100xf32>
    %12 = arith.truncf %11 : vector<9x100xf32> to vector<9x100xbf16>
    %cst_5 = arith.constant 0.000000e+00 : bf16
    %13 = vector.broadcast %cst_5 : bf16 to vector<9x28xbf16>
    %14 = tpu.concatenate %12, %13 in 1 : vector<9x100xbf16>, vector<9x28xbf16> -> vector<9x128xbf16>
    %c0_6 = arith.constant 0 : index
    %c0_7 = arith.constant 0 : index
    %15 = vector.load %arg3[%c0_6, %c0_7] : memref<16x16xbf16, #tpu.memory_space<vmem>>, vector<16x16xbf16>
    %cst_8 = arith.constant dense<0.000000e+00> : vector<16x128xf32>
    %16 = tpu.matmul %15, %9, %cst_8 {dimension_numbers = #tpu.dot_dimension_numbers<[1], [0], [0], [1], [0, 0, 1, 1], [], []>} : vector<16x16xbf16>, vector<16x128xbf16>, vector<16x128xf32> -> vector<16x128xf32>
    %c0_9 = arith.constant 0 : index
    %c0_10 = arith.constant 0 : index
    %17 = vector.load %arg4[%c0_9, %c0_10] : memref<16x9xbf16, #tpu.memory_space<vmem>>, vector<16x9xbf16>
    %cst_11 = arith.constant dense<0.000000e+00> : vector<16x128xf32>
    %18 = tpu.matmul %17, %14, %cst_11 {dimension_numbers = #tpu.dot_dimension_numbers<[1], [0], [0], [1], [0, 0, 1, 1], [], []>} : vector<16x9xbf16>, vector<9x128xbf16>, vector<16x128xf32> -> vector<16x128xf32>
    %19 = arith.addf %16, %18 : vector<16x128xf32>
    %c0_12 = arith.constant 0 : index
    %c0_13 = arith.constant 0 : index
    %20 = vector.load %arg5[%c0_12, %c0_13] : memref<16x1xf32, #tpu.memory_space<vmem>>, vector<16x1xf32>
    %21 = vector.broadcast %20 : vector<16x1xf32> to vector<16x128xf32>
    %22 = arith.addf %19, %21 : vector<16x128xf32>
    %c0_14 = arith.constant 0 : index
    %c0_15 = arith.constant 0 : index
    %23 = vector.load %arg15[%c0_14, %c0_15] : memref<16x128xf32, #tpu.memory_space<vmem>>, vector<16x128xf32>
    tpu.vector_store %arg15[%c0_14, %c0_15], %22 {strides = array<i32>} : memref<16x128xf32, #tpu.memory_space<vmem>>, vector<16x128xf32>,
    %cst_16 = arith.constant 0.000000e+00 : f32
    %24 = vector.broadcast %cst_16 : f32 to vector<16x128xf32>
    %c0_17 = arith.constant 0 : index
    %c0_18 = arith.constant 0 : index
    %25 = vector.load %arg16[%c0_17, %c0_18] : memref<16x128xf32, #tpu.memory_space<vmem>>, vector<16x128xf32>
    tpu.vector_store %arg16[%c0_17, %c0_18], %24 {strides = array<i32>} : memref<16x128xf32, #tpu.memory_space<vmem>>, vector<16x128xf32>,
    %cst_19 = arith.constant 0.000000e+00 : bf16
    %26 = vector.broadcast %cst_19 : bf16 to vector<32x128xbf16>
    %c0_20 = arith.constant 0 : index
    %c0_21 = arith.constant 0 : index
    %27 = vector.load %arg13[%c0_20, %c0_21] : memref<32x256xbf16, #tpu.memory_space<vmem>>, vector<32x128xbf16>
    tpu.vector_store %arg13[%c0_20, %c0_21], %26 {strides = array<i32>} : memref<32x256xbf16, #tpu.memory_space<vmem>>, vector<32x128xbf16>,
    %c0_22 = arith.constant 0 : index
    %c0_23 = arith.constant 0 : index
    %c0_24 = arith.constant 0 : index
    %28 = vector.load %arg9[%c0_22, %c0_23, %c0_24] : memref<4x16x9xf32, #tpu.memory_space<vmem>>, vector<1x16x9xf32>
    %29 = vector.shape_cast %28 : vector<1x16x9xf32> to vector<16x9xf32>
    %c0_25 = arith.constant 0 : index
    %c0_26 = arith.constant 0 : index
    %30 = vector.load %arg15[%c0_25, %c0_26] : memref<16x128xf32, #tpu.memory_space<vmem>>, vector<16x128xf32>
    %c0_27 = arith.constant 0 : index
    %c0_28 = arith.constant 0 : index
    %c0_29 = arith.constant 0 : index
    %31 = vector.load %arg6[%c0_27, %c0_28, %c0_29] : memref<4x16x16xbf16, #tpu.memory_space<vmem>>, vector<1x16x16xbf16>
    %32 = vector.shape_cast %31 : vector<1x16x16xbf16> to vector<16x16xbf16>
    %33 = arith.truncf %30 : vector<16x128xf32> to vector<16x128xbf16>
    %cst_30 = arith.constant dense<0.000000e+00> : vector<16x128xf32>
    %34 = tpu.matmul %32, %33, %cst_30 {dimension_numbers = #tpu.dot_dimension_numbers<[1], [0], [0], [1], [0, 0, 1, 1], [], []>} : vector<16x16xbf16>, vector<16x128xbf16>, vector<16x128xf32> -> vector<16x128xf32>
    %35 = vector.extract_strided_slice %29 {offsets = [0, 0], sizes = [16, 1], strides = [1, 1]} : vector<16x9xf32> to vector<16x1xf32>
    %36 = vector.extract_strided_slice %29 {offsets = [0, 1], sizes = [16, 1], strides = [1, 1]} : vector<16x9xf32> to vector<16x1xf32>
    %37 = vector.extract_strided_slice %29 {offsets = [0, 2], sizes = [16, 1], strides = [1, 1]} : vector<16x9xf32> to vector<16x1xf32>
    %cst_31 = arith.constant 0.000000e+00 : f32
    %38 = vector.broadcast %cst_31 : f32 to vector<16x128xf32>
    %39 = arith.cmpf oge, %34, %38 : vector<16x128xf32>
    %40 = vector.broadcast %35 : vector<16x1xf32> to vector<16x128xf32>
    %41 = arith.mulf %40, %34 : vector<16x128xf32>
    %42 = arith.select %39, %34, %41 : vector<16x128xi1>, vector<16x128xf32>
    %43 = vector.broadcast %4 : vector<1x128xf32> to vector<16x128xf32>
    %44 = arith.mulf %42, %43 : vector<16x128xf32>
    %cst_32 = arith.constant dense<0.000000e+00> : vector<16xf32>
    %45 = vector.multi_reduction <add>, %44, %cst_32 [1] : vector<16x128xf32> to vector<16xf32>
    %46 = vector.shape_cast %45 : vector<16xf32> to vector<16x1xf32>
    %47 = arith.mulf %44, %42 : vector<16x128xf32>
    %cst_33 = arith.constant dense<0.000000e+00> : vector<16xf32>
    %48 = vector.multi_reduction <add>, %47, %cst_33 [1] : vector<16x128xf32> to vector<16xf32>
    %49 = vector.shape_cast %48 : vector<16xf32> to vector<16x1xf32>
    %cst_34 = arith.constant 0.00999999977 : f32
    %50 = vector.broadcast %cst_34 : f32 to vector<16x1xf32>
    %51 = arith.mulf %46, %50 : vector<16x1xf32>
    %cst_35 = arith.constant 0.00999999977 : f32
    %52 = vector.broadcast %cst_35 : f32 to vector<16x1xf32>
    %53 = arith.mulf %49, %52 : vector<16x1xf32>
    %54 = arith.mulf %51, %51 : vector<16x1xf32>
    %55 = arith.subf %53, %54 : vector<16x1xf32>
    %cst_36 = arith.constant 9.99999974E-6 : f32
    %56 = vector.broadcast %cst_36 : f32 to vector<16x1xf32>
    %57 = arith.addf %55, %56 : vector<16x1xf32>
    %58 = math.rsqrt %57 : vector<16x1xf32>
    %59 = arith.mulf %36, %58 : vector<16x1xf32>
    %60 = arith.mulf %51, %59 : vector<16x1xf32>
    %61 = arith.subf %37, %60 : vector<16x1xf32>
    %62 = vector.broadcast %59 : vector<16x1xf32> to vector<16x128xf32>
    %63 = arith.mulf %42, %62 : vector<16x128xf32>
    %64 = vector.broadcast %61 : vector<16x1xf32> to vector<16x128xf32>
    %65 = arith.addf %63, %64 : vector<16x128xf32>
    %66 = vector.extract_strided_slice %29 {offsets = [0, 3], sizes = [16, 1], strides = [1, 1]} : vector<16x9xf32> to vector<16x1xf32>
    %67 = vector.extract_strided_slice %29 {offsets = [0, 4], sizes = [16, 1], strides = [1, 1]} : vector<16x9xf32> to vector<16x1xf32>
    %68 = vector.extract_strided_slice %29 {offsets = [0, 5], sizes = [16, 1], strides = [1, 1]} : vector<16x9xf32> to vector<16x1xf32>
    %cst_37 = arith.constant 0.000000e+00 : f32
    %69 = vector.broadcast %cst_37 : f32 to vector<16x128xf32>
    %70 = arith.cmpf oge, %34, %69 : vector<16x128xf32>
    %71 = vector.broadcast %66 : vector<16x1xf32> to vector<16x128xf32>
    %72 = arith.mulf %71, %34 : vector<16x128xf32>
    %73 = arith.select %70, %34, %72 : vector<16x128xi1>, vector<16x128xf32>
    %74 = vector.broadcast %4 : vector<1x128xf32> to vector<16x128xf32>
    %75 = arith.mulf %73, %74 : vector<16x128xf32>
    %cst_38 = arith.constant dense<0.000000e+00> : vector<16xf32>
    %76 = vector.multi_reduction <add>, %75, %cst_38 [1] : vector<16x128xf32> to vector<16xf32>
    %77 = vector.shape_cast %76 : vector<16xf32> to vector<16x1xf32>
    %78 = arith.mulf %75, %73 : vector<16x128xf32>
    %cst_39 = arith.constant dense<0.000000e+00> : vector<16xf32>
    %79 = vector.multi_reduction <add>, %78, %cst_39 [1] : vector<16x128xf32> to vector<16xf32>
    %80 = vector.shape_cast %79 : vector<16xf32> to vector<16x1xf32>
    %cst_40 = arith.constant 0.00999999977 : f32
    %81 = vector.broadcast %cst_40 : f32 to vector<16x1xf32>
    %82 = arith.mulf %77, %81 : vector<16x1xf32>
    %cst_41 = arith.constant 0.00999999977 : f32
    %83 = vector.broadcast %cst_41 : f32 to vector<16x1xf32>
    %84 = arith.mulf %80, %83 : vector<16x1xf32>
    %85 = arith.mulf %82, %82 : vector<16x1xf32>
    %86 = arith.subf %84, %85 : vector<16x1xf32>
    %cst_42 = arith.constant 9.99999974E-6 : f32
    %87 = vector.broadcast %cst_42 : f32 to vector<16x1xf32>
    %88 = arith.addf %86, %87 : vector<16x1xf32>
    %89 = math.rsqrt %88 : vector<16x1xf32>
    %90 = arith.mulf %67, %89 : vector<16x1xf32>
    %91 = arith.mulf %82, %90 : vector<16x1xf32>
    %92 = arith.subf %68, %91 : vector<16x1xf32>
    %93 = vector.broadcast %90 : vector<16x1xf32> to vector<16x128xf32>
    %94 = arith.mulf %73, %93 : vector<16x128xf32>
    %95 = vector.broadcast %92 : vector<16x1xf32> to vector<16x128xf32>
    %96 = arith.addf %94, %95 : vector<16x128xf32>
    %97 = arith.truncf %65 : vector<16x128xf32> to vector<16x128xbf16>
    %c0_43 = arith.constant 0 : index
    %c128 = arith.constant 128 : index
    %98 = vector.load %arg13[%c0_43, %c128] : memref<32x256xbf16, #tpu.memory_space<vmem>>, vector<16x128xbf16>
    tpu.vector_store %arg13[%c0_43, %c128], %97 {strides = array<i32>} : memref<32x256xbf16, #tpu.memory_space<vmem>>, vector<16x128xbf16>,
    %99 = arith.truncf %96 : vector<16x128xf32> to vector<16x128xbf16>
    %c16 = arith.constant 16 : index
    %c128_44 = arith.constant 128 : index
    %100 = vector.load %arg13[%c16, %c128_44] : memref<32x256xbf16, #tpu.memory_space<vmem>>, vector<16x128xbf16>
    tpu.vector_store %arg13[%c16, %c128_44], %99 {strides = array<i32>} : memref<32x256xbf16, #tpu.memory_space<vmem>>, vector<16x128xbf16>,
    %c0_45 = arith.constant 0 : index
    %c126 = arith.constant 126 : index
    %101 = vector.load %arg13[%c0_45, %c126] : memref<32x256xbf16, #tpu.memory_space<vmem>>, vector<16x128xbf16>
    %c0_46 = arith.constant 0 : index
    %c0_47 = arith.constant 0 : index
    %102 = vector.load %arg14[%c0_46, %c0_47] : memref<96x128xbf16, #tpu.memory_space<vmem>>, vector<16x128xbf16>
    tpu.vector_store %arg14[%c0_46, %c0_47], %101 {strides = array<i32>} : memref<96x128xbf16, #tpu.memory_space<vmem>>, vector<16x128xbf16>,
    %c16_48 = arith.constant 16 : index
    %c126_49 = arith.constant 126 : index
    %103 = vector.load %arg13[%c16_48, %c126_49] : memref<32x256xbf16, #tpu.memory_space<vmem>>, vector<16x128xbf16>
    %c48 = arith.constant 48 : index
    %c0_50 = arith.constant 0 : index
    %104 = vector.load %arg14[%c48, %c0_50] : memref<96x128xbf16, #tpu.memory_space<vmem>>, vector<16x128xbf16>
    tpu.vector_store %arg14[%c48, %c0_50], %103 {strides = array<i32>} : memref<96x128xbf16, #tpu.memory_space<vmem>>, vector<16x128xbf16>,
    %c0_51 = arith.constant 0 : index
    %c127 = arith.constant 127 : index
    %105 = vector.load %arg13[%c0_51, %c127] : memref<32x256xbf16, #tpu.memory_space<vmem>>, vector<16x128xbf16>
    %c16_52 = arith.constant 16 : index
    %c0_53 = arith.constant 0 : index
    %106 = vector.load %arg14[%c16_52, %c0_53] : memref<96x128xbf16, #tpu.memory_space<vmem>>, vector<16x128xbf16>
    tpu.vector_store %arg14[%c16_52, %c0_53], %105 {strides = array<i32>} : memref<96x128xbf16, #tpu.memory_space<vmem>>, vector<16x128xbf16>,
    %c16_54 = arith.constant 16 : index
    %c127_55 = arith.constant 127 : index
    %107 = vector.load %arg13[%c16_54, %c127_55] : memref<32x256xbf16, #tpu.memory_space<vmem>>, vector<16x128xbf16>
    %c64 = arith.constant 64 : index
    %c0_56 = arith.constant 0 : index
    %108 = vector.load %arg14[%c64, %c0_56] : memref<96x128xbf16, #tpu.memory_space<vmem>>, vector<16x128xbf16>
    tpu.vector_store %arg14[%c64, %c0_56], %107 {strides = array<i32>} : memref<96x128xbf16, #tpu.memory_space<vmem>>, vector<16x128xbf16>,
    %c0_57 = arith.constant 0 : index
    %c128_58 = arith.constant 128 : index
    %109 = vector.load %arg13[%c0_57, %c128_58] : memref<32x256xbf16, #tpu.memory_space<vmem>>, vector<16x128xbf16>
    %c32 = arith.constant 32 : index
    %c0_59 = arith.constant 0 : index
    %110 = vector.load %arg14[%c32, %c0_59] : memref<96x128xbf16, #tpu.memory_space<vmem>>, vector<16x128xbf16>
    tpu.vector_store %arg14[%c32, %c0_59], %109 {strides = array<i32>} : memref<96x128xbf16, #tpu.memory_space<vmem>>, vector<16x128xbf16>,
    %c16_60 = arith.constant 16 : index
    %c128_61 = arith.constant 128 : index
    %111 = vector.load %arg13[%c16_60, %c128_61] : memref<32x256xbf16, #tpu.memory_space<vmem>>, vector<16x128xbf16>
    %c80 = arith.constant 80 : index
    %c0_62 = arith.constant 0 : index
    %112 = vector.load %arg14[%c80, %c0_62] : memref<96x128xbf16, #tpu.memory_space<vmem>>, vector<16x128xbf16>
    tpu.vector_store %arg14[%c80, %c0_62], %111 {strides = array<i32>} : memref<96x128xbf16, #tpu.memory_space<vmem>>, vector<16x128xbf16>,
    %c0_63 = arith.constant 0 : index
    %c0_64 = arith.constant 0 : index
    %c0_65 = arith.constant 0 : index
    %113 = vector.load %arg7[%c0_63, %c0_64, %c0_65] : memref<4x32x96xbf16, #tpu.memory_space<vmem>>, vector<1x32x96xbf16>
    %114 = vector.shape_cast %113 : vector<1x32x96xbf16> to vector<32x96xbf16>
    %c0_66 = arith.constant 0 : index
    %c0_67 = arith.constant 0 : index
    %115 = vector.load %arg14[%c0_66, %c0_67] : memref<96x128xbf16, #tpu.memory_space<vmem>>, vector<96x128xbf16>
    %cst_68 = arith.constant dense<0.000000e+00> : vector<32x128xf32>
    %116 = tpu.matmul %114, %115, %cst_68 {dimension_numbers = #tpu.dot_dimension_numbers<[1], [0], [0], [1], [0, 0, 1, 1], [], []>} : vector<32x96xbf16>, vector<96x128xbf16>, vector<32x128xf32> -> vector<32x128xf32>
    %117 = vector.extract_strided_slice %116 {offsets = [0, 0], sizes = [16, 128], strides = [1, 1]} : vector<32x128xf32> to vector<16x128xf32>
    %118 = vector.extract_strided_slice %116 {offsets = [16, 0], sizes = [16, 128], strides = [1, 1]} : vector<32x128xf32> to vector<16x128xf32>
    %119 = arith.negf %118 : vector<16x128xf32>
    %120 = math.exp %119 : vector<16x128xf32>
    %cst_69 = arith.constant 1.000000e+00 : f32
    %121 = vector.broadcast %cst_69 : f32 to vector<16x128xf32>
    %122 = arith.addf %121, %120 : vector<16x128xf32>
    %123 = arith.divf %121, %122 : vector<16x128xf32>
    %124 = arith.mulf %117, %123 : vector<16x128xf32>
    %125 = vector.extract_strided_slice %29 {offsets = [0, 6], sizes = [16, 1], strides = [1, 1]} : vector<16x9xf32> to vector<16x1xf32>
    %126 = vector.extract_strided_slice %29 {offsets = [0, 7], sizes = [16, 1], strides = [1, 1]} : vector<16x9xf32> to vector<16x1xf32>
    %127 = vector.extract_strided_slice %29 {offsets = [0, 8], sizes = [16, 1], strides = [1, 1]} : vector<16x9xf32> to vector<16x1xf32>
    %cst_70 = arith.constant 0.000000e+00 : f32
    %128 = vector.broadcast %cst_70 : f32 to vector<16x128xf32>
    %129 = arith.cmpf oge, %124, %128 : vector<16x128xf32>
    %130 = vector.broadcast %125 : vector<16x1xf32> to vector<16x128xf32>
    %131 = arith.mulf %130, %124 : vector<16x128xf32>
    %132 = arith.select %129, %124, %131 : vector<16x128xi1>, vector<16x128xf32>
    %133 = vector.broadcast %4 : vector<1x128xf32> to vector<16x128xf32>
    %134 = arith.mulf %132, %133 : vector<16x128xf32>
    %cst_71 = arith.constant dense<0.000000e+00> : vector<16xf32>
    %135 = vector.multi_reduction <add>, %134, %cst_71 [1] : vector<16x128xf32> to vector<16xf32>
    %136 = vector.shape_cast %135 : vector<16xf32> to vector<16x1xf32>
    %137 = arith.mulf %134, %132 : vector<16x128xf32>
    %cst_72 = arith.constant dense<0.000000e+00> : vector<16xf32>
    %138 = vector.multi_reduction <add>, %137, %cst_72 [1] : vector<16x128xf32> to vector<16xf32>
    %139 = vector.shape_cast %138 : vector<16xf32> to vector<16x1xf32>
    %cst_73 = arith.constant 0.00999999977 : f32
    %140 = vector.broadcast %cst_73 : f32 to vector<16x1xf32>
    %141 = arith.mulf %136, %140 : vector<16x1xf32>
    %cst_74 = arith.constant 0.00999999977 : f32
    %142 = vector.broadcast %cst_74 : f32 to vector<16x1xf32>
    %143 = arith.mulf %139, %142 : vector<16x1xf32>
    %144 = arith.mulf %141, %141 : vector<16x1xf32>
    %145 = arith.subf %143, %144 : vector<16x1xf32>
    %cst_75 = arith.constant 9.99999974E-6 : f32
    %146 = vector.broadcast %cst_75 : f32 to vector<16x1xf32>
    %147 = arith.addf %145, %146 : vector<16x1xf32>
    %148 = math.rsqrt %147 : vector<16x1xf32>
    %149 = arith.mulf %126, %148 : vector<16x1xf32>
    %150 = arith.mulf %141, %149 : vector<16x1xf32>
    %151 = arith.subf %127, %150 : vector<16x1xf32>
    %152 = vector.broadcast %149 : vector<16x1xf32> to vector<16x128xf32>
    %153 = arith.mulf %132, %152 : vector<16x128xf32>
    %154 = vector.broadcast %151 : vector<16x1xf32> to vector<16x128xf32>
    %155 = arith.addf %153, %154 : vector<16x128xf32>
    %c0_76 = arith.constant 0 : index
    %c0_77 = arith.constant 0 : index
    %c0_78 = arith.constant 0 : index
    %156 = vector.load %arg8[%c0_76, %c0_77, %c0_78] : memref<4x16x16xbf16, #tpu.memory_space<vmem>>, vector<1x16x16xbf16>
    %157 = vector.shape_cast %156 : vector<1x16x16xbf16> to vector<16x16xbf16>
    %158 = arith.truncf %155 : vector<16x128xf32> to vector<16x128xbf16>
    %cst_79 = arith.constant dense<0.000000e+00> : vector<16x128xf32>
    %159 = tpu.matmul %157, %158, %cst_79 {dimension_numbers = #tpu.dot_dimension_numbers<[1], [0], [0], [1], [0, 0, 1, 1], [], []>} : vector<16x16xbf16>, vector<16x128xbf16>, vector<16x128xf32> -> vector<16x128xf32>
    %160 = arith.addf %159, %30 : vector<16x128xf32>
    %c0_80 = arith.constant 0 : index
    %c0_81 = arith.constant 0 : index
    %161 = vector.load %arg15[%c0_80, %c0_81] : memref<16x128xf32, #tpu.memory_space<vmem>>, vector<16x128xf32>
    tpu.vector_store %arg15[%c0_80, %c0_81], %160 {strides = array<i32>} : memref<16x128xf32, #tpu.memory_space<vmem>>, vector<16x128xf32>,
    %c1 = arith.constant 1 : index
    %c0_82 = arith.constant 0 : index
    %c0_83 = arith.constant 0 : index
    %162 = vector.load %arg9[%c1, %c0_82, %c0_83] : memref<4x16x9xf32, #tpu.memory_space<vmem>>, vector<1x16x9xf32>
    %163 = vector.shape_cast %162 : vector<1x16x9xf32> to vector<16x9xf32>
    %c0_84 = arith.constant 0 : index
    %c0_85 = arith.constant 0 : index
    %164 = vector.load %arg15[%c0_84, %c0_85] : memref<16x128xf32, #tpu.memory_space<vmem>>, vector<16x128xf32>
    %c1_86 = arith.constant 1 : index
    %c0_87 = arith.constant 0 : index
    %c0_88 = arith.constant 0 : index
    %165 = vector.load %arg6[%c1_86, %c0_87, %c0_88] : memref<4x16x16xbf16, #tpu.memory_space<vmem>>, vector<1x16x16xbf16>
    %166 = vector.shape_cast %165 : vector<1x16x16xbf16> to vector<16x16xbf16>
    %167 = arith.truncf %164 : vector<16x128xf32> to vector<16x128xbf16>
    %cst_89 = arith.constant dense<0.000000e+00> : vector<16x128xf32>
    %168 = tpu.matmul %166, %167, %cst_89 {dimension_numbers = #tpu.dot_dimension_numbers<[1], [0], [0], [1], [0, 0, 1, 1], [], []>} : vector<16x16xbf16>, vector<16x128xbf16>, vector<16x128xf32> -> vector<16x128xf32>
    %169 = vector.extract_strided_slice %163 {offsets = [0, 0], sizes = [16, 1], strides = [1, 1]} : vector<16x9xf32> to vector<16x1xf32>
    %170 = vector.extract_strided_slice %163 {offsets = [0, 1], sizes = [16, 1], strides = [1, 1]} : vector<16x9xf32> to vector<16x1xf32>
    %171 = vector.extract_strided_slice %163 {offsets = [0, 2], sizes = [16, 1], strides = [1, 1]} : vector<16x9xf32> to vector<16x1xf32>
    %cst_90 = arith.constant 0.000000e+00 : f32
    %172 = vector.broadcast %cst_90 : f32 to vector<16x128xf32>
    %173 = arith.cmpf oge, %168, %172 : vector<16x128xf32>
    %174 = vector.broadcast %169 : vector<16x1xf32> to vector<16x128xf32>
    %175 = arith.mulf %174, %168 : vector<16x128xf32>
    %176 = arith.select %173, %168, %175 : vector<16x128xi1>, vector<16x128xf32>
    %177 = vector.broadcast %4 : vector<1x128xf32> to vector<16x128xf32>
    %178 = arith.mulf %176, %177 : vector<16x128xf32>
    %cst_91 = arith.constant dense<0.000000e+00> : vector<16xf32>
    %179 = vector.multi_reduction <add>, %178, %cst_91 [1] : vector<16x128xf32> to vector<16xf32>
    %180 = vector.shape_cast %179 : vector<16xf32> to vector<16x1xf32>
    %181 = arith.mulf %178, %176 : vector<16x128xf32>
    %cst_92 = arith.constant dense<0.000000e+00> : vector<16xf32>
    %182 = vector.multi_reduction <add>, %181, %cst_92 [1] : vector<16x128xf32> to vector<16xf32>
    %183 = vector.shape_cast %182 : vector<16xf32> to vector<16x1xf32>
    %cst_93 = arith.constant 0.00999999977 : f32
    %184 = vector.broadcast %cst_93 : f32 to vector<16x1xf32>
    %185 = arith.mulf %180, %184 : vector<16x1xf32>
    %cst_94 = arith.constant 0.00999999977 : f32
    %186 = vector.broadcast %cst_94 : f32 to vector<16x1xf32>
    %187 = arith.mulf %183, %186 : vector<16x1xf32>
    %188 = arith.mulf %185, %185 : vector<16x1xf32>
    %189 = arith.subf %187, %188 : vector<16x1xf32>
    %cst_95 = arith.constant 9.99999974E-6 : f32
    %190 = vector.broadcast %cst_95 : f32 to vector<16x1xf32>
    %191 = arith.addf %189, %190 : vector<16x1xf32>
    %192 = math.rsqrt %191 : vector<16x1xf32>
    %193 = arith.mulf %170, %192 : vector<16x1xf32>
    %194 = arith.mulf %185, %193 : vector<16x1xf32>
    %195 = arith.subf %171, %194 : vector<16x1xf32>
    %196 = vector.broadcast %193 : vector<16x1xf32> to vector<16x128xf32>
    %197 = arith.mulf %176, %196 : vector<16x128xf32>
    %198 = vector.broadcast %195 : vector<16x1xf32> to vector<16x128xf32>
    %199 = arith.addf %197, %198 : vector<16x128xf32>
    %200 = vector.extract_strided_slice %163 {offsets = [0, 3], sizes = [16, 1], strides = [1, 1]} : vector<16x9xf32> to vector<16x1xf32>
    %201 = vector.extract_strided_slice %163 {offsets = [0, 4], sizes = [16, 1], strides = [1, 1]} : vector<16x9xf32> to vector<16x1xf32>
    %202 = vector.extract_strided_slice %163 {offsets = [0, 5], sizes = [16, 1], strides = [1, 1]} : vector<16x9xf32> to vector<16x1xf32>
    %cst_96 = arith.constant 0.000000e+00 : f32
    %203 = vector.broadcast %cst_96 : f32 to vector<16x128xf32>
    %204 = arith.cmpf oge, %168, %203 : vector<16x128xf32>
    %205 = vector.broadcast %200 : vector<16x1xf32> to vector<16x128xf32>
    %206 = arith.mulf %205, %168 : vector<16x128xf32>
    %207 = arith.select %204, %168, %206 : vector<16x128xi1>, vector<16x128xf32>
    %208 = vector.broadcast %4 : vector<1x128xf32> to vector<16x128xf32>
    %209 = arith.mulf %207, %208 : vector<16x128xf32>
    %cst_97 = arith.constant dense<0.000000e+00> : vector<16xf32>
    %210 = vector.multi_reduction <add>, %209, %cst_97 [1] : vector<16x128xf32> to vector<16xf32>
    %211 = vector.shape_cast %210 : vector<16xf32> to vector<16x1xf32>
    %212 = arith.mulf %209, %207 : vector<16x128xf32>
    %cst_98 = arith.constant dense<0.000000e+00> : vector<16xf32>
    %213 = vector.multi_reduction <add>, %212, %cst_98 [1] : vector<16x128xf32> to vector<16xf32>
    %214 = vector.shape_cast %213 : vector<16xf32> to vector<16x1xf32>
    %cst_99 = arith.constant 0.00999999977 : f32
    %215 = vector.broadcast %cst_99 : f32 to vector<16x1xf32>
    %216 = arith.mulf %211, %215 : vector<16x1xf32>
    %cst_100 = arith.constant 0.00999999977 : f32
    %217 = vector.broadcast %cst_100 : f32 to vector<16x1xf32>
    %218 = arith.mulf %214, %217 : vector<16x1xf32>
    %219 = arith.mulf %216, %216 : vector<16x1xf32>
    %220 = arith.subf %218, %219 : vector<16x1xf32>
    %cst_101 = arith.constant 9.99999974E-6 : f32
    %221 = vector.broadcast %cst_101 : f32 to vector<16x1xf32>
    %222 = arith.addf %220, %221 : vector<16x1xf32>
    %223 = math.rsqrt %222 : vector<16x1xf32>
    %224 = arith.mulf %201, %223 : vector<16x1xf32>
    %225 = arith.mulf %216, %224 : vector<16x1xf32>
    %226 = arith.subf %202, %225 : vector<16x1xf32>
    %227 = vector.broadcast %224 : vector<16x1xf32> to vector<16x128xf32>
    %228 = arith.mulf %207, %227 : vector<16x128xf32>
    %229 = vector.broadcast %226 : vector<16x1xf32> to vector<16x128xf32>
    %230 = arith.addf %228, %229 : vector<16x128xf32>
    %231 = arith.truncf %199 : vector<16x128xf32> to vector<16x128xbf16>
    %c0_102 = arith.constant 0 : index
    %c128_103 = arith.constant 128 : index
    %232 = vector.load %arg13[%c0_102, %c128_103] : memref<32x256xbf16, #tpu.memory_space<vmem>>, vector<16x128xbf16>
    tpu.vector_store %arg13[%c0_102, %c128_103], %231 {strides = array<i32>} : memref<32x256xbf16, #tpu.memory_space<vmem>>, vector<16x128xbf16>,
    %233 = arith.truncf %230 : vector<16x128xf32> to vector<16x128xbf16>
    %c16_104 = arith.constant 16 : index
    %c128_105 = arith.constant 128 : index
    %234 = vector.load %arg13[%c16_104, %c128_105] : memref<32x256xbf16, #tpu.memory_space<vmem>>, vector<16x128xbf16>
    tpu.vector_store %arg13[%c16_104, %c128_105], %233 {strides = array<i32>} : memref<32x256xbf16, #tpu.memory_space<vmem>>, vector<16x128xbf16>,
    %c0_106 = arith.constant 0 : index
    %c124 = arith.constant 124 : index
    %235 = vector.load %arg13[%c0_106, %c124] : memref<32x256xbf16, #tpu.memory_space<vmem>>, vector<16x128xbf16>
    %c0_107 = arith.constant 0 : index
    %c0_108 = arith.constant 0 : index
    %236 = vector.load %arg14[%c0_107, %c0_108] : memref<96x128xbf16, #tpu.memory_space<vmem>>, vector<16x128xbf16>
    tpu.vector_store %arg14[%c0_107, %c0_108], %235 {strides = array<i32>} : memref<96x128xbf16, #tpu.memory_space<vmem>>, vector<16x128xbf16>,
    %c16_109 = arith.constant 16 : index
    %c124_110 = arith.constant 124 : index
    %237 = vector.load %arg13[%c16_109, %c124_110] : memref<32x256xbf16, #tpu.memory_space<vmem>>, vector<16x128xbf16>
    %c48_111 = arith.constant 48 : index
    %c0_112 = arith.constant 0 : index
    %238 = vector.load %arg14[%c48_111, %c0_112] : memref<96x128xbf16, #tpu.memory_space<vmem>>, vector<16x128xbf16>
    tpu.vector_store %arg14[%c48_111, %c0_112], %237 {strides = array<i32>} : memref<96x128xbf16, #tpu.memory_space<vmem>>, vector<16x128xbf16>,
    %c0_113 = arith.constant 0 : index
    %c126_114 = arith.constant 126 : index
    %239 = vector.load %arg13[%c0_113, %c126_114] : memref<32x256xbf16, #tpu.memory_space<vmem>>, vector<16x128xbf16>
    %c16_115 = arith.constant 16 : index
    %c0_116 = arith.constant 0 : index
    %240 = vector.load %arg14[%c16_115, %c0_116] : memref<96x128xbf16, #tpu.memory_space<vmem>>, vector<16x128xbf16>
    tpu.vector_store %arg14[%c16_115, %c0_116], %239 {strides = array<i32>} : memref<96x128xbf16, #tpu.memory_space<vmem>>, vector<16x128xbf16>,
    %c16_117 = arith.constant 16 : index
    %c126_118 = arith.constant 126 : index
    %241 = vector.load %arg13[%c16_117, %c126_118] : memref<32x256xbf16, #tpu.memory_space<vmem>>, vector<16x128xbf16>
    %c64_119 = arith.constant 64 : index
    %c0_120 = arith.constant 0 : index
    %242 = vector.load %arg14[%c64_119, %c0_120] : memref<96x128xbf16, #tpu.memory_space<vmem>>, vector<16x128xbf16>
    tpu.vector_store %arg14[%c64_119, %c0_120], %241 {strides = array<i32>} : memref<96x128xbf16, #tpu.memory_space<vmem>>, vector<16x128xbf16>,
    %c0_121 = arith.constant 0 : index
    %c128_122 = arith.constant 128 : index
    %243 = vector.load %arg13[%c0_121, %c128_122] : memref<32x256xbf16, #tpu.memory_space<vmem>>, vector<16x128xbf16>
    %c32_123 = arith.constant 32 : index
    %c0_124 = arith.constant 0 : index
    %244 = vector.load %arg14[%c32_123, %c0_124] : memref<96x128xbf16, #tpu.memory_space<vmem>>, vector<16x128xbf16>
    tpu.vector_store %arg14[%c32_123, %c0_124], %243 {strides = array<i32>} : memref<96x128xbf16, #tpu.memory_space<vmem>>, vector<16x128xbf16>,
    %c16_125 = arith.constant 16 : index
    %c128_126 = arith.constant 128 : index
    %245 = vector.load %arg13[%c16_125, %c128_126] : memref<32x256xbf16, #tpu.memory_space<vmem>>, vector<16x128xbf16>
    %c80_127 = arith.constant 80 : index
    %c0_128 = arith.constant 0 : index
    %246 = vector.load %arg14[%c80_127, %c0_128] : memref<96x128xbf16, #tpu.memory_space<vmem>>, vector<16x128xbf16>
    tpu.vector_store %arg14[%c80_127, %c0_128], %245 {strides = array<i32>} : memref<96x128xbf16, #tpu.memory_space<vmem>>, vector<16x128xbf16>,
    %c1_129 = arith.constant 1 : index
    %c0_130 = arith.constant 0 : index
    %c0_131 = arith.constant 0 : index
    %247 = vector.load %arg7[%c1_129, %c0_130, %c0_131] : memref<4x32x96xbf16, #tpu.memory_space<vmem>>, vector<1x32x96xbf16>
    %248 = vector.shape_cast %247 : vector<1x32x96xbf16> to vector<32x96xbf16>
    %c0_132 = arith.constant 0 : index
    %c0_133 = arith.constant 0 : index
    %249 = vector.load %arg14[%c0_132, %c0_133] : memref<96x128xbf16, #tpu.memory_space<vmem>>, vector<96x128xbf16>
    %cst_134 = arith.constant dense<0.000000e+00> : vector<32x128xf32>
    %250 = tpu.matmul %248, %249, %cst_134 {dimension_numbers = #tpu.dot_dimension_numbers<[1], [0], [0], [1], [0, 0, 1, 1], [], []>} : vector<32x96xbf16>, vector<96x128xbf16>, vector<32x128xf32> -> vector<32x128xf32>
    %251 = vector.extract_strided_slice %250 {offsets = [0, 0], sizes = [16, 128], strides = [1, 1]} : vector<32x128xf32> to vector<16x128xf32>
    %252 = vector.extract_strided_slice %250 {offsets = [16, 0], sizes = [16, 128], strides = [1, 1]} : vector<32x128xf32> to vector<16x128xf32>
    %253 = arith.negf %252 : vector<16x128xf32>
    %254 = math.exp %253 : vector<16x128xf32>
    %cst_135 = arith.constant 1.000000e+00 : f32
    %255 = vector.broadcast %cst_135 : f32 to vector<16x128xf32>
    %256 = arith.addf %255, %254 : vector<16x128xf32>
    %257 = arith.divf %255, %256 : vector<16x128xf32>
    %258 = arith.mulf %251, %257 : vector<16x128xf32>
    %259 = vector.extract_strided_slice %163 {offsets = [0, 6], sizes = [16, 1], strides = [1, 1]} : vector<16x9xf32> to vector<16x1xf32>
    %260 = vector.extract_strided_slice %163 {offsets = [0, 7], sizes = [16, 1], strides = [1, 1]} : vector<16x9xf32> to vector<16x1xf32>
    %261 = vector.extract_strided_slice %163 {offsets = [0, 8], sizes = [16, 1], strides = [1, 1]} : vector<16x9xf32> to vector<16x1xf32>
    %cst_136 = arith.constant 0.000000e+00 : f32
    %262 = vector.broadcast %cst_136 : f32 to vector<16x128xf32>
    %263 = arith.cmpf oge, %258, %262 : vector<16x128xf32>
    %264 = vector.broadcast %259 : vector<16x1xf32> to vector<16x128xf32>
    %265 = arith.mulf %264, %258 : vector<16x128xf32>
    %266 = arith.select %263, %258, %265 : vector<16x128xi1>, vector<16x128xf32>
    %267 = vector.broadcast %4 : vector<1x128xf32> to vector<16x128xf32>
    %268 = arith.mulf %266, %267 : vector<16x128xf32>
    %cst_137 = arith.constant dense<0.000000e+00> : vector<16xf32>
    %269 = vector.multi_reduction <add>, %268, %cst_137 [1] : vector<16x128xf32> to vector<16xf32>
    %270 = vector.shape_cast %269 : vector<16xf32> to vector<16x1xf32>
    %271 = arith.mulf %268, %266 : vector<16x128xf32>
    %cst_138 = arith.constant dense<0.000000e+00> : vector<16xf32>
    %272 = vector.multi_reduction <add>, %271, %cst_138 [1] : vector<16x128xf32> to vector<16xf32>
    %273 = vector.shape_cast %272 : vector<16xf32> to vector<16x1xf32>
    %cst_139 = arith.constant 0.00999999977 : f32
    %274 = vector.broadcast %cst_139 : f32 to vector<16x1xf32>
    %275 = arith.mulf %270, %274 : vector<16x1xf32>
    %cst_140 = arith.constant 0.00999999977 : f32
    %276 = vector.broadcast %cst_140 : f32 to vector<16x1xf32>
    %277 = arith.mulf %273, %276 : vector<16x1xf32>
    %278 = arith.mulf %275, %275 : vector<16x1xf32>
    %279 = arith.subf %277, %278 : vector<16x1xf32>
    %cst_141 = arith.constant 9.99999974E-6 : f32
    %280 = vector.broadcast %cst_141 : f32 to vector<16x1xf32>
    %281 = arith.addf %279, %280 : vector<16x1xf32>
    %282 = math.rsqrt %281 : vector<16x1xf32>
    %283 = arith.mulf %260, %282 : vector<16x1xf32>
    %284 = arith.mulf %275, %283 : vector<16x1xf32>
    %285 = arith.subf %261, %284 : vector<16x1xf32>
    %286 = vector.broadcast %283 : vector<16x1xf32> to vector<16x128xf32>
    %287 = arith.mulf %266, %286 : vector<16x128xf32>
    %288 = vector.broadcast %285 : vector<16x1xf32> to vector<16x128xf32>
    %289 = arith.addf %287, %288 : vector<16x128xf32>
    %c1_142 = arith.constant 1 : index
    %c0_143 = arith.constant 0 : index
    %c0_144 = arith.constant 0 : index
    %290 = vector.load %arg8[%c1_142, %c0_143, %c0_144] : memref<4x16x16xbf16, #tpu.memory_space<vmem>>, vector<1x16x16xbf16>
    %291 = vector.shape_cast %290 : vector<1x16x16xbf16> to vector<16x16xbf16>
    %292 = arith.truncf %289 : vector<16x128xf32> to vector<16x128xbf16>
    %cst_145 = arith.constant dense<0.000000e+00> : vector<16x128xf32>
    %293 = tpu.matmul %291, %292, %cst_145 {dimension_numbers = #tpu.dot_dimension_numbers<[1], [0], [0], [1], [0, 0, 1, 1], [], []>} : vector<16x16xbf16>, vector<16x128xbf16>, vector<16x128xf32> -> vector<16x128xf32>
    %294 = arith.addf %293, %164 : vector<16x128xf32>
    %c0_146 = arith.constant 0 : index
    %c0_147 = arith.constant 0 : index
    %295 = vector.load %arg15[%c0_146, %c0_147] : memref<16x128xf32, #tpu.memory_space<vmem>>, vector<16x128xf32>
    tpu.vector_store %arg15[%c0_146, %c0_147], %294 {strides = array<i32>} : memref<16x128xf32, #tpu.memory_space<vmem>>, vector<16x128xf32>,
    %c0_148 = arith.constant 0 : index
    %c0_149 = arith.constant 0 : index
    %296 = vector.load %arg16[%c0_148, %c0_149] : memref<16x128xf32, #tpu.memory_space<vmem>>, vector<16x128xf32>
    %c0_150 = arith.constant 0 : index
    %c0_151 = arith.constant 0 : index
    %297 = vector.load %arg15[%c0_150, %c0_151] : memref<16x128xf32, #tpu.memory_space<vmem>>, vector<16x128xf32>
    %298 = arith.addf %296, %297 : vector<16x128xf32>
    %c0_152 = arith.constant 0 : index
    %c0_153 = arith.constant 0 : index
    %299 = vector.load %arg16[%c0_152, %c0_153] : memref<16x128xf32, #tpu.memory_space<vmem>>, vector<16x128xf32>
    tpu.vector_store %arg16[%c0_152, %c0_153], %298 {strides = array<i32>} : memref<16x128xf32, #tpu.memory_space<vmem>>, vector<16x128xf32>,
    %c2 = arith.constant 2 : index
    %c0_154 = arith.constant 0 : index
    %c0_155 = arith.constant 0 : index
    %300 = vector.load %arg9[%c2, %c0_154, %c0_155] : memref<4x16x9xf32, #tpu.memory_space<vmem>>, vector<1x16x9xf32>
    %301 = vector.shape_cast %300 : vector<1x16x9xf32> to vector<16x9xf32>
    %c0_156 = arith.constant 0 : index
    %c0_157 = arith.constant 0 : index
    %302 = vector.load %arg15[%c0_156, %c0_157] : memref<16x128xf32, #tpu.memory_space<vmem>>, vector<16x128xf32>
    %c2_158 = arith.constant 2 : index
    %c0_159 = arith.constant 0 : index
    %c0_160 = arith.constant 0 : index
    %303 = vector.load %arg6[%c2_158, %c0_159, %c0_160] : memref<4x16x16xbf16, #tpu.memory_space<vmem>>, vector<1x16x16xbf16>
    %304 = vector.shape_cast %303 : vector<1x16x16xbf16> to vector<16x16xbf16>
    %305 = arith.truncf %302 : vector<16x128xf32> to vector<16x128xbf16>
    %cst_161 = arith.constant dense<0.000000e+00> : vector<16x128xf32>
    %306 = tpu.matmul %304, %305, %cst_161 {dimension_numbers = #tpu.dot_dimension_numbers<[1], [0], [0], [1], [0, 0, 1, 1], [], []>} : vector<16x16xbf16>, vector<16x128xbf16>, vector<16x128xf32> -> vector<16x128xf32>
    %307 = vector.extract_strided_slice %301 {offsets = [0, 0], sizes = [16, 1], strides = [1, 1]} : vector<16x9xf32> to vector<16x1xf32>
    %308 = vector.extract_strided_slice %301 {offsets = [0, 1], sizes = [16, 1], strides = [1, 1]} : vector<16x9xf32> to vector<16x1xf32>
    %309 = vector.extract_strided_slice %301 {offsets = [0, 2], sizes = [16, 1], strides = [1, 1]} : vector<16x9xf32> to vector<16x1xf32>
    %cst_162 = arith.constant 0.000000e+00 : f32
    %310 = vector.broadcast %cst_162 : f32 to vector<16x128xf32>
    %311 = arith.cmpf oge, %306, %310 : vector<16x128xf32>
    %312 = vector.broadcast %307 : vector<16x1xf32> to vector<16x128xf32>
    %313 = arith.mulf %312, %306 : vector<16x128xf32>
    %314 = arith.select %311, %306, %313 : vector<16x128xi1>, vector<16x128xf32>
    %315 = vector.broadcast %4 : vector<1x128xf32> to vector<16x128xf32>
    %316 = arith.mulf %314, %315 : vector<16x128xf32>
    %cst_163 = arith.constant dense<0.000000e+00> : vector<16xf32>
    %317 = vector.multi_reduction <add>, %316, %cst_163 [1] : vector<16x128xf32> to vector<16xf32>
    %318 = vector.shape_cast %317 : vector<16xf32> to vector<16x1xf32>
    %319 = arith.mulf %316, %314 : vector<16x128xf32>
    %cst_164 = arith.constant dense<0.000000e+00> : vector<16xf32>
    %320 = vector.multi_reduction <add>, %319, %cst_164 [1] : vector<16x128xf32> to vector<16xf32>
    %321 = vector.shape_cast %320 : vector<16xf32> to vector<16x1xf32>
    %cst_165 = arith.constant 0.00999999977 : f32
    %322 = vector.broadcast %cst_165 : f32 to vector<16x1xf32>
    %323 = arith.mulf %318, %322 : vector<16x1xf32>
    %cst_166 = arith.constant 0.00999999977 : f32
    %324 = vector.broadcast %cst_166 : f32 to vector<16x1xf32>
    %325 = arith.mulf %321, %324 : vector<16x1xf32>
    %326 = arith.mulf %323, %323 : vector<16x1xf32>
    %327 = arith.subf %325, %326 : vector<16x1xf32>
    %cst_167 = arith.constant 9.99999974E-6 : f32
    %328 = vector.broadcast %cst_167 : f32 to vector<16x1xf32>
    %329 = arith.addf %327, %328 : vector<16x1xf32>
    %330 = math.rsqrt %329 : vector<16x1xf32>
    %331 = arith.mulf %308, %330 : vector<16x1xf32>
    %332 = arith.mulf %323, %331 : vector<16x1xf32>
    %333 = arith.subf %309, %332 : vector<16x1xf32>
    %334 = vector.broadcast %331 : vector<16x1xf32> to vector<16x128xf32>
    %335 = arith.mulf %314, %334 : vector<16x128xf32>
    %336 = vector.broadcast %333 : vector<16x1xf32> to vector<16x128xf32>
    %337 = arith.addf %335, %336 : vector<16x128xf32>
    %338 = vector.extract_strided_slice %301 {offsets = [0, 3], sizes = [16, 1], strides = [1, 1]} : vector<16x9xf32> to vector<16x1xf32>
    %339 = vector.extract_strided_slice %301 {offsets = [0, 4], sizes = [16, 1], strides = [1, 1]} : vector<16x9xf32> to vector<16x1xf32>
    %340 = vector.extract_strided_slice %301 {offsets = [0, 5], sizes = [16, 1], strides = [1, 1]} : vector<16x9xf32> to vector<16x1xf32>
    %cst_168 = arith.constant 0.000000e+00 : f32
    %341 = vector.broadcast %cst_168 : f32 to vector<16x128xf32>
    %342 = arith.cmpf oge, %306, %341 : vector<16x128xf32>
    %343 = vector.broadcast %338 : vector<16x1xf32> to vector<16x128xf32>
    %344 = arith.mulf %343, %306 : vector<16x128xf32>
    %345 = arith.select %342, %306, %344 : vector<16x128xi1>, vector<16x128xf32>
    %346 = vector.broadcast %4 : vector<1x128xf32> to vector<16x128xf32>
    %347 = arith.mulf %345, %346 : vector<16x128xf32>
    %cst_169 = arith.constant dense<0.000000e+00> : vector<16xf32>
    %348 = vector.multi_reduction <add>, %347, %cst_169 [1] : vector<16x128xf32> to vector<16xf32>
    %349 = vector.shape_cast %348 : vector<16xf32> to vector<16x1xf32>
    %350 = arith.mulf %347, %345 : vector<16x128xf32>
    %cst_170 = arith.constant dense<0.000000e+00> : vector<16xf32>
    %351 = vector.multi_reduction <add>, %350, %cst_170 [1] : vector<16x128xf32> to vector<16xf32>
    %352 = vector.shape_cast %351 : vector<16xf32> to vector<16x1xf32>
    %cst_171 = arith.constant 0.00999999977 : f32
    %353 = vector.broadcast %cst_171 : f32 to vector<16x1xf32>
    %354 = arith.mulf %349, %353 : vector<16x1xf32>
    %cst_172 = arith.constant 0.00999999977 : f32
    %355 = vector.broadcast %cst_172 : f32 to vector<16x1xf32>
    %356 = arith.mulf %352, %355 : vector<16x1xf32>
    %357 = arith.mulf %354, %354 : vector<16x1xf32>
    %358 = arith.subf %356, %357 : vector<16x1xf32>
    %cst_173 = arith.constant 9.99999974E-6 : f32
    %359 = vector.broadcast %cst_173 : f32 to vector<16x1xf32>
    %360 = arith.addf %358, %359 : vector<16x1xf32>
    %361 = math.rsqrt %360 : vector<16x1xf32>
    %362 = arith.mulf %339, %361 : vector<16x1xf32>
    %363 = arith.mulf %354, %362 : vector<16x1xf32>
    %364 = arith.subf %340, %363 : vector<16x1xf32>
    %365 = vector.broadcast %362 : vector<16x1xf32> to vector<16x128xf32>
    %366 = arith.mulf %345, %365 : vector<16x128xf32>
    %367 = vector.broadcast %364 : vector<16x1xf32> to vector<16x128xf32>
    %368 = arith.addf %366, %367 : vector<16x128xf32>
    %369 = arith.truncf %337 : vector<16x128xf32> to vector<16x128xbf16>
    %c0_174 = arith.constant 0 : index
    %c128_175 = arith.constant 128 : index
    %370 = vector.load %arg13[%c0_174, %c128_175] : memref<32x256xbf16, #tpu.memory_space<vmem>>, vector<16x128xbf16>
    tpu.vector_store %arg13[%c0_174, %c128_175], %369 {strides = array<i32>} : memref<32x256xbf16, #tpu.memory_space<vmem>>, vector<16x128xbf16>,
    %371 = arith.truncf %368 : vector<16x128xf32> to vector<16x128xbf16>
    %c16_176 = arith.constant 16 : index
    %c128_177 = arith.constant 128 : index
    %372 = vector.load %arg13[%c16_176, %c128_177] : memref<32x256xbf16, #tpu.memory_space<vmem>>, vector<16x128xbf16>
    tpu.vector_store %arg13[%c16_176, %c128_177], %371 {strides = array<i32>} : memref<32x256xbf16, #tpu.memory_space<vmem>>, vector<16x128xbf16>,
    %c0_178 = arith.constant 0 : index
    %c126_179 = arith.constant 126 : index
    %373 = vector.load %arg13[%c0_178, %c126_179] : memref<32x256xbf16, #tpu.memory_space<vmem>>, vector<16x128xbf16>
    %c0_180 = arith.constant 0 : index
    %c0_181 = arith.constant 0 : index
    %374 = vector.load %arg14[%c0_180, %c0_181] : memref<96x128xbf16, #tpu.memory_space<vmem>>, vector<16x128xbf16>
    tpu.vector_store %arg14[%c0_180, %c0_181], %373 {strides = array<i32>} : memref<96x128xbf16, #tpu.memory_space<vmem>>, vector<16x128xbf16>,
    %c16_182 = arith.constant 16 : index
    %c126_183 = arith.constant 126 : index
    %375 = vector.load %arg13[%c16_182, %c126_183] : memref<32x256xbf16, #tpu.memory_space<vmem>>, vector<16x128xbf16>
    %c48_184 = arith.constant 48 : index
    %c0_185 = arith.constant 0 : index
    %376 = vector.load %arg14[%c48_184, %c0_185] : memref<96x128xbf16, #tpu.memory_space<vmem>>, vector<16x128xbf16>
    tpu.vector_store %arg14[%c48_184, %c0_185], %375 {strides = array<i32>} : memref<96x128xbf16, #tpu.memory_space<vmem>>, vector<16x128xbf16>,
    %c0_186 = arith.constant 0 : index
    %c127_187 = arith.constant 127 : index
    %377 = vector.load %arg13[%c0_186, %c127_187] : memref<32x256xbf16, #tpu.memory_space<vmem>>, vector<16x128xbf16>
    %c16_188 = arith.constant 16 : index
    %c0_189 = arith.constant 0 : index
    %378 = vector.load %arg14[%c16_188, %c0_189] : memref<96x128xbf16, #tpu.memory_space<vmem>>, vector<16x128xbf16>
    tpu.vector_store %arg14[%c16_188, %c0_189], %377 {strides = array<i32>} : memref<96x128xbf16, #tpu.memory_space<vmem>>, vector<16x128xbf16>,
    %c16_190 = arith.constant 16 : index
    %c127_191 = arith.constant 127 : index
    %379 = vector.load %arg13[%c16_190, %c127_191] : memref<32x256xbf16, #tpu.memory_space<vmem>>, vector<16x128xbf16>
    %c64_192 = arith.constant 64 : index
    %c0_193 = arith.constant 0 : index
    %380 = vector.load %arg14[%c64_192, %c0_193] : memref<96x128xbf16, #tpu.memory_space<vmem>>, vector<16x128xbf16>
    tpu.vector_store %arg14[%c64_192, %c0_193], %379 {strides = array<i32>} : memref<96x128xbf16, #tpu.memory_space<vmem>>, vector<16x128xbf16>,
    %c0_194 = arith.constant 0 : index
    %c128_195 = arith.constant 128 : index
    %381 = vector.load %arg13[%c0_194, %c128_195] : memref<32x256xbf16, #tpu.memory_space<vmem>>, vector<16x128xbf16>
    %c32_196 = arith.constant 32 : index
    %c0_197 = arith.constant 0 : index
    %382 = vector.load %arg14[%c32_196, %c0_197] : memref<96x128xbf16, #tpu.memory_space<vmem>>, vector<16x128xbf16>
    tpu.vector_store %arg14[%c32_196, %c0_197], %381 {strides = array<i32>} : memref<96x128xbf16, #tpu.memory_space<vmem>>, vector<16x128xbf16>,
    %c16_198 = arith.constant 16 : index
    %c128_199 = arith.constant 128 : index
    %383 = vector.load %arg13[%c16_198, %c128_199] : memref<32x256xbf16, #tpu.memory_space<vmem>>, vector<16x128xbf16>
    %c80_200 = arith.constant 80 : index
    %c0_201 = arith.constant 0 : index
    %384 = vector.load %arg14[%c80_200, %c0_201] : memref<96x128xbf16, #tpu.memory_space<vmem>>, vector<16x128xbf16>
    tpu.vector_store %arg14[%c80_200, %c0_201], %383 {strides = array<i32>} : memref<96x128xbf16, #tpu.memory_space<vmem>>, vector<16x128xbf16>,
    %c2_202 = arith.constant 2 : index
    %c0_203 = arith.constant 0 : index
    %c0_204 = arith.constant 0 : index
    %385 = vector.load %arg7[%c2_202, %c0_203, %c0_204] : memref<4x32x96xbf16, #tpu.memory_space<vmem>>, vector<1x32x96xbf16>
    %386 = vector.shape_cast %385 : vector<1x32x96xbf16> to vector<32x96xbf16>
    %c0_205 = arith.constant 0 : index
    %c0_206 = arith.constant 0 : index
    %387 = vector.load %arg14[%c0_205, %c0_206] : memref<96x128xbf16, #tpu.memory_space<vmem>>, vector<96x128xbf16>
    %cst_207 = arith.constant dense<0.000000e+00> : vector<32x128xf32>
    %388 = tpu.matmul %386, %387, %cst_207 {dimension_numbers = #tpu.dot_dimension_numbers<[1], [0], [0], [1], [0, 0, 1, 1], [], []>} : vector<32x96xbf16>, vector<96x128xbf16>, vector<32x128xf32> -> vector<32x128xf32>
    %389 = vector.extract_strided_slice %388 {offsets = [0, 0], sizes = [16, 128], strides = [1, 1]} : vector<32x128xf32> to vector<16x128xf32>
    %390 = vector.extract_strided_slice %388 {offsets = [16, 0], sizes = [16, 128], strides = [1, 1]} : vector<32x128xf32> to vector<16x128xf32>
    %391 = arith.negf %390 : vector<16x128xf32>
    %392 = math.exp %391 : vector<16x128xf32>
    %cst_208 = arith.constant 1.000000e+00 : f32
    %393 = vector.broadcast %cst_208 : f32 to vector<16x128xf32>
    %394 = arith.addf %393, %392 : vector<16x128xf32>
    %395 = arith.divf %393, %394 : vector<16x128xf32>
    %396 = arith.mulf %389, %395 : vector<16x128xf32>
    %397 = vector.extract_strided_slice %301 {offsets = [0, 6], sizes = [16, 1], strides = [1, 1]} : vector<16x9xf32> to vector<16x1xf32>
    %398 = vector.extract_strided_slice %301 {offsets = [0, 7], sizes = [16, 1], strides = [1, 1]} : vector<16x9xf32> to vector<16x1xf32>
    %399 = vector.extract_strided_slice %301 {offsets = [0, 8], sizes = [16, 1], strides = [1, 1]} : vector<16x9xf32> to vector<16x1xf32>
    %cst_209 = arith.constant 0.000000e+00 : f32
    %400 = vector.broadcast %cst_209 : f32 to vector<16x128xf32>
    %401 = arith.cmpf oge, %396, %400 : vector<16x128xf32>
    %402 = vector.broadcast %397 : vector<16x1xf32> to vector<16x128xf32>
    %403 = arith.mulf %402, %396 : vector<16x128xf32>
    %404 = arith.select %401, %396, %403 : vector<16x128xi1>, vector<16x128xf32>
    %405 = vector.broadcast %4 : vector<1x128xf32> to vector<16x128xf32>
    %406 = arith.mulf %404, %405 : vector<16x128xf32>
    %cst_210 = arith.constant dense<0.000000e+00> : vector<16xf32>
    %407 = vector.multi_reduction <add>, %406, %cst_210 [1] : vector<16x128xf32> to vector<16xf32>
    %408 = vector.shape_cast %407 : vector<16xf32> to vector<16x1xf32>
    %409 = arith.mulf %406, %404 : vector<16x128xf32>
    %cst_211 = arith.constant dense<0.000000e+00> : vector<16xf32>
    %410 = vector.multi_reduction <add>, %409, %cst_211 [1] : vector<16x128xf32> to vector<16xf32>
    %411 = vector.shape_cast %410 : vector<16xf32> to vector<16x1xf32>
    %cst_212 = arith.constant 0.00999999977 : f32
    %412 = vector.broadcast %cst_212 : f32 to vector<16x1xf32>
    %413 = arith.mulf %408, %412 : vector<16x1xf32>
    %cst_213 = arith.constant 0.00999999977 : f32
    %414 = vector.broadcast %cst_213 : f32 to vector<16x1xf32>
    %415 = arith.mulf %411, %414 : vector<16x1xf32>
    %416 = arith.mulf %413, %413 : vector<16x1xf32>
    %417 = arith.subf %415, %416 : vector<16x1xf32>
    %cst_214 = arith.constant 9.99999974E-6 : f32
    %418 = vector.broadcast %cst_214 : f32 to vector<16x1xf32>
    %419 = arith.addf %417, %418 : vector<16x1xf32>
    %420 = math.rsqrt %419 : vector<16x1xf32>
    %421 = arith.mulf %398, %420 : vector<16x1xf32>
    %422 = arith.mulf %413, %421 : vector<16x1xf32>
    %423 = arith.subf %399, %422 : vector<16x1xf32>
    %424 = vector.broadcast %421 : vector<16x1xf32> to vector<16x128xf32>
    %425 = arith.mulf %404, %424 : vector<16x128xf32>
    %426 = vector.broadcast %423 : vector<16x1xf32> to vector<16x128xf32>
    %427 = arith.addf %425, %426 : vector<16x128xf32>
    %c2_215 = arith.constant 2 : index
    %c0_216 = arith.constant 0 : index
    %c0_217 = arith.constant 0 : index
    %428 = vector.load %arg8[%c2_215, %c0_216, %c0_217] : memref<4x16x16xbf16, #tpu.memory_space<vmem>>, vector<1x16x16xbf16>
    %429 = vector.shape_cast %428 : vector<1x16x16xbf16> to vector<16x16xbf16>
    %430 = arith.truncf %427 : vector<16x128xf32> to vector<16x128xbf16>
    %cst_218 = arith.constant dense<0.000000e+00> : vector<16x128xf32>
    %431 = tpu.matmul %429, %430, %cst_218 {dimension_numbers = #tpu.dot_dimension_numbers<[1], [0], [0], [1], [0, 0, 1, 1], [], []>} : vector<16x16xbf16>, vector<16x128xbf16>, vector<16x128xf32> -> vector<16x128xf32>
    %432 = arith.addf %431, %302 : vector<16x128xf32>
    %c0_219 = arith.constant 0 : index
    %c0_220 = arith.constant 0 : index
    %433 = vector.load %arg15[%c0_219, %c0_220] : memref<16x128xf32, #tpu.memory_space<vmem>>, vector<16x128xf32>
    tpu.vector_store %arg15[%c0_219, %c0_220], %432 {strides = array<i32>} : memref<16x128xf32, #tpu.memory_space<vmem>>, vector<16x128xf32>,
    %c3 = arith.constant 3 : index
    %c0_221 = arith.constant 0 : index
    %c0_222 = arith.constant 0 : index
    %434 = vector.load %arg9[%c3, %c0_221, %c0_222] : memref<4x16x9xf32, #tpu.memory_space<vmem>>, vector<1x16x9xf32>
    %435 = vector.shape_cast %434 : vector<1x16x9xf32> to vector<16x9xf32>
    %c0_223 = arith.constant 0 : index
    %c0_224 = arith.constant 0 : index
    %436 = vector.load %arg15[%c0_223, %c0_224] : memref<16x128xf32, #tpu.memory_space<vmem>>, vector<16x128xf32>
    %c3_225 = arith.constant 3 : index
    %c0_226 = arith.constant 0 : index
    %c0_227 = arith.constant 0 : index
    %437 = vector.load %arg6[%c3_225, %c0_226, %c0_227] : memref<4x16x16xbf16, #tpu.memory_space<vmem>>, vector<1x16x16xbf16>
    %438 = vector.shape_cast %437 : vector<1x16x16xbf16> to vector<16x16xbf16>
    %439 = arith.truncf %436 : vector<16x128xf32> to vector<16x128xbf16>
    %cst_228 = arith.constant dense<0.000000e+00> : vector<16x128xf32>
    %440 = tpu.matmul %438, %439, %cst_228 {dimension_numbers = #tpu.dot_dimension_numbers<[1], [0], [0], [1], [0, 0, 1, 1], [], []>} : vector<16x16xbf16>, vector<16x128xbf16>, vector<16x128xf32> -> vector<16x128xf32>
    %441 = vector.extract_strided_slice %435 {offsets = [0, 0], sizes = [16, 1], strides = [1, 1]} : vector<16x9xf32> to vector<16x1xf32>
    %442 = vector.extract_strided_slice %435 {offsets = [0, 1], sizes = [16, 1], strides = [1, 1]} : vector<16x9xf32> to vector<16x1xf32>
    %443 = vector.extract_strided_slice %435 {offsets = [0, 2], sizes = [16, 1], strides = [1, 1]} : vector<16x9xf32> to vector<16x1xf32>
    %cst_229 = arith.constant 0.000000e+00 : f32
    %444 = vector.broadcast %cst_229 : f32 to vector<16x128xf32>
    %445 = arith.cmpf oge, %440, %444 : vector<16x128xf32>
    %446 = vector.broadcast %441 : vector<16x1xf32> to vector<16x128xf32>
    %447 = arith.mulf %446, %440 : vector<16x128xf32>
    %448 = arith.select %445, %440, %447 : vector<16x128xi1>, vector<16x128xf32>
    %449 = vector.broadcast %4 : vector<1x128xf32> to vector<16x128xf32>
    %450 = arith.mulf %448, %449 : vector<16x128xf32>
    %cst_230 = arith.constant dense<0.000000e+00> : vector<16xf32>
    %451 = vector.multi_reduction <add>, %450, %cst_230 [1] : vector<16x128xf32> to vector<16xf32>
    %452 = vector.shape_cast %451 : vector<16xf32> to vector<16x1xf32>
    %453 = arith.mulf %450, %448 : vector<16x128xf32>
    %cst_231 = arith.constant dense<0.000000e+00> : vector<16xf32>
    %454 = vector.multi_reduction <add>, %453, %cst_231 [1] : vector<16x128xf32> to vector<16xf32>
    %455 = vector.shape_cast %454 : vector<16xf32> to vector<16x1xf32>
    %cst_232 = arith.constant 0.00999999977 : f32
    %456 = vector.broadcast %cst_232 : f32 to vector<16x1xf32>
    %457 = arith.mulf %452, %456 : vector<16x1xf32>
    %cst_233 = arith.constant 0.00999999977 : f32
    %458 = vector.broadcast %cst_233 : f32 to vector<16x1xf32>
    %459 = arith.mulf %455, %458 : vector<16x1xf32>
    %460 = arith.mulf %457, %457 : vector<16x1xf32>
    %461 = arith.subf %459, %460 : vector<16x1xf32>
    %cst_234 = arith.constant 9.99999974E-6 : f32
    %462 = vector.broadcast %cst_234 : f32 to vector<16x1xf32>
    %463 = arith.addf %461, %462 : vector<16x1xf32>
    %464 = math.rsqrt %463 : vector<16x1xf32>
    %465 = arith.mulf %442, %464 : vector<16x1xf32>
    %466 = arith.mulf %457, %465 : vector<16x1xf32>
    %467 = arith.subf %443, %466 : vector<16x1xf32>
    %468 = vector.broadcast %465 : vector<16x1xf32> to vector<16x128xf32>
    %469 = arith.mulf %448, %468 : vector<16x128xf32>
    %470 = vector.broadcast %467 : vector<16x1xf32> to vector<16x128xf32>
    %471 = arith.addf %469, %470 : vector<16x128xf32>
    %472 = vector.extract_strided_slice %435 {offsets = [0, 3], sizes = [16, 1], strides = [1, 1]} : vector<16x9xf32> to vector<16x1xf32>
    %473 = vector.extract_strided_slice %435 {offsets = [0, 4], sizes = [16, 1], strides = [1, 1]} : vector<16x9xf32> to vector<16x1xf32>
    %474 = vector.extract_strided_slice %435 {offsets = [0, 5], sizes = [16, 1], strides = [1, 1]} : vector<16x9xf32> to vector<16x1xf32>
    %cst_235 = arith.constant 0.000000e+00 : f32
    %475 = vector.broadcast %cst_235 : f32 to vector<16x128xf32>
    %476 = arith.cmpf oge, %440, %475 : vector<16x128xf32>
    %477 = vector.broadcast %472 : vector<16x1xf32> to vector<16x128xf32>
    %478 = arith.mulf %477, %440 : vector<16x128xf32>
    %479 = arith.select %476, %440, %478 : vector<16x128xi1>, vector<16x128xf32>
    %480 = vector.broadcast %4 : vector<1x128xf32> to vector<16x128xf32>
    %481 = arith.mulf %479, %480 : vector<16x128xf32>
    %cst_236 = arith.constant dense<0.000000e+00> : vector<16xf32>
    %482 = vector.multi_reduction <add>, %481, %cst_236 [1] : vector<16x128xf32> to vector<16xf32>
    %483 = vector.shape_cast %482 : vector<16xf32> to vector<16x1xf32>
    %484 = arith.mulf %481, %479 : vector<16x128xf32>
    %cst_237 = arith.constant dense<0.000000e+00> : vector<16xf32>
    %485 = vector.multi_reduction <add>, %484, %cst_237 [1] : vector<16x128xf32> to vector<16xf32>
    %486 = vector.shape_cast %485 : vector<16xf32> to vector<16x1xf32>
    %cst_238 = arith.constant 0.00999999977 : f32
    %487 = vector.broadcast %cst_238 : f32 to vector<16x1xf32>
    %488 = arith.mulf %483, %487 : vector<16x1xf32>
    %cst_239 = arith.constant 0.00999999977 : f32
    %489 = vector.broadcast %cst_239 : f32 to vector<16x1xf32>
    %490 = arith.mulf %486, %489 : vector<16x1xf32>
    %491 = arith.mulf %488, %488 : vector<16x1xf32>
    %492 = arith.subf %490, %491 : vector<16x1xf32>
    %cst_240 = arith.constant 9.99999974E-6 : f32
    %493 = vector.broadcast %cst_240 : f32 to vector<16x1xf32>
    %494 = arith.addf %492, %493 : vector<16x1xf32>
    %495 = math.rsqrt %494 : vector<16x1xf32>
    %496 = arith.mulf %473, %495 : vector<16x1xf32>
    %497 = arith.mulf %488, %496 : vector<16x1xf32>
    %498 = arith.subf %474, %497 : vector<16x1xf32>
    %499 = vector.broadcast %496 : vector<16x1xf32> to vector<16x128xf32>
    %500 = arith.mulf %479, %499 : vector<16x128xf32>
    %501 = vector.broadcast %498 : vector<16x1xf32> to vector<16x128xf32>
    %502 = arith.addf %500, %501 : vector<16x128xf32>
    %503 = arith.truncf %471 : vector<16x128xf32> to vector<16x128xbf16>
    %c0_241 = arith.constant 0 : index
    %c128_242 = arith.constant 128 : index
    %504 = vector.load %arg13[%c0_241, %c128_242] : memref<32x256xbf16, #tpu.memory_space<vmem>>, vector<16x128xbf16>
    tpu.vector_store %arg13[%c0_241, %c128_242], %503 {strides = array<i32>} : memref<32x256xbf16, #tpu.memory_space<vmem>>, vector<16x128xbf16>,
    %505 = arith.truncf %502 : vector<16x128xf32> to vector<16x128xbf16>
    %c16_243 = arith.constant 16 : index
    %c128_244 = arith.constant 128 : index
    %506 = vector.load %arg13[%c16_243, %c128_244] : memref<32x256xbf16, #tpu.memory_space<vmem>>, vector<16x128xbf16>
    tpu.vector_store %arg13[%c16_243, %c128_244], %505 {strides = array<i32>} : memref<32x256xbf16, #tpu.memory_space<vmem>>, vector<16x128xbf16>,
    %c0_245 = arith.constant 0 : index
    %c124_246 = arith.constant 124 : index
    %507 = vector.load %arg13[%c0_245, %c124_246] : memref<32x256xbf16, #tpu.memory_space<vmem>>, vector<16x128xbf16>
    %c0_247 = arith.constant 0 : index
    %c0_248 = arith.constant 0 : index
    %508 = vector.load %arg14[%c0_247, %c0_248] : memref<96x128xbf16, #tpu.memory_space<vmem>>, vector<16x128xbf16>
    tpu.vector_store %arg14[%c0_247, %c0_248], %507 {strides = array<i32>} : memref<96x128xbf16, #tpu.memory_space<vmem>>, vector<16x128xbf16>,
    %c16_249 = arith.constant 16 : index
    %c124_250 = arith.constant 124 : index
    %509 = vector.load %arg13[%c16_249, %c124_250] : memref<32x256xbf16, #tpu.memory_space<vmem>>, vector<16x128xbf16>
    %c48_251 = arith.constant 48 : index
    %c0_252 = arith.constant 0 : index
    %510 = vector.load %arg14[%c48_251, %c0_252] : memref<96x128xbf16, #tpu.memory_space<vmem>>, vector<16x128xbf16>
    tpu.vector_store %arg14[%c48_251, %c0_252], %509 {strides = array<i32>} : memref<96x128xbf16, #tpu.memory_space<vmem>>, vector<16x128xbf16>,
    %c0_253 = arith.constant 0 : index
    %c126_254 = arith.constant 126 : index
    %511 = vector.load %arg13[%c0_253, %c126_254] : memref<32x256xbf16, #tpu.memory_space<vmem>>, vector<16x128xbf16>
    %c16_255 = arith.constant 16 : index
    %c0_256 = arith.constant 0 : index
    %512 = vector.load %arg14[%c16_255, %c0_256] : memref<96x128xbf16, #tpu.memory_space<vmem>>, vector<16x128xbf16>
    tpu.vector_store %arg14[%c16_255, %c0_256], %511 {strides = array<i32>} : memref<96x128xbf16, #tpu.memory_space<vmem>>, vector<16x128xbf16>,
    %c16_257 = arith.constant 16 : index
    %c126_258 = arith.constant 126 : index
    %513 = vector.load %arg13[%c16_257, %c126_258] : memref<32x256xbf16, #tpu.memory_space<vmem>>, vector<16x128xbf16>
    %c64_259 = arith.constant 64 : index
    %c0_260 = arith.constant 0 : index
    %514 = vector.load %arg14[%c64_259, %c0_260] : memref<96x128xbf16, #tpu.memory_space<vmem>>, vector<16x128xbf16>
    tpu.vector_store %arg14[%c64_259, %c0_260], %513 {strides = array<i32>} : memref<96x128xbf16, #tpu.memory_space<vmem>>, vector<16x128xbf16>,
    %c0_261 = arith.constant 0 : index
    %c128_262 = arith.constant 128 : index
    %515 = vector.load %arg13[%c0_261, %c128_262] : memref<32x256xbf16, #tpu.memory_space<vmem>>, vector<16x128xbf16>
    %c32_263 = arith.constant 32 : index
    %c0_264 = arith.constant 0 : index
    %516 = vector.load %arg14[%c32_263, %c0_264] : memref<96x128xbf16, #tpu.memory_space<vmem>>, vector<16x128xbf16>
    tpu.vector_store %arg14[%c32_263, %c0_264], %515 {strides = array<i32>} : memref<96x128xbf16, #tpu.memory_space<vmem>>, vector<16x128xbf16>,
    %c16_265 = arith.constant 16 : index
    %c128_266 = arith.constant 128 : index
    %517 = vector.load %arg13[%c16_265, %c128_266] : memref<32x256xbf16, #tpu.memory_space<vmem>>, vector<16x128xbf16>
    %c80_267 = arith.constant 80 : index
    %c0_268 = arith.constant 0 : index
    %518 = vector.load %arg14[%c80_267, %c0_268] : memref<96x128xbf16, #tpu.memory_space<vmem>>, vector<16x128xbf16>
    tpu.vector_store %arg14[%c80_267, %c0_268], %517 {strides = array<i32>} : memref<96x128xbf16, #tpu.memory_space<vmem>>, vector<16x128xbf16>,
    %c3_269 = arith.constant 3 : index
    %c0_270 = arith.constant 0 : index
    %c0_271 = arith.constant 0 : index
    %519 = vector.load %arg7[%c3_269, %c0_270, %c0_271] : memref<4x32x96xbf16, #tpu.memory_space<vmem>>, vector<1x32x96xbf16>
    %520 = vector.shape_cast %519 : vector<1x32x96xbf16> to vector<32x96xbf16>
    %c0_272 = arith.constant 0 : index
    %c0_273 = arith.constant 0 : index
    %521 = vector.load %arg14[%c0_272, %c0_273] : memref<96x128xbf16, #tpu.memory_space<vmem>>, vector<96x128xbf16>
    %cst_274 = arith.constant dense<0.000000e+00> : vector<32x128xf32>
    %522 = tpu.matmul %520, %521, %cst_274 {dimension_numbers = #tpu.dot_dimension_numbers<[1], [0], [0], [1], [0, 0, 1, 1], [], []>} : vector<32x96xbf16>, vector<96x128xbf16>, vector<32x128xf32> -> vector<32x128xf32>
    %523 = vector.extract_strided_slice %522 {offsets = [0, 0], sizes = [16, 128], strides = [1, 1]} : vector<32x128xf32> to vector<16x128xf32>
    %524 = vector.extract_strided_slice %522 {offsets = [16, 0], sizes = [16, 128], strides = [1, 1]} : vector<32x128xf32> to vector<16x128xf32>
    %525 = arith.negf %524 : vector<16x128xf32>
    %526 = math.exp %525 : vector<16x128xf32>
    %cst_275 = arith.constant 1.000000e+00 : f32
    %527 = vector.broadcast %cst_275 : f32 to vector<16x128xf32>
    %528 = arith.addf %527, %526 : vector<16x128xf32>
    %529 = arith.divf %527, %528 : vector<16x128xf32>
    %530 = arith.mulf %523, %529 : vector<16x128xf32>
    %531 = vector.extract_strided_slice %435 {offsets = [0, 6], sizes = [16, 1], strides = [1, 1]} : vector<16x9xf32> to vector<16x1xf32>
    %532 = vector.extract_strided_slice %435 {offsets = [0, 7], sizes = [16, 1], strides = [1, 1]} : vector<16x9xf32> to vector<16x1xf32>
    %533 = vector.extract_strided_slice %435 {offsets = [0, 8], sizes = [16, 1], strides = [1, 1]} : vector<16x9xf32> to vector<16x1xf32>
    %cst_276 = arith.constant 0.000000e+00 : f32
    %534 = vector.broadcast %cst_276 : f32 to vector<16x128xf32>
    %535 = arith.cmpf oge, %530, %534 : vector<16x128xf32>
    %536 = vector.broadcast %531 : vector<16x1xf32> to vector<16x128xf32>
    %537 = arith.mulf %536, %530 : vector<16x128xf32>
    %538 = arith.select %535, %530, %537 : vector<16x128xi1>, vector<16x128xf32>
    %539 = vector.broadcast %4 : vector<1x128xf32> to vector<16x128xf32>
    %540 = arith.mulf %538, %539 : vector<16x128xf32>
    %cst_277 = arith.constant dense<0.000000e+00> : vector<16xf32>
    %541 = vector.multi_reduction <add>, %540, %cst_277 [1] : vector<16x128xf32> to vector<16xf32>
    %542 = vector.shape_cast %541 : vector<16xf32> to vector<16x1xf32>
    %543 = arith.mulf %540, %538 : vector<16x128xf32>
    %cst_278 = arith.constant dense<0.000000e+00> : vector<16xf32>
    %544 = vector.multi_reduction <add>, %543, %cst_278 [1] : vector<16x128xf32> to vector<16xf32>
    %545 = vector.shape_cast %544 : vector<16xf32> to vector<16x1xf32>
    %cst_279 = arith.constant 0.00999999977 : f32
    %546 = vector.broadcast %cst_279 : f32 to vector<16x1xf32>
    %547 = arith.mulf %542, %546 : vector<16x1xf32>
    %cst_280 = arith.constant 0.00999999977 : f32
    %548 = vector.broadcast %cst_280 : f32 to vector<16x1xf32>
    %549 = arith.mulf %545, %548 : vector<16x1xf32>
    %550 = arith.mulf %547, %547 : vector<16x1xf32>
    %551 = arith.subf %549, %550 : vector<16x1xf32>
    %cst_281 = arith.constant 9.99999974E-6 : f32
    %552 = vector.broadcast %cst_281 : f32 to vector<16x1xf32>
    %553 = arith.addf %551, %552 : vector<16x1xf32>
    %554 = math.rsqrt %553 : vector<16x1xf32>
    %555 = arith.mulf %532, %554 : vector<16x1xf32>
    %556 = arith.mulf %547, %555 : vector<16x1xf32>
    %557 = arith.subf %533, %556 : vector<16x1xf32>
    %558 = vector.broadcast %555 : vector<16x1xf32> to vector<16x128xf32>
    %559 = arith.mulf %538, %558 : vector<16x128xf32>
    %560 = vector.broadcast %557 : vector<16x1xf32> to vector<16x128xf32>
    %561 = arith.addf %559, %560 : vector<16x128xf32>
    %c3_282 = arith.constant 3 : index
    %c0_283 = arith.constant 0 : index
    %c0_284 = arith.constant 0 : index
    %562 = vector.load %arg8[%c3_282, %c0_283, %c0_284] : memref<4x16x16xbf16, #tpu.memory_space<vmem>>, vector<1x16x16xbf16>
    %563 = vector.shape_cast %562 : vector<1x16x16xbf16> to vector<16x16xbf16>
    %564 = arith.truncf %561 : vector<16x128xf32> to vector<16x128xbf16>
    %cst_285 = arith.constant dense<0.000000e+00> : vector<16x128xf32>
    %565 = tpu.matmul %563, %564, %cst_285 {dimension_numbers = #tpu.dot_dimension_numbers<[1], [0], [0], [1], [0, 0, 1, 1], [], []>} : vector<16x16xbf16>, vector<16x128xbf16>, vector<16x128xf32> -> vector<16x128xf32>
    %566 = arith.addf %565, %436 : vector<16x128xf32>
    %c0_286 = arith.constant 0 : index
    %c0_287 = arith.constant 0 : index
    %567 = vector.load %arg15[%c0_286, %c0_287] : memref<16x128xf32, #tpu.memory_space<vmem>>, vector<16x128xf32>
    tpu.vector_store %arg15[%c0_286, %c0_287], %566 {strides = array<i32>} : memref<16x128xf32, #tpu.memory_space<vmem>>, vector<16x128xf32>,
    %c0_288 = arith.constant 0 : index
    %c0_289 = arith.constant 0 : index
    %568 = vector.load %arg16[%c0_288, %c0_289] : memref<16x128xf32, #tpu.memory_space<vmem>>, vector<16x128xf32>
    %c0_290 = arith.constant 0 : index
    %c0_291 = arith.constant 0 : index
    %569 = vector.load %arg15[%c0_290, %c0_291] : memref<16x128xf32, #tpu.memory_space<vmem>>, vector<16x128xf32>
    %570 = arith.addf %568, %569 : vector<16x128xf32>
    %c0_292 = arith.constant 0 : index
    %c0_293 = arith.constant 0 : index
    %571 = vector.load %arg16[%c0_292, %c0_293] : memref<16x128xf32, #tpu.memory_space<vmem>>, vector<16x128xf32>
    tpu.vector_store %arg16[%c0_292, %c0_293], %570 {strides = array<i32>} : memref<16x128xf32, #tpu.memory_space<vmem>>, vector<16x128xf32>,
    %c0_294 = arith.constant 0 : index
    %c0_295 = arith.constant 0 : index
    %572 = vector.load %arg10[%c0_294, %c0_295] : memref<9x16xbf16, #tpu.memory_space<vmem>>, vector<9x16xbf16>
    %c0_296 = arith.constant 0 : index
    %c0_297 = arith.constant 0 : index
    %573 = vector.load %arg16[%c0_296, %c0_297] : memref<16x128xf32, #tpu.memory_space<vmem>>, vector<16x128xf32>
    %574 = arith.truncf %573 : vector<16x128xf32> to vector<16x128xbf16>
    %cst_298 = arith.constant dense<0.000000e+00> : vector<9x128xf32>
    %575 = tpu.matmul %572, %574, %cst_298 {dimension_numbers = #tpu.dot_dimension_numbers<[1], [0], [0], [1], [0, 0, 1, 1], [], []>} : vector<9x16xbf16>, vector<16x128xbf16>, vector<9x128xf32> -> vector<9x128xf32>
    %c0_299 = arith.constant 0 : index
    %c0_300 = arith.constant 0 : index
    %576 = vector.load %arg11[%c0_299, %c0_300] : memref<9x1xf32, #tpu.memory_space<vmem>>, vector<9x1xf32>
    %577 = vector.broadcast %576 : vector<9x1xf32> to vector<9x128xf32>
    %578 = arith.addf %575, %577 : vector<9x128xf32>
    %579 = arith.negf %578 : vector<9x128xf32>
    %580 = math.exp %579 : vector<9x128xf32>
    %cst_301 = arith.constant 1.000000e+00 : f32
    %581 = vector.broadcast %cst_301 : f32 to vector<9x128xf32>
    %582 = arith.addf %581, %580 : vector<9x128xf32>
    %583 = arith.divf %581, %582 : vector<9x128xf32>
    %584 = vector.extract_strided_slice %583 {offsets = [0, 0], sizes = [9, 100], strides = [1, 1]} : vector<9x128xf32> to vector<9x100xf32>
    %c0_302 = arith.constant 0 : index
    %c0_303 = arith.constant 0 : index
    %c0_304 = arith.constant 0 : index
    %585 = vector.load %arg12[%c0_302, %c0_303, %c0_304] : memref<1x9x100xf32, #tpu.memory_space<vmem>>, vector<1x9x100xf32>
    %586 = vector.shape_cast %585 : vector<1x9x100xf32> to vector<9x100xf32>
    %587 = vector.shape_cast %584 : vector<9x100xf32> to vector<1x9x100xf32>
    tpu.vector_store %arg12[%c0_302, %c0_303, %c0_304], %587 {strides = array<i32>} : memref<1x9x100xf32, #tpu.memory_space<vmem>>, vector<1x9x100xf32>,
    return
  }
  func.func @transform_0(%arg0: i32) -> (i32, i32, i32) {
    %c0_i32 = arith.constant 0 : i32
    %c0_i32_0 = arith.constant 0 : i32
    %c0_i32_1 = arith.constant 0 : i32
    return %arg0, %c0_i32, %c0_i32_0 : i32, i32, i32
  }
  func.func @transform_1(%arg0: i32) -> (i32, i32, i32) {
    %c0_i32 = arith.constant 0 : i32
    %c0_i32_0 = arith.constant 0 : i32
    %c0_i32_1 = arith.constant 0 : i32
    return %arg0, %c0_i32, %c0_i32_0 : i32, i32, i32
  }
  func.func @transform_2(%arg0: i32) -> (i32, i32) {
    %c0_i32 = arith.constant 0 : i32
    %c0_i32_0 = arith.constant 0 : i32
    %c0_i32_1 = arith.constant 0 : i32
    return %c0_i32, %c0_i32_0 : i32, i32
  }
  func.func @transform_3(%arg0: i32) -> (i32, i32) {
    %c0_i32 = arith.constant 0 : i32
    %c0_i32_0 = arith.constant 0 : i32
    %c0_i32_1 = arith.constant 0 : i32
    return %c0_i32, %c0_i32_0 : i32, i32
  }
  func.func @transform_4(%arg0: i32) -> (i32, i32) {
    %c0_i32 = arith.constant 0 : i32
    %c0_i32_0 = arith.constant 0 : i32
    %c0_i32_1 = arith.constant 0 : i32
    return %c0_i32, %c0_i32_0 : i32, i32
  }
  func.func @transform_5(%arg0: i32) -> (i32, i32, i32) {
    %c0_i32 = arith.constant 0 : i32
    %c0_i32_0 = arith.constant 0 : i32
    %c0_i32_1 = arith.constant 0 : i32
    %c0_i32_2 = arith.constant 0 : i32
    return %c0_i32, %c0_i32_0, %c0_i32_1 : i32, i32, i32
  }
  func.func @transform_6(%arg0: i32) -> (i32, i32, i32) {
    %c0_i32 = arith.constant 0 : i32
    %c0_i32_0 = arith.constant 0 : i32
    %c0_i32_1 = arith.constant 0 : i32
    %c0_i32_2 = arith.constant 0 : i32
    return %c0_i32, %c0_i32_0, %c0_i32_1 : i32, i32, i32
  }
  func.func @transform_7(%arg0: i32) -> (i32, i32, i32) {
    %c0_i32 = arith.constant 0 : i32
    %c0_i32_0 = arith.constant 0 : i32
    %c0_i32_1 = arith.constant 0 : i32
    %c0_i32_2 = arith.constant 0 : i32
    return %c0_i32, %c0_i32_0, %c0_i32_1 : i32, i32, i32
  }
  func.func @transform_8(%arg0: i32) -> (i32, i32, i32) {
    %c0_i32 = arith.constant 0 : i32
    %c0_i32_0 = arith.constant 0 : i32
    %c0_i32_1 = arith.constant 0 : i32
    %c0_i32_2 = arith.constant 0 : i32
    return %c0_i32, %c0_i32_0, %c0_i32_1 : i32, i32, i32
  }
  func.func @transform_9(%arg0: i32) -> (i32, i32) {
    %c0_i32 = arith.constant 0 : i32
    %c0_i32_0 = arith.constant 0 : i32
    %c0_i32_1 = arith.constant 0 : i32
    return %c0_i32, %c0_i32_0 : i32, i32
  }
  func.func @transform_10(%arg0: i32) -> (i32, i32) {
    %c0_i32 = arith.constant 0 : i32
    %c0_i32_0 = arith.constant 0 : i32
    %c0_i32_1 = arith.constant 0 : i32
    return %c0_i32, %c0_i32_0 : i32, i32
  }
  func.func @transform_11(%arg0: i32) -> (i32, i32, i32) {
    %c0_i32 = arith.constant 0 : i32
    %c0_i32_0 = arith.constant 0 : i32
    %c0_i32_1 = arith.constant 0 : i32
    return %arg0, %c0_i32, %c0_i32_0 : i32, i32, i32
  }
}

</mosaic_0001>

<bundles_post_ra>
// kernel: tpu_custom_call.1
= control target key start
LH: loop header
LB: loop body
LE: loop exit
PB: predicated region body
PF: predicated region fallthrough
CT: control target
= control target key end

     0   :  { %16 = vsyncpa [#allocation7], 0  ;;  %s4420_s0 = inlined_call_operand.vmem [shape: f32[2,16,100], index: 0, kind: input, shape index: {}]   ;;  %s4421_s1 = inlined_call_operand.vmem [shape: f32[2,9,100], index: 1, kind: input, shape index: {}]   ;;  %s4422_s2 = inlined_call_operand.hbm [shape: bf16[16,16], index: 2, kind: input, shape index: {}]   ;;  %s4423_s3 = inlined_call_operand.hbm [shape: bf16[16,9], index: 3, kind: input, shape index: {}]   ;;  %s4424_s4 = inlined_call_operand.vmem [shape: f32[16,1], index: 4, kind: input, shape index: {}]   ;;  %s4425_s5 = inlined_call_operand.vmem [shape: bf16[4,16,16], index: 5, kind: input, shape index: {}]   ;;  %s4426_s6 = inlined_call_operand.vmem [shape: bf16[4,32,96], index: 6, kind: input, shape index: {}]   ;;  %s4427_s7 = inlined_call_operand.hbm [shape: bf16[4,16,16], index: 7, kind: input, shape index: {}]   ;;  %s4428_s8 = inlined_call_operand.vmem [shape: f32[4,16,9], index: 8, kind: input, shape index: {}]   ;;  %s4429_s9 = inlined_call_operand.vmem [shape: bf16[9,16], index: 9, kind: input, shape index: {}]   ;;  %s4430_s10 = inlined_call_operand.vmem [shape: f32[9,1], index: 10, kind: input, shape index: {}]   ;;  %s4431_s11 = inlined_call_operand.vmem [shape: f32[2,9,100], index: 11, kind: output, shape index: {}]  }
   0x1   :  { %17 = vsyncpa [#allocation9], 0  ;;  %s3815_s17 = smov 0  }
   0x2 LB: > { %s3821_s18 = sadd.s32 4294967295, %s3733_s17   ;;  %p3059_p0 = scmp.ge.s32.totalorder %s3733_s17, 1  ;;  %s3733_s17 = sphi %s3815_s17, %s23_s17  }
   0x3   : > { %p295_p1 = scmp.lt.s32.totalorder %s3733_s17, 3  ;;  %p3414_p2 = scmp.eq.s32.totalorder %s3821_s18, 0 }
   0x4   : > { %s3735_s20 = smov [#allocation8]   ;;  %s3736_s22 = smov [#allocation6]  }
   0x5   : > { %p3826_p3 = pnand %p3059_p0, %p295_p1  ;;  %s320_s21 = sshll.u32 %s3735_s20, 4  ;;  %s321_s21 = int_to_ptr.vmem [resolvable:$true] %s320_s21 }
   0x6   : > { %s307_s23 = sshll.u32 %s3736_s22, 4  ;;  %s3737_s25 = smov [#allocation10]   ;;  %s308_s23 = int_to_ptr.vmem [resolvable:$true] %s307_s23 }
   0x7   : > { %p3404_p4 = pneg %p3826_p3  ;;  %s342_s26 = sshll.u32 %s3737_s25, 4  ;;  %s3838_s26 = int_to_ptr.vmem [resolvable:$true] %s342_s26 }
   0x8   : > { %s3652_s27 = scalar_lea.vmem %s321_s21, 128  ;;  %p3660_p10 = scmp.lt.s32.totalorder %s321_s21, %s321_s21 }
   0x9   : > { %p3834_p5 = pnand %p3414_p2, %p3404_p4  ;;  %p3653_p7 = scmp.ne.s32.totalorder %s321_s21, %s3652_s27 }
   0xa   : > { %p3661_p11 = scmp.lt.s32.totalorder %s3652_s27, %s3652_s27 }
   0xb   : > { %p3643_p6 = pneg %p3834_p5 }
   0xc   : > { %p3662_p12 = por %p3661_p11, %p3660_p10 }
   0xd   : > { %p3655_p8 = pnand %p3653_p7, %p3643_p6 }
   0xf   : > { %p3656_p9 = pneg %p3655_p8 }
  0x11   : > { %p3663_p13 = pnand %p3662_p12, %p3656_p9 }
  0x13   : > { %3666 = shalt.err (!%p3663_p13)
}
  0x14   : > { %s3738_s28 = smov 64   ;;  %s3739_s29 = smov 4  }
  0x15   : > { %3410 = dma.hbm_to_vmem [thread:$0]  (!%p3834_p5), %s4423_s3, 128, %s321_s21, [#allocation9], %s3738_s28, %s3738_s28, %s3739_s29  }
  0x16   : > { %s3678_s13 = scalar_lea.vmem %s308_s23, 128  ;;  %p3686_p7 = scmp.lt.s32.totalorder %s308_s23, %s308_s23 }
  0x17   : > { %p3679_p0 = scmp.ne.s32.totalorder %s308_s23, %s3678_s13  ;;  %p3687_p8 = scmp.lt.s32.totalorder %s3678_s13, %s3678_s13 }
  0x19   : > { %p3681_p1 = pnand %p3679_p0, %p3643_p6  ;;  %p3688_p10 = por %p3687_p8, %p3686_p7 }
  0x1b   : > { %p3682_p4 = pneg %p3681_p1 }
  0x1d   : > { %p3689_p9 = pnand %p3688_p10, %p3682_p4 }
  0x1f   : > { %3692 = shalt.err (!%p3689_p9)
}
  0x20   : > { %3407 = dma.hbm_to_vmem [thread:$0]  (!%p3834_p5), %s4422_s2, 128, %s308_s23, [#allocation7], %s3738_s28, %s3738_s28, %s3739_s29  }
  0x21   : > { %s3704_s16 = scalar_lea.vmem %s3838_s26, 512  ;;  %p3712_p0 = scmp.lt.s32.totalorder %s3838_s26, %s3838_s26 }
  0x22   : > { %p3705_p11 = scmp.ne.s32.totalorder %s3838_s26, %s3704_s16  ;;  %p3713_p1 = scmp.lt.s32.totalorder %s3704_s16, %s3704_s16 }
  0x24   : > { %p3707_p12 = pnand %p3705_p11, %p3643_p6  ;;  %p3714_p4 = por %p3713_p1, %p3712_p0 }
  0x26   : > { %p3708_p13 = pneg %p3707_p12 }
  0x28   : > { %p3715_p7 = pnand %p3714_p4, %p3708_p13 }
  0x2a   : > { %3718 = shalt.err (!%p3715_p7)
}
  0x2b   : > { %3413 = dma.hbm_to_vmem [thread:$0]  (!%p3834_p5), %s4427_s7, 512, %s3838_s26, [#allocation9], %s3738_s28, %s3738_s28, %s3739_s29  }
  0x2c   : > { %383 = sbr.rel (%p3826_p3) target bundleno = 6992 (0x1b50), region = 64 }
  0x31   : > { %3724 = dma.done.wait (%p3414_p2), [#allocation7], 128  }
  0x32   : > { %3726 = vsyncadd (%p3414_p2), [#allocation7], 4294967168 }
  0x33   : > { %3728 = dma.done.wait (%p3414_p2), [#allocation9], 640  }
  0x34   : > { %3730 = vsyncadd (%p3414_p2), [#allocation9], 4294966656  ;;  %p436_p6 = scmp.lt.s32.totalorder %s3821_s18, 1  ;;  %v3740_v0 = vmov 0.0   ;;  %vm3741_vm0 = vmmov 0   ;;  %vm483_vm1 = vcmask 1043456   ;;  %v452_v37 = vlaneseq }
  0x35   : > { %3268 = vmatprep.subr.bf16.mxu1 %v3740_v0  ;;  %3262 = vmatprep.subr.bf16.mxu0 %v3740_v0  ;;  %v3742_v1 = vmov 0   ;;  %vm484_vm2 = vcmask 1044480   ;;  %v3743_v2 = vmov 65535   ;;  %vm460_vm3 = vcmask 818176   ;;  %v3510_v12 = vld [vmem:[#allocation6] sm:$0xff]   ;;  %v580_v13 = vld [vmem:[%s4424_s4] sm:$0xff] }
  0x36   : > { %s4435_s18 = smov (!%p436_p6, %s3821_s18), 1  ;;  %3270 = vmatprep.mubr.msk.bf16.mxu1 %vm3741_vm0, %v3740_v0  ;;  %3264 = vmatprep.mubr.msk.bf16.mxu0 %vm3741_vm0, %v3740_v0  ;;  %598 = vst [vmem:[#allocation2] sm:$0xf] %v3742_v1  ;;  %599 = vst [vmem:[#allocation2 + $0x8] sm:$0xf] %v3742_v1  ;;  %v485_v3 = vsel %vm483_vm1, 4294967295, %v3743_v2 }
  0x37   : > { %3448 = vset.pattern.permute.xlu0 %v3742_v1  ;;  %600 = vst [vmem:[#allocation2 + $0x10] sm:$0xf] %v3742_v1  ;;  %601 = vst [vmem:[#allocation2 + $0x18] sm:$0xf] %v3742_v1  ;;  %s3894_s19 = sshll.u32 %s4435_s18, 4  ;;  %v486_v10 = vsel %vm484_vm2, %v485_v3, 0 }
  0x38   : > { %s440_s24 = scalar_lea.vmem %s4420_s0, %s3894_s19  ;;  %s445_s27 = scalar_lea.vmem %s4421_s1, %s3894_s19  ;;  %vm535_vm4 = vcmask 130048   ;;  %vm479_vm5 = vcmask 72704   ;;  %v3511_v15 = vld [vmem:[#allocation8] sm:$0xff]   ;;  %584 = vperm.xlu0 %3448, %v580_v13   ;;  %v581_v16 = vld [vmem:[%s4424_s4 + $0x8] sm:$0xff]  ;;  %v3916_v18 = vld [vmem:[%s4428_s8] sm:$0xff]  ;;  %v3744_v19 = vmov 3  }
  0x39   : > { %v457_v4 = vld [vmem:[%s440_s24] sm:$0xff]  ;;  %v458_v5 = vld [vmem:[%s440_s24 + $0x8] sm:$0xff]  ;;  %3449 = vset.pattern.permute.xlu1 %v3744_v19  ;;  %v453_v39 = vand.u32 127, %v452_v37  ;;  %v3745_v2 = vmov 4   ;;  %s3746_s21 = smov 1   ;;  %s3750_s22 = smov 2  }
  0x3a   : > { %v465_v6 = vld [vmem:[%s445_s27] sm:$0xff]  ;;  %v459_v7 = vpack.c.bf16 %v458_v5, %v457_v4  ;;  %v466_v8 = vld [vmem:[%s445_s27 + $0x8] sm:$0x1]  ;;  %737 = vperm.xlu1 %3449, %v3916_v18   ;;  %vm966_vm9 = vcmask 785408   ;;  %vm873_vm10 = vcmask 7168   ;;  %vm840_vm11 = vcmask 15360   ;;  %s450_s15 = scalar_lea.vmem %s4431_s11, %s3894_s19 }
  0x3b   : > { %v467_v9 = vpack.c.bf16 %v466_v8, %v465_v6  ;;  %v3927_v20 = vld [vmem:[%s4428_s8 + $0x8] sm:$0xff]  ;;  %v3512_v36 = vld [vmem:[%s4425_s5] sm:$0xff]   ;;  %vm454_vm6 = vcmp.lt.s32.totalorder %v453_v39, 100  ;;  %s3754_s13 = smov 4   ;;  %vm1406_vm1 = vcmask 31744  }
  0x3c   : > { %v463_v11 = vsel %vm460_vm3, %v459_v7, 0  ;;  %589 = vperm.xlu0 %3448, %v581_v16   ;;  %v3946_v42 = vsel %vm454_vm6, 1.0, %v3740_v0 }
  0x3d   : > { %3269 = vmatpush3.bf16.msra.mxu1 %v463_v11  ;;  %v469_v14 = vsel %vm460_vm3, %v467_v9, 0 }
  0x3e   : > { %v487_v17 = vand.u32 %v486_v10, %v469_v14  ;;  %741 = vperm.xlu1 %3449, %v3927_v20  }
  0x40   : > { %3263 = vmatpush3.bf16.msra.mxu0 %v487_v17  ;;  %3271 = vmatmul.mubr.msk.bf16.vlgmr.msra.gmra.mxu1 %vm535_vm4, %v3510_v12 }
  0x41   : > { %3274 = vmatprep.subr.bf16.mxu0 %v3740_v0  ;;  %662 = vperm.xlu0 %3448, %v3916_v18  }
  0x42   : > { %3450 = vset.pattern.permute.xlu1 %v3742_v1 }
  0x43   : > { %3265 = vmatmul.mubr.msk.bf16.vlgmr.msra.gmra.mxu0 %vm479_vm5, %v3511_v15  ;;  %667 = vperm.xlu1 %3450, %v3927_v20  }
  0x44   : > { %3276 = vmatprep.mubr.msk.bf16.mxu0 %vm3741_vm0, %v3740_v0 }
  0x45   : > { %3451 = vset.pattern.permute.xlu0 %v3745_v2 }
  0x47   : > { %3452 = vset.pattern.permute.xlu1 %v3745_v2 }
  0xb3   : > { %v585_v23 = vpop.permute.xlu0 %584 }
  0xb5   : > { %v738_v38 = vpop.permute.xlu1 %737 }
  0xb7   : > { %v590_v31 = vpop.permute.xlu0 %589 }
  0xb9   : > { %v742_v40 = vpop.permute.xlu1 %741 }
  0xbc   : > { %v663_v46 = vpop.permute.xlu0 %662 }
  0xbe   : > { %v668_v51 = vpop.permute.xlu1 %667 }
 0x100   : > { %v573_v21 = vpop.f32.mrf.mxu1 }
 0x102   : > { %v3272_v22 = vpop.f32.mrf.mxu1 }
 0x103   : > { %v523_v24 = vpop.f32.mrf.mxu0 }
 0x104   : > { %v576_v25 = vpop.f32.mrf.mxu1  ;;  %v574_v27 = vadd.f32 %v573_v21, %v523_v24 }
 0x105   : > { %v3266_v26 = vpop.f32.mrf.mxu0 }
 0x106   : > { %v3273_v28 = vpop.f32.mrf.mxu1  ;;  %v3932_v33 = vadd.f32 %v585_v23, %v574_v27 }
 0x107   : > { %v526_v29 = vpop.f32.mrf.mxu0 }
 0x108   : > { %v577_v30 = vadd.f32 %v576_v25, %v526_v29 }
 0x109   : > { %v3267_v32 = vpop.f32.mrf.mxu0 }
 0x10a   : > { %v3934_v34 = vadd.f32 %v590_v31, %v577_v30 }
 0x10c   : > { %v608_v35 = vpack.c.bf16 %v3934_v34, %v3932_v33 }
 0x10e   : > { %3275 = vmatpush3.bf16.msra.mxu0 %v608_v35 }
 0x10f   : > { %3296 = vmatprep.subr.bf16.mxu0 %v3740_v0 }
 0x111   : > { %3277 = vmatmul.mubr.msk.bf16.vlgmr.msra.gmra.mxu0 %vm535_vm4, %v3512_v36 }
 0x112   : > { %3298 = vmatprep.mubr.msk.bf16.mxu0 %vm3741_vm0, %v3740_v0 }
 0x1d1   : > { %v651_v41 = vpop.f32.mrf.mxu0 }
 0x1d2   : > { %vm658_vm7 = vcmp.ge.f32.partialorder %v651_v41, 0.0  ;;  %v744_v43 = vmul.f32 %v738_v38, %v651_v41  ;;  %v670_v50 = vmul.f32 %v663_v46, %v651_v41 }
 0x1d3   : > { %v3278_v44 = vpop.f32.mrf.mxu0 }
 0x1d4   : > { %v3949_v45 = vsel %vm658_vm7, %v651_v41, %v744_v43  ;;  %v3959_v56 = vsel %vm658_vm7, %v651_v41, %v670_v50  ;;  %v3747_v50 = vmov 5  }
 0x1d5   : > { %v654_v47 = vpop.f32.mrf.mxu0  ;;  %v748_v48 = vmul.f32 %v3946_v42, %v3949_v45  ;;  %v674_v58 = vmul.f32 %v3946_v42, %v3959_v56 }
 0x1d6   : > { %vm659_vm8 = vcmp.ge.f32.partialorder %v654_v47, 0.0  ;;  %v745_v49 = vmul.f32 %v742_v40, %v654_v47  ;;  %v671_v57 = vmul.f32 %v668_v51, %v654_v47 }
 0x1d7   : > { %750 = vadd.xlane.f32.xlu0 %v748_v48  ;;  %v3279_v52 = vpop.f32.mrf.mxu0  ;;  %v754_v54 = vmul.f32 %v748_v48, %v3949_v45  ;;  %v680_v61 = vmul.f32 %v674_v58, %v3959_v56 }
 0x1d8   : > { %v3953_v53 = vsel %vm659_vm8, %v654_v47, %v745_v49  ;;  %v3964_v60 = vsel %vm659_vm8, %v654_v47, %v671_v57  ;;  %v3748_v57 = vmov 1  }
 0x1d9   : > { %v749_v55 = vmul.f32 %v3946_v42, %v3953_v53  ;;  %v675_v62 = vmul.f32 %v3946_v42, %v3964_v60 }
 0x1db   : > { %756 = vadd.xlane.f32.xlu0 %v754_v54  ;;  %752 = vadd.xlane.f32.xlu1 %v749_v55  ;;  %v755_v59 = vmul.f32 %v749_v55, %v3953_v53  ;;  %v681_v63 = vmul.f32 %v675_v62, %v3964_v60 }
 0x1df   : > { %676 = vadd.xlane.f32.xlu1 %v674_v58  ;;  %758 = vadd.xlane.f32.xlu0 %v755_v59 }
 0x1e3   : > { %682 = vadd.xlane.f32.xlu1 %v680_v61  ;;  %678 = vadd.xlane.f32.xlu0 %v675_v62  ;;  %v3749_v61 = vmov 2  }
 0x1e7   : > { %684 = vadd.xlane.f32.xlu0 %v681_v63 }
 0x260   : > { %v751_v3 = vpop.xlane.xlu0 %750 }
 0x261   : > { %v760_v4 = vmul.f32 0.01, %v751_v3 }
 0x263   : > { %v764_v7 = vmul.f32 %v760_v4, %v760_v4 }
 0x264   : > { %v757_v5 = vpop.xlane.xlu0 %756  ;;  %v753_v6 = vpop.xlane.xlu1 %752 }
 0x265   : > { %v762_v8 = vmul.f32 0.01, %v757_v5  ;;  %v761_v9 = vmul.f32 0.01, %v753_v6 }
 0x267   : > { %v766_v10 = vsub.f32 %v762_v8, %v764_v7  ;;  %v765_v14 = vmul.f32 %v761_v9, %v761_v9 }
 0x268   : > { %v677_v11 = vpop.xlane.xlu1 %676  ;;  %v759_v12 = vpop.xlane.xlu0 %758 }
 0x269   : > { %v768_v13 = vadd.f32 1e-05, %v766_v10  ;;  %v686_v15 = vmul.f32 0.01, %v677_v11  ;;  %v763_v16 = vmul.f32 0.01, %v759_v12 }
 0x26b   : > { %3553 = vrsqrt.f32 %v768_v13  ;;  %v767_v17 = vsub.f32 %v763_v16, %v765_v14  ;;  %v690_v23 = vmul.f32 %v686_v15, %v686_v15 }
 0x26c   : > { %v683_v21 = vpop.xlane.xlu1 %682  ;;  %v679_v22 = vpop.xlane.xlu0 %678 }
 0x26d   : > { %v769_v24 = vadd.f32 1e-05, %v767_v17  ;;  %v688_v25 = vmul.f32 0.01, %v683_v21  ;;  %v687_v26 = vmul.f32 0.01, %v679_v22 }
 0x26f   : > { %3555 = vrsqrt.f32 %v769_v24  ;;  %v692_v27 = vsub.f32 %v688_v25, %v690_v23  ;;  %v691_v30 = vmul.f32 %v687_v26, %v687_v26 }
 0x270   : > { %v685_v28 = vpop.xlane.xlu0 %684 }
 0x271   : > { %v694_v29 = vadd.f32 1e-05, %v692_v27  ;;  %v689_v31 = vmul.f32 0.01, %v685_v28 }
 0x273   : > { %3557 = vrsqrt.f32 %v694_v29  ;;  %v693_v32 = vsub.f32 %v689_v31, %v691_v30  ;;  %v3519_v31 = vld [vmem:[%s4426_s6] sm:$0xff]  }
 0x274   : > { %3292 = vmatprep.mubr.msk.bf16.mxu1 %vm966_vm9, %v3519_v31 }
 0x275   : > { %v695_v35 = vadd.f32 1e-05, %v693_v32  ;;  %v3751_v32 = vmov 6  }
 0x277   : > { %3559 = vrsqrt.f32 %v695_v35 }
 0x278   : > { %v3554_v36 = vpop.eup %3553 }
 0x279   : > { %v772_v37 = vmul.f32 %v3554_v36, %v3916_v18 }
 0x27b   : > { %v774_v38 = vmul.f32 %v772_v37, %v760_v4 }
 0x27c   : > { %v3556_v39 = vpop.eup %3555 }
 0x27d   : > { %778 = vrot.lane.b32.xlu1 %v774_v38, %s3746_s21  ;;  %v773_v40 = vmul.f32 %v3556_v39, %v3927_v20 }
 0x27f   : > { %v775_v41 = vmul.f32 %v773_v40, %v761_v9 }
 0x280   : > { %v3558_v43 = vpop.eup %3557 }
 0x281   : > { %780 = vrot.lane.b32.xlu0 %v775_v41, %s3746_s21  ;;  %v698_v44 = vmul.f32 %v3558_v43, %v3916_v18 }
 0x283   : > { %v700_v46 = vmul.f32 %v698_v44, %v686_v15 }
 0x284   : > { %v3560_v47 = vpop.eup %3559 }
 0x285   : > { %704 = vrot.lane.b32.xlu1 %v700_v46, %s3746_s21  ;;  %788 = vperm.xlu0 %3451, %v772_v37   ;;  %v699_v48 = vmul.f32 %v3560_v47, %v3927_v20 }
 0x287   : > { %v701_v49 = vmul.f32 %v699_v48, %v687_v26 }
 0x289   : > { %706 = vrot.lane.b32.xlu1 %v701_v49, %s3746_s21  ;;  %3454 = vset.pattern.permute.xlu0 %v3747_v50 }
 0x28d   : > { %793 = vperm.xlu1 %3452, %v773_v40  }
 0x291   : > { %3453 = vset.pattern.permute.xlu1 %v3747_v50 }
 0x2ef   : > { %v779_v51 = vpop.permute.xlu1 %778 }
 0x2f0   : > { %v784_v52 = vsub.f32 %v3916_v18, %v779_v51 }
 0x2f2   : > { %800 = vperm.xlu1 %3453, %v784_v52  }
 0x2f3   : > { %v781_v54 = vpop.permute.xlu0 %780 }
 0x2f4   : > { %v785_v55 = vsub.f32 %v3927_v20, %v781_v54 }
 0x2f6   : > { %3455 = vset.pattern.permute.xlu1 %v3748_v57  ;;  %805 = vperm.xlu0 %3454, %v785_v55  }
 0x2f7   : > { %v705_v58 = vpop.permute.xlu1 %704  ;;  %714 = vperm.xlu1 %3455, %v698_v44  }
 0x2f8   : > { %v710_v59 = vsub.f32 %v3916_v18, %v705_v58 }
 0x2fa   : > { %3456 = vset.pattern.permute.xlu0 %v3749_v61 }
 0x2fb   : > { %719 = vperm.xlu1 %3455, %v699_v48   ;;  %v707_v62 = vpop.permute.xlu1 %706  ;;  %726 = vperm.xlu0 %3456, %v710_v59  }
 0x2fc   : > { %v711_v63 = vsub.f32 %v3927_v20, %v707_v62 }
 0x2ff   : > { %3457 = vset.pattern.permute.xlu1 %v3749_v61  ;;  %3459 = vset.pattern.permute.xlu0 %v3751_v32 }
 0x300   : > { %731 = vperm.xlu1 %3457, %v711_v63   ;;  %v789_v3 = vpop.permute.xlu0 %788 }
 0x301   : > { %v796_v5 = vmul.f32 %v789_v3, %v3949_v45 }
 0x304   : > { %3458 = vset.pattern.permute.xlu1 %v3751_v32 }
 0x308   : > { %v794_v4 = vpop.permute.xlu1 %793 }
 0x309   : > { %v797_v8 = vmul.f32 %v794_v4, %v3953_v53 }
 0x36d   : > { %v801_v6 = vpop.permute.xlu1 %800 }
 0x36e   : > { %v808_v7 = vadd.f32 %v801_v6, %v796_v5 }
 0x370   : > { %v3194_v9 = vpack.c.bf16 %v808_v7, %v808_v7 }
 0x371   : > { %v806_v10 = vpop.permute.xlu0 %805 }
 0x372   : > { %828 = vst [vmem:[#allocation2 + $0x14] sm:$0xf] %v3194_v9  ;;  %v809_v11 = vadd.f32 %v806_v10, %v797_v8  ;;  %v715_v12 = vpop.permute.xlu1 %714 }
 0x373   : > { %v722_v14 = vmul.f32 %v715_v12, %v3959_v56 }
 0x374   : > { %v3195_v13 = vpack.c.bf16 %v809_v11, %v809_v11  ;;  %v3520_v11 = vld [vmem:[%s4426_s6 + $0x8] sm:$0xff]  }
 0x376   : > { %829 = vst [vmem:[#allocation2 + $0x1c] sm:$0xf] %v3195_v13  ;;  %v720_v15 = vpop.permute.xlu1 %719  ;;  %v727_v16 = vpop.permute.xlu0 %726 }
 0x377   : > { %v734_v17 = vadd.f32 %v727_v16, %v722_v14  ;;  %v723_v45 = vmul.f32 %v720_v15, %v3964_v60 }
 0x379   : > { %v900_v21 = vld [vmem:[#allocation2 + $0x14] sm:$0xf]  ;;  %v3192_v22 = vpack.c.bf16 %v734_v17, %v734_v17 }
 0x37a   : > { %v880_v23 = vld [vmem:[#allocation2 + $0x10] sm:$0xff]  ;;  %902 = vst [vmem:[#allocation3 + $0x28] sm:$0xf] %v900_v21 }
 0x37b   : > { %884 = vrot.lane.b32.xlu1 %v880_v23, %s3746_s21  ;;  %818 = vst [vmem:[#allocation2 + $0x4] sm:$0xf] %v3192_v22  ;;  %v732_v53 = vpop.permute.xlu1 %731 }
 0x37c   : > { %v735_v24 = vadd.f32 %v732_v53, %v723_v45 }
 0x37d   : > { %v901_v25 = vld [vmem:[#allocation2 + $0x1c] sm:$0xf] }
 0x37e   : > { %v881_v26 = vld [vmem:[#allocation2 + $0x18] sm:$0xff]  ;;  %903 = vst [vmem:[#allocation3 + $0x2c] sm:$0xf] %v901_v25  ;;  %v3193_v27 = vpack.c.bf16 %v735_v24, %v735_v24 }
 0x37f   : > { %851 = vrot.lane.b32.xlu1 %v880_v23, %s3750_s22  ;;  %886 = vrot.lane.b32.xlu0 %v881_v26, %s3746_s21 }
 0x380   : > { %819 = vst [vmem:[#allocation2 + $0xc] sm:$0xf] %v3193_v27 }
 0x382   : > { %v896_v56 = vld [vmem:[#allocation2 + $0x4] sm:$0xf] }
 0x383   : > { %853 = vrot.lane.b32.xlu0 %v881_v26, %s3750_s22  ;;  %v863_v28 = vld [vmem:[#allocation2] sm:$0xff]  ;;  %898 = vst [vmem:[#allocation3 + $0x10] sm:$0xf] %v896_v56 }
 0x384   : > { %867 = vrot.lane.b32.xlu1 %v863_v28, %s3746_s21 }
 0x385   : > { %v3513_v60 = vld [vmem:[#allocation3 + $0x28] sm:$0xff]  }
 0x386   : > { %3280 = vmatprep.subr.bf16.mxu1 %v3513_v60 }
 0x387   : > { %v897_v29 = vld [vmem:[#allocation2 + $0xc] sm:$0xf]  ;;  %3281 = vmatpush3.bf16.msra.mxu1 %v3513_v60 }
 0x388   : > { %834 = vrot.lane.b32.xlu1 %v863_v28, %s3750_s22  ;;  %v864_v30 = vld [vmem:[#allocation2 + $0x8] sm:$0xff]  ;;  %899 = vst [vmem:[#allocation3 + $0x14] sm:$0xf] %v897_v29 }
 0x389   : > { %869 = vrot.lane.b32.xlu0 %v864_v30, %s3746_s21 }
 0x38c   : > { %1039 = vperm.xlu1 %3458, %v3916_v18  }
 0x38d   : > { %836 = vrot.lane.b32.xlu0 %v864_v30, %s3750_s22 }
 0x38f   : > { %v3516_v8 = vld [vmem:[#allocation3 + $0x10] sm:$0xff]  }
 0x391   : > { %1043 = vperm.xlu0 %3459, %v3927_v20  }
 0x3ed   : > { %v885_v35 = vpop.permute.xlu1 %884 }
 0x3ee   : > { %v888_v36 = vrot.slane %v885_v35, 4 }
 0x3f0   : > { %v890_v37 = vsel %vm873_vm10, %v885_v35, %v888_v36 }
 0x3f1   : > { %894 = vst [vmem:[#allocation3 + $0x20] sm:$0xf] %v890_v37  ;;  %v852_v38 = vpop.permute.xlu1 %851  ;;  %v887_v39 = vpop.permute.xlu0 %886 }
 0x3f2   : > { %v855_v40 = vrot.slane %v852_v38, 4  ;;  %v889_v41 = vrot.slane %v887_v39, 4 }
 0x3f4   : > { %v857_v43 = vsel %vm840_vm11, %v852_v38, %v855_v40  ;;  %v891_v44 = vsel %vm873_vm10, %v887_v39, %v889_v41  ;;  %v3752_v38 = vmov 7  }
 0x3f5   : > { %861 = vst [vmem:[#allocation3 + $0x18] sm:$0xf] %v857_v43  ;;  %895 = vst [vmem:[#allocation3 + $0x24] sm:$0xf] %v891_v44  ;;  %v854_v46 = vpop.permute.xlu0 %853  ;;  %3460 = vset.pattern.permute.xlu1 %v3752_v38 }
 0x3f6   : > { %v856_v47 = vrot.slane %v854_v46, 4  ;;  %v868_v48 = vpop.permute.xlu1 %867 }
 0x3f7   : > { %v871_v49 = vrot.slane %v868_v48, 4 }
 0x3f8   : > { %v858_v51 = vsel %vm840_vm11, %v854_v46, %v856_v47 }
 0x3f9   : > { %862 = vst [vmem:[#allocation3 + $0x1c] sm:$0xf] %v858_v51  ;;  %v874_v52 = vsel %vm873_vm10, %v868_v48, %v871_v49 }
 0x3fa   : > { %878 = vst [vmem:[#allocation3 + $0x8] sm:$0xf] %v874_v52  ;;  %v835_v54 = vpop.permute.xlu1 %834 }
 0x3fb   : > { %v838_v55 = vrot.slane %v835_v54, 4  ;;  %v870_v58 = vpop.permute.xlu0 %869 }
 0x3fc   : > { %v872_v59 = vrot.slane %v870_v58, 4  ;;  %v3514_v62 = vld [vmem:[#allocation3 + $0x20] sm:$0xff]  }
 0x3fd   : > { %v841_v63 = vsel %vm840_vm11, %v835_v54, %v838_v55  ;;  %3282 = vmatprep.subr.bf16.mxu1 %v3514_v62 }
 0x3fe   : > { %845 = vst [vmem:[#allocation3] sm:$0xf] %v841_v63  ;;  %v875_v3 = vsel %vm873_vm10, %v870_v58, %v872_v59  ;;  %3283 = vmatpush3.bf16.msra.mxu1 %v3514_v62  ;;  %v3753_v59 = vmov 8  }
 0x3ff   : > { %879 = vst [vmem:[#allocation3 + $0xc] sm:$0xf] %v875_v3  ;;  %v837_v4 = vpop.permute.xlu0 %836  ;;  %3461 = vset.pattern.permute.xlu0 %v3753_v59 }
 0x400   : > { %v839_v5 = vrot.slane %v837_v4, 4  ;;  %v3515_v6 = vld [vmem:[#allocation3 + $0x18] sm:$0xff]  }
 0x401   : > { %3284 = vmatprep.subr.bf16.mxu1 %v3515_v6 }
 0x402   : > { %v842_v7 = vsel %vm840_vm11, %v837_v4, %v839_v5  ;;  %3285 = vmatpush3.bf16.msra.mxu1 %v3515_v6 }
 0x403   : > { %846 = vst [vmem:[#allocation3 + $0x4] sm:$0xf] %v842_v7  ;;  %3286 = vmatprep.subr.bf16.mxu1 %v3516_v8 }
 0x406   : > { %v3517_v9 = vld [vmem:[#allocation3 + $0x8] sm:$0xff]   ;;  %3287 = vmatpush3.bf16.msra.mxu1 %v3516_v8 }
 0x407   : > { %3288 = vmatprep.subr.bf16.mxu1 %v3517_v9  ;;  %v1040_v53 = vpop.permute.xlu1 %1039 }
 0x40a   : > { %v3518_v10 = vld [vmem:[#allocation3] sm:$0xff]   ;;  %3289 = vmatpush3.bf16.msra.mxu1 %v3517_v9 }
 0x40b   : > { %3290 = vmatprep.subr.bf16.mxu1 %v3518_v10 }
 0x40c   : > { %v1044_v56 = vpop.permute.xlu0 %1043 }
 0x40e   : > { %3291 = vmatpush3.bf16.msra.mxu1 %v3518_v10 }
 0x40f   : > { %3324 = vmatprep.subr.bf16.mxu1 %v3740_v0 }
 0x411   : > { %3293 = vmatmul.mubr.msk.bf16.vlgmr.msra.gmra.mxu1 %vm966_vm9, %v3520_v11 }
 0x412   : > { %3326 = vmatprep.mubr.msk.bf16.mxu1 %vm3741_vm0, %v3740_v0 }
 0x4d1   : > { %v3294_v12 = vpop.f32.mrf.mxu1 }
 0x4d2   : > { %v3095_v13 = vmul.f32 -1.442695, %v3294_v12 }
 0x4d3   : > { %v1007_v14 = vpop.f32.mrf.mxu1 }
 0x4d4   : > { %3561 = vpow2.f32 %v3095_v13 }
 0x4d5   : > { %v3295_v15 = vpop.f32.mrf.mxu1 }
 0x4d6   : > { %v3096_v16 = vmul.f32 -1.442695, %v3295_v15 }
 0x4d7   : > { %v1010_v27 = vpop.f32.mrf.mxu1 }
 0x4d8   : > { %3563 = vpow2.f32 %v3096_v16 }
 0x4e1   : > { %v3562_v17 = vpop.eup %3561 }
 0x4e2   : > { %v1028_v21 = vadd.f32 1.0, %v3562_v17 }
 0x4e4   : > { %3565 = vrcp.f32 %v1028_v21 }
 0x4e5   : > { %v3564_v22 = vpop.eup %3563 }
 0x4e6   : > { %v1029_v23 = vadd.f32 1.0, %v3564_v22 }
 0x4e8   : > { %3567 = vrcp.f32 %v1029_v23  ;;  %v3521_v23 = vld [vmem:[#allocation10] sm:$0xff]  }
 0x4f1   : > { %v3566_v45 = vpop.eup %3565 }
 0x4f2   : > { %v1034_v24 = vmul.f32 %v3566_v45, %v1007_v14 }
 0x4f4   : > { %vm1036_vm12 = vcmp.ge.f32.partialorder %v1034_v24, 0.0  ;;  %v1046_v25 = vmul.f32 %v1040_v53, %v1034_v24 }
 0x4f5   : > { %v3568_v26 = vpop.eup %3567 }
 0x4f6   : > { %v1035_v28 = vmul.f32 %v3568_v26, %v1010_v27  ;;  %v1048_v60 = vsel %vm1036_vm12, %v1034_v24, %v1046_v25 }
 0x4f7   : > { %v1050_v29 = vmul.f32 %v3946_v42, %v1048_v60 }
 0x4f8   : > { %vm1037_vm13 = vcmp.ge.f32.partialorder %v1035_v28, 0.0  ;;  %v1047_v30 = vmul.f32 %v1044_v56, %v1035_v28 }
 0x4f9   : > { %1052 = vadd.xlane.f32.xlu1 %v1050_v29  ;;  %v1056_v35 = vmul.f32 %v1050_v29, %v1048_v60 }
 0x4fa   : > { %v1049_v31 = vsel %vm1037_vm13, %v1035_v28, %v1047_v30  ;;  %v3522_v28 = vld [vmem:[%s4425_s5 + $0x8] sm:$0xff]  }
 0x4fb   : > { %v1051_v36 = vmul.f32 %v3946_v42, %v1049_v31 }
 0x4fd   : > { %1058 = vadd.xlane.f32.xlu1 %v1056_v35  ;;  %1054 = vadd.xlane.f32.xlu0 %v1051_v36  ;;  %v1057_v37 = vmul.f32 %v1051_v36, %v1049_v31 }
 0x501   : > { %1060 = vadd.xlane.f32.xlu0 %v1057_v37 }
 0x582   : > { %v1053_v39 = vpop.xlane.xlu1 %1052 }
 0x583   : > { %v1062_v40 = vmul.f32 0.01, %v1053_v39 }
 0x585   : > { %v1066_v44 = vmul.f32 %v1062_v40, %v1062_v40 }
 0x586   : > { %v1059_v41 = vpop.xlane.xlu1 %1058  ;;  %v1055_v43 = vpop.xlane.xlu0 %1054 }
 0x587   : > { %v1064_v46 = vmul.f32 0.01, %v1059_v41  ;;  %v1063_v47 = vmul.f32 0.01, %v1055_v43 }
 0x589   : > { %v1068_v48 = vsub.f32 %v1064_v46, %v1066_v44  ;;  %v1067_v52 = vmul.f32 %v1063_v47, %v1063_v47 }
 0x58a   : > { %v1061_v49 = vpop.xlane.xlu0 %1060 }
 0x58b   : > { %v1070_v51 = vadd.f32 1e-05, %v1068_v48  ;;  %v1065_v54 = vmul.f32 0.01, %v1061_v49 }
 0x58d   : > { %3569 = vrsqrt.f32 %v1070_v51  ;;  %v1069_v55 = vsub.f32 %v1065_v54, %v1067_v52 }
 0x58f   : > { %v1071_v58 = vadd.f32 1e-05, %v1069_v55 }
 0x591   : > { %3571 = vrsqrt.f32 %v1071_v58 }
 0x59a   : > { %v3570_v62 = vpop.eup %3569 }
 0x59b   : > { %v1074_v63 = vmul.f32 %v3570_v62, %v3916_v18 }
 0x59d   : > { %v1076_v3 = vmul.f32 %v1074_v63, %v1062_v40 }
 0x59e   : > { %v3572_v4 = vpop.eup %3571 }
 0x59f   : > { %1080 = vrot.lane.b32.xlu1 %v1076_v3, %s3746_s21  ;;  %v1075_v5 = vmul.f32 %v3572_v4, %v3927_v20 }
 0x5a1   : > { %v1077_v6 = vmul.f32 %v1075_v5, %v1063_v47 }
 0x5a3   : > { %1090 = vperm.xlu1 %3460, %v1074_v63   ;;  %1082 = vrot.lane.b32.xlu0 %v1077_v6, %s3746_s21 }
 0x5a7   : > { %1095 = vperm.xlu1 %3460, %v1075_v5  }
 0x5ab   : > { %3462 = vset.pattern.permute.xlu1 %v3753_v59 }
 0x611   : > { %v1081_v7 = vpop.permute.xlu1 %1080 }
 0x612   : > { %v1086_v8 = vsub.f32 %v3916_v18, %v1081_v7  ;;  %v4044_v18 = vld [vmem:[%s4428_s8 + $0x10] sm:$0xff] }
 0x614   : > { %1102 = vperm.xlu0 %3461, %v1086_v8  }
 0x615   : > { %v1083_v9 = vpop.permute.xlu0 %1082 }
 0x616   : > { %v1087_v10 = vsub.f32 %v3927_v20, %v1083_v9  ;;  %v4049_v20 = vld [vmem:[%s4428_s8 + $0x18] sm:$0xff] }
 0x618   : > { %1107 = vperm.xlu1 %3462, %v1087_v10   ;;  %3464 = vset.pattern.permute.xlu0 %v3744_v19 }
 0x619   : > { %1307 = vperm.xlu0 %3464, %v4049_v20  }
 0x61c   : > { %3463 = vset.pattern.permute.xlu1 %v3744_v19 }
 0x61d   : > { %1303 = vperm.xlu1 %3463, %v4044_v18   ;;  %3466 = vset.pattern.permute.xlu0 %v3745_v2 }
 0x61e   : > { %v1091_v11 = vpop.permute.xlu1 %1090 }
 0x61f   : > { %v1098_v14 = vmul.f32 %v1091_v11, %v1048_v60 }
 0x621   : > { %3465 = vset.pattern.permute.xlu1 %v3742_v1 }
 0x622   : > { %v1096_v12 = vpop.permute.xlu1 %1095  ;;  %1228 = vperm.xlu1 %3465, %v4044_v18  }
 0x623   : > { %v1099_v15 = vmul.f32 %v1096_v12, %v1049_v31 }
 0x626   : > { %1233 = vperm.xlu1 %3465, %v4049_v20  }
 0x62a   : > { %3467 = vset.pattern.permute.xlu1 %v3745_v2 }
 0x68f   : > { %v1103_v13 = vpop.permute.xlu0 %1102 }
 0x690   : > { %v1110_v17 = vadd.f32 %v1103_v13, %v1098_v14 }
 0x693   : > { %v1108_v16 = vpop.permute.xlu1 %1107 }
 0x694   : > { %v1111_v21 = vadd.f32 %v1108_v16, %v1099_v15  ;;  %v1308_v35 = vpop.permute.xlu0 %1307 }
 0x696   : > { %v1114_v22 = vpack.c.bf16 %v1111_v21, %v1110_v17 }
 0x698   : > { %3297 = vmatpush3.bf16.msra.mxu0 %v1114_v22  ;;  %v1304_v60 = vpop.permute.xlu1 %1303 }
 0x699   : > { %3302 = vmatprep.subr.bf16.mxu0 %v3740_v0 }
 0x69b   : > { %3299 = vmatmul.mubr.msk.bf16.vlgmr.msra.gmra.mxu0 %vm535_vm4, %v3521_v23 }
 0x69c   : > { %3304 = vmatprep.mubr.msk.bf16.mxu0 %vm3741_vm0, %v3740_v0 }
 0x69d   : > { %v1229_v29 = vpop.permute.xlu1 %1228 }
 0x6a1   : > { %v1234_v41 = vpop.permute.xlu1 %1233 }
 0x75b   : > { %v1157_v45 = vpop.f32.mrf.mxu0 }
 0x75c   : > { %v4059_v25 = vadd.f32 %v1157_v45, %v3932_v33 }
 0x75d   : > { %v3300_v53 = vpop.f32.mrf.mxu0 }
 0x75f   : > { %v1160_v24 = vpop.f32.mrf.mxu0 }
 0x760   : > { %v4062_v26 = vadd.f32 %v1160_v24, %v3934_v34 }
 0x761   : > { %v3301_v27 = vpop.f32.mrf.mxu0 }
 0x762   : > { %v1174_v56 = vpack.c.bf16 %v4062_v26, %v4059_v25 }
 0x764   : > { %3303 = vmatpush3.bf16.msra.mxu0 %v1174_v56 }
 0x767   : > { %3305 = vmatmul.mubr.msk.bf16.vlgmr.msra.gmra.mxu0 %vm535_vm4, %v3522_v28 }
 0x827   : > { %v1217_v30 = vpop.f32.mrf.mxu0 }
 0x828   : > { %vm1224_vm14 = vcmp.ge.f32.partialorder %v1217_v30, 0.0  ;;  %v1310_v33 = vmul.f32 %v1304_v60, %v1217_v30  ;;  %v1236_v40 = vmul.f32 %v1229_v29, %v1217_v30 }
 0x829   : > { %v3306_v31 = vpop.f32.mrf.mxu0 }
 0x82a   : > { %v4071_v34 = vsel %vm1224_vm14, %v1217_v30, %v1310_v33  ;;  %v4081_v48 = vsel %vm1224_vm14, %v1217_v30, %v1236_v40 }
 0x82b   : > { %v1220_v36 = vpop.f32.mrf.mxu0  ;;  %v1314_v37 = vmul.f32 %v3946_v42, %v4071_v34  ;;  %v1240_v51 = vmul.f32 %v3946_v42, %v4081_v48 }
 0x82c   : > { %v1311_v39 = vmul.f32 %v1308_v35, %v1220_v36  ;;  %vm1225_vm15 = vcmp.ge.f32.partialorder %v1220_v36, 0.0  ;;  %v1237_v49 = vmul.f32 %v1234_v41, %v1220_v36 }
 0x82d   : > { %1316 = vadd.xlane.f32.xlu0 %v1314_v37  ;;  %v3307_v43 = vpop.f32.mrf.mxu0  ;;  %v1320_v46 = vmul.f32 %v1314_v37, %v4071_v34  ;;  %v1246_v55 = vmul.f32 %v1240_v51, %v4081_v48 }
 0x82e   : > { %v4075_v44 = vsel %vm1225_vm15, %v1220_v36, %v1311_v39  ;;  %v4086_v54 = vsel %vm1225_vm15, %v1220_v36, %v1237_v49 }
 0x82f   : > { %v1315_v47 = vmul.f32 %v3946_v42, %v4075_v44  ;;  %v1241_v58 = vmul.f32 %v3946_v42, %v4086_v54 }
 0x831   : > { %1322 = vadd.xlane.f32.xlu0 %v1320_v46  ;;  %1318 = vadd.xlane.f32.xlu1 %v1315_v47  ;;  %v1321_v52 = vmul.f32 %v1315_v47, %v4075_v44  ;;  %v1247_v62 = vmul.f32 %v1241_v58, %v4086_v54 }
 0x835   : > { %1242 = vadd.xlane.f32.xlu1 %v1240_v51  ;;  %1324 = vadd.xlane.f32.xlu0 %v1321_v52 }
 0x839   : > { %1248 = vadd.xlane.f32.xlu1 %v1246_v55  ;;  %1244 = vadd.xlane.f32.xlu0 %v1241_v58 }
 0x83d   : > { %1250 = vadd.xlane.f32.xlu0 %v1247_v62 }
 0x8b6   : > { %v1317_v63 = vpop.xlane.xlu0 %1316 }
 0x8b7   : > { %v1326_v3 = vmul.f32 0.01, %v1317_v63 }
 0x8b9   : > { %v1330_v6 = vmul.f32 %v1326_v3, %v1326_v3 }
 0x8ba   : > { %v1319_v4 = vpop.xlane.xlu1 %1318  ;;  %v1323_v5 = vpop.xlane.xlu0 %1322 }
 0x8bb   : > { %v1327_v7 = vmul.f32 0.01, %v1319_v4  ;;  %v1328_v8 = vmul.f32 0.01, %v1323_v5 }
 0x8bd   : > { %v1332_v9 = vsub.f32 %v1328_v8, %v1330_v6  ;;  %v1331_v12 = vmul.f32 %v1327_v7, %v1327_v7 }
 0x8be   : > { %v1243_v10 = vpop.xlane.xlu1 %1242  ;;  %v1325_v11 = vpop.xlane.xlu0 %1324 }
 0x8bf   : > { %v1334_v13 = vadd.f32 1e-05, %v1332_v9  ;;  %v1252_v14 = vmul.f32 0.01, %v1243_v10  ;;  %v1329_v15 = vmul.f32 0.01, %v1325_v11 }
 0x8c1   : > { %3573 = vrsqrt.f32 %v1334_v13  ;;  %v1333_v16 = vsub.f32 %v1329_v15, %v1331_v12  ;;  %v1256_v22 = vmul.f32 %v1252_v14, %v1252_v14 }
 0x8c2   : > { %v1249_v17 = vpop.xlane.xlu1 %1248  ;;  %v1245_v21 = vpop.xlane.xlu0 %1244 }
 0x8c3   : > { %v1335_v23 = vadd.f32 1e-05, %v1333_v16  ;;  %v1254_v45 = vmul.f32 0.01, %v1249_v17  ;;  %v1253_v53 = vmul.f32 0.01, %v1245_v21 }
 0x8c5   : > { %3575 = vrsqrt.f32 %v1335_v23  ;;  %v1258_v24 = vsub.f32 %v1254_v45, %v1256_v22  ;;  %v1257_v28 = vmul.f32 %v1253_v53, %v1253_v53 }
 0x8c6   : > { %v1251_v27 = vpop.xlane.xlu0 %1250 }
 0x8c7   : > { %v1260_v56 = vadd.f32 1e-05, %v1258_v24  ;;  %v1255_v60 = vmul.f32 0.01, %v1251_v27 }
 0x8c9   : > { %3577 = vrsqrt.f32 %v1260_v56  ;;  %v1259_v29 = vsub.f32 %v1255_v60, %v1257_v28 }
 0x8cb   : > { %v1261_v30 = vadd.f32 1e-05, %v1259_v29 }
 0x8cd   : > { %3579 = vrsqrt.f32 %v1261_v30 }
 0x8ce   : > { %v3574_v33 = vpop.eup %3573 }
 0x8cf   : > { %v1338_v31 = vmul.f32 %v3574_v33, %v4044_v18  ;;  %v3529_v33 = vld [vmem:[%s4426_s6 + $0x10] sm:$0xff]  }
 0x8d0   : > { %3320 = vmatprep.mubr.msk.bf16.mxu0 %vm966_vm9, %v3529_v33 }
 0x8d1   : > { %v1340_v35 = vmul.f32 %v1338_v31, %v1326_v3 }
 0x8d2   : > { %v3576_v36 = vpop.eup %3575 }
 0x8d3   : > { %1344 = vrot.lane.b32.xlu1 %v1340_v35, %s3746_s21  ;;  %v1339_v37 = vmul.f32 %v3576_v36, %v4049_v20 }
 0x8d5   : > { %v1341_v39 = vmul.f32 %v1339_v37, %v1327_v7 }
 0x8d6   : > { %v3578_v40 = vpop.eup %3577 }
 0x8d7   : > { %1346 = vrot.lane.b32.xlu0 %v1341_v39, %s3746_s21  ;;  %v1264_v41 = vmul.f32 %v3578_v40, %v4044_v18 }
 0x8d9   : > { %v1266_v43 = vmul.f32 %v1264_v41, %v1252_v14 }
 0x8da   : > { %v3580_v46 = vpop.eup %3579 }
 0x8db   : > { %1270 = vrot.lane.b32.xlu1 %v1266_v43, %s3746_s21  ;;  %1354 = vperm.xlu0 %3466, %v1338_v31   ;;  %v1265_v47 = vmul.f32 %v3580_v46, %v4049_v20 }
 0x8dd   : > { %v1267_v49 = vmul.f32 %v1265_v47, %v1253_v53 }
 0x8df   : > { %1272 = vrot.lane.b32.xlu1 %v1267_v49, %s3746_s21  ;;  %3469 = vset.pattern.permute.xlu0 %v3747_v50 }
 0x8e3   : > { %1359 = vperm.xlu1 %3467, %v1339_v37  }
 0x8e7   : > { %3468 = vset.pattern.permute.xlu1 %v3747_v50 }
 0x945   : > { %v1345_v51 = vpop.permute.xlu1 %1344 }
 0x946   : > { %v1350_v52 = vsub.f32 %v4044_v18, %v1345_v51 }
 0x948   : > { %1366 = vperm.xlu1 %3468, %v1350_v52  }
 0x949   : > { %v1347_v55 = vpop.permute.xlu0 %1346 }
 0x94a   : > { %v1351_v58 = vsub.f32 %v4049_v20, %v1347_v55 }
 0x94c   : > { %3470 = vset.pattern.permute.xlu1 %v3748_v57  ;;  %1371 = vperm.xlu0 %3469, %v1351_v58  }
 0x94d   : > { %v1271_v62 = vpop.permute.xlu1 %1270  ;;  %1280 = vperm.xlu1 %3470, %v1264_v41  }
 0x94e   : > { %v1276_v63 = vsub.f32 %v4044_v18, %v1271_v62 }
 0x950   : > { %3471 = vset.pattern.permute.xlu0 %v3749_v61 }
 0x951   : > { %1285 = vperm.xlu1 %3470, %v1265_v47   ;;  %v1273_v3 = vpop.permute.xlu1 %1272  ;;  %1292 = vperm.xlu0 %3471, %v1276_v63  }
 0x952   : > { %v1277_v4 = vsub.f32 %v4049_v20, %v1273_v3 }
 0x955   : > { %3472 = vset.pattern.permute.xlu1 %v3749_v61  ;;  %3474 = vset.pattern.permute.xlu0 %v3751_v32 }
 0x956   : > { %1297 = vperm.xlu1 %3472, %v1277_v4   ;;  %v1355_v5 = vpop.permute.xlu0 %1354 }
 0x957   : > { %v1362_v7 = vmul.f32 %v1355_v5, %v4071_v34 }
 0x95a   : > { %3473 = vset.pattern.permute.xlu1 %v3751_v32 }
 0x95e   : > { %v1360_v6 = vpop.permute.xlu1 %1359 }
 0x95f   : > { %v1363_v10 = vmul.f32 %v1360_v6, %v4075_v44 }
 0x9c3   : > { %v1367_v8 = vpop.permute.xlu1 %1366 }
 0x9c4   : > { %v1374_v9 = vadd.f32 %v1367_v8, %v1362_v7 }
 0x9c6   : > { %v3198_v11 = vpack.c.bf16 %v1374_v9, %v1374_v9 }
 0x9c7   : > { %v1372_v12 = vpop.permute.xlu0 %1371 }
 0x9c8   : > { %1394 = vst [vmem:[#allocation2 + $0x14] sm:$0xf] %v3198_v11  ;;  %v1375_v13 = vadd.f32 %v1372_v12, %v1363_v10  ;;  %v1281_v14 = vpop.permute.xlu1 %1280 }
 0x9c9   : > { %v1288_v16 = vmul.f32 %v1281_v14, %v4081_v48 }
 0x9ca   : > { %v3199_v15 = vpack.c.bf16 %v1375_v13, %v1375_v13 }
 0x9cc   : > { %1395 = vst [vmem:[#allocation2 + $0x1c] sm:$0xf] %v3199_v15  ;;  %v1286_v17 = vpop.permute.xlu1 %1285  ;;  %v1293_v21 = vpop.permute.xlu0 %1292  ;;  %v3530_v15 = vld [vmem:[%s4426_s6 + $0x18] sm:$0xff]  }
 0x9cd   : > { %v1300_v22 = vadd.f32 %v1293_v21, %v1288_v16  ;;  %v1289_v34 = vmul.f32 %v1286_v17, %v4086_v54 }
 0x9cf   : > { %v3196_v23 = vpack.c.bf16 %v1300_v22, %v1300_v22  ;;  %v1445_v45 = vld [vmem:[#allocation2 + $0x10] sm:$0xff] }
 0x9d0   : > { %v1465_v53 = vld [vmem:[#allocation2 + $0x14] sm:$0xf]  ;;  %1449 = vrot.lane.b32.xlu1 %v1445_v45, %s3750_s22 }
 0x9d1   : > { %1467 = vst [vmem:[#allocation3 + $0x28] sm:$0xf] %v1465_v53  ;;  %1384 = vst [vmem:[#allocation2 + $0x4] sm:$0xf] %v3196_v23  ;;  %v1298_v44 = vpop.permute.xlu1 %1297 }
 0x9d2   : > { %v1301_v24 = vadd.f32 %v1298_v44, %v1289_v34 }
 0x9d3   : > { %v1446_v27 = vld [vmem:[#allocation2 + $0x18] sm:$0xff] }
 0x9d4   : > { %v1466_v56 = vld [vmem:[#allocation2 + $0x1c] sm:$0xf]  ;;  %v3197_v28 = vpack.c.bf16 %v1301_v24, %v1301_v24  ;;  %1417 = vrot.lane.b32.xlu1 %v1445_v45, %s3754_s13  ;;  %1451 = vrot.lane.b32.xlu0 %v1446_v27, %s3750_s22 }
 0x9d5   : > { %1468 = vst [vmem:[#allocation3 + $0x2c] sm:$0xf] %v1466_v56 }
 0x9d6   : > { %1385 = vst [vmem:[#allocation2 + $0xc] sm:$0xf] %v3197_v28 }
 0x9d8   : > { %1419 = vrot.lane.b32.xlu0 %v1446_v27, %s3754_s13  ;;  %v1429_v48 = vld [vmem:[#allocation2] sm:$0xff] }
 0x9d9   : > { %v1461_v54 = vld [vmem:[#allocation2 + $0x4] sm:$0xf]  ;;  %1433 = vrot.lane.b32.xlu1 %v1429_v48, %s3750_s22 }
 0x9da   : > { %1463 = vst [vmem:[#allocation3 + $0x10] sm:$0xf] %v1461_v54 }
 0x9dc   : > { %v3523_v60 = vld [vmem:[#allocation3 + $0x28] sm:$0xff]  }
 0x9dd   : > { %1400 = vrot.lane.b32.xlu1 %v1429_v48, %s3754_s13  ;;  %3308 = vmatprep.subr.bf16.mxu0 %v3523_v60  ;;  %v1430_v29 = vld [vmem:[#allocation2 + $0x8] sm:$0xff] }
 0x9de   : > { %v1462_v30 = vld [vmem:[#allocation2 + $0xc] sm:$0xf]  ;;  %1435 = vrot.lane.b32.xlu0 %v1430_v29, %s3750_s22  ;;  %3309 = vmatpush3.bf16.msra.mxu0 %v3523_v60 }
 0x9df   : > { %1464 = vst [vmem:[#allocation3 + $0x14] sm:$0xf] %v1462_v30 }
 0x9e1   : > { %1604 = vperm.xlu1 %3473, %v4044_v18  }
 0x9e2   : > { %1402 = vrot.lane.b32.xlu0 %v1430_v29, %s3754_s13 }
 0x9e5   : > { %3475 = vset.pattern.permute.xlu1 %v3752_v38 }
 0x9e6   : > { %1608 = vperm.xlu0 %3474, %v4049_v20   ;;  %v3526_v12 = vld [vmem:[#allocation3 + $0x10] sm:$0xff]  }
 0x9ea   : > { %3476 = vset.pattern.permute.xlu0 %v3753_v59 }
 0xa42   : > { %v1450_v31 = vpop.permute.xlu1 %1449 }
 0xa43   : > { %v1453_v35 = vrot.slane %v1450_v31, 4 }
 0xa45   : > { %v1455_v36 = vsel %vm840_vm11, %v1450_v31, %v1453_v35 }
 0xa46   : > { %1459 = vst [vmem:[#allocation3 + $0x20] sm:$0xf] %v1455_v36  ;;  %v1418_v37 = vpop.permute.xlu1 %1417  ;;  %v1452_v39 = vpop.permute.xlu0 %1451 }
 0xa47   : > { %v1421_v40 = vrot.slane %v1418_v37, 4  ;;  %v1454_v41 = vrot.slane %v1452_v39, 4 }
 0xa49   : > { %v1423_v43 = vsel %vm1406_vm1, %v1418_v37, %v1421_v40  ;;  %v1456_v46 = vsel %vm840_vm11, %v1452_v39, %v1454_v41 }
 0xa4a   : > { %1427 = vst [vmem:[#allocation3 + $0x18] sm:$0xf] %v1423_v43  ;;  %1460 = vst [vmem:[#allocation3 + $0x24] sm:$0xf] %v1456_v46  ;;  %v1420_v47 = vpop.permute.xlu0 %1419 }
 0xa4b   : > { %v1422_v49 = vrot.slane %v1420_v47, 4  ;;  %v1434_v51 = vpop.permute.xlu1 %1433 }
 0xa4c   : > { %v1437_v52 = vrot.slane %v1434_v51, 4 }
 0xa4d   : > { %v1424_v55 = vsel %vm1406_vm1, %v1420_v47, %v1422_v49 }
 0xa4e   : > { %1428 = vst [vmem:[#allocation3 + $0x1c] sm:$0xf] %v1424_v55  ;;  %v1439_v58 = vsel %vm840_vm11, %v1434_v51, %v1437_v52 }
 0xa4f   : > { %1443 = vst [vmem:[#allocation3 + $0x8] sm:$0xf] %v1439_v58  ;;  %v1401_v62 = vpop.permute.xlu1 %1400 }
 0xa50   : > { %v1404_v63 = vrot.slane %v1401_v62, 4  ;;  %v1436_v3 = vpop.permute.xlu0 %1435 }
 0xa51   : > { %v1438_v4 = vrot.slane %v1436_v3, 4  ;;  %v3524_v5 = vld [vmem:[#allocation3 + $0x20] sm:$0xff]  }
 0xa52   : > { %v1407_v6 = vsel %vm1406_vm1, %v1401_v62, %v1404_v63  ;;  %3310 = vmatprep.subr.bf16.mxu0 %v3524_v5 }
 0xa53   : > { %1411 = vst [vmem:[#allocation3] sm:$0xf] %v1407_v6  ;;  %v1440_v7 = vsel %vm840_vm11, %v1436_v3, %v1438_v4  ;;  %3311 = vmatpush3.bf16.msra.mxu0 %v3524_v5 }
 0xa54   : > { %1444 = vst [vmem:[#allocation3 + $0xc] sm:$0xf] %v1440_v7  ;;  %v1403_v8 = vpop.permute.xlu0 %1402 }
 0xa55   : > { %v1405_v9 = vrot.slane %v1403_v8, 4  ;;  %v3525_v10 = vld [vmem:[#allocation3 + $0x18] sm:$0xff]  }
 0xa56   : > { %3312 = vmatprep.subr.bf16.mxu0 %v3525_v10 }
 0xa57   : > { %v1408_v11 = vsel %vm1406_vm1, %v1403_v8, %v1405_v9  ;;  %3313 = vmatpush3.bf16.msra.mxu0 %v3525_v10 }
 0xa58   : > { %1412 = vst [vmem:[#allocation3 + $0x4] sm:$0xf] %v1408_v11  ;;  %3314 = vmatprep.subr.bf16.mxu0 %v3526_v12 }
 0xa5b   : > { %v3527_v13 = vld [vmem:[#allocation3 + $0x8] sm:$0xff]   ;;  %3315 = vmatpush3.bf16.msra.mxu0 %v3526_v12 }
 0xa5c   : > { %3316 = vmatprep.subr.bf16.mxu0 %v3527_v13  ;;  %v1605_v27 = vpop.permute.xlu1 %1604 }
 0xa5f   : > { %v3528_v14 = vld [vmem:[#allocation3] sm:$0xff]   ;;  %3317 = vmatpush3.bf16.msra.mxu0 %v3527_v13 }
 0xa60   : > { %3318 = vmatprep.subr.bf16.mxu0 %v3528_v14 }
 0xa61   : > { %v1609_v60 = vpop.permute.xlu0 %1608 }
 0xa63   : > { %3319 = vmatpush3.bf16.msra.mxu0 %v3528_v14 }
 0xa64   : > { %3352 = vmatprep.subr.bf16.mxu0 %v3740_v0 }
 0xa66   : > { %3321 = vmatmul.mubr.msk.bf16.vlgmr.msra.gmra.mxu0 %vm966_vm9, %v3530_v15 }
 0xa67   : > { %3354 = vmatprep.mubr.msk.bf16.mxu0 %vm3741_vm0, %v3740_v0 }
 0xb26   : > { %v3322_v16 = vpop.f32.mrf.mxu0 }
 0xb27   : > { %v3123_v17 = vmul.f32 -1.442695, %v3322_v16 }
 0xb28   : > { %v1572_v21 = vpop.f32.mrf.mxu0 }
 0xb29   : > { %3581 = vpow2.f32 %v3123_v17 }
 0xb2a   : > { %v3323_v22 = vpop.f32.mrf.mxu0 }
 0xb2b   : > { %v3124_v23 = vmul.f32 -1.442695, %v3323_v22 }
 0xb2c   : > { %v1575_v54 = vpop.f32.mrf.mxu0 }
 0xb2d   : > { %3583 = vpow2.f32 %v3124_v23 }
 0xb36   : > { %v3582_v45 = vpop.eup %3581 }
 0xb37   : > { %v1593_v53 = vadd.f32 1.0, %v3582_v45 }
 0xb39   : > { %3585 = vrcp.f32 %v1593_v53 }
 0xb3a   : > { %v3584_v34 = vpop.eup %3583 }
 0xb3b   : > { %v1594_v44 = vadd.f32 1.0, %v3584_v34 }
 0xb3d   : > { %3587 = vrcp.f32 %v1594_v44  ;;  %v3531_v44 = vld [vmem:[#allocation10 + $0x8] sm:$0xff]  }
 0xb46   : > { %v3586_v24 = vpop.eup %3585 }
 0xb47   : > { %v1599_v56 = vmul.f32 %v3586_v24, %v1572_v21 }
 0xb49   : > { %vm1601_vm2 = vcmp.ge.f32.partialorder %v1599_v56, 0.0  ;;  %v1611_v28 = vmul.f32 %v1605_v27, %v1599_v56 }
 0xb4a   : > { %v3588_v48 = vpop.eup %3587 }
 0xb4b   : > { %v1600_v29 = vmul.f32 %v3588_v48, %v1575_v54  ;;  %v1613_v30 = vsel %vm1601_vm2, %v1599_v56, %v1611_v28 }
 0xb4c   : > { %v1615_v33 = vmul.f32 %v3946_v42, %v1613_v30 }
 0xb4d   : > { %vm1602_vm5 = vcmp.ge.f32.partialorder %v1600_v29, 0.0  ;;  %v1612_v31 = vmul.f32 %v1609_v60, %v1600_v29 }
 0xb4e   : > { %1617 = vadd.xlane.f32.xlu1 %v1615_v33  ;;  %v1621_v36 = vmul.f32 %v1615_v33, %v1613_v30 }
 0xb4f   : > { %v1614_v35 = vsel %vm1602_vm5, %v1600_v29, %v1612_v31  ;;  %v3532_v29 = vld [vmem:[%s4425_s5 + $0x10] sm:$0xff]  }
 0xb50   : > { %v1616_v37 = vmul.f32 %v3946_v42, %v1614_v35 }
 0xb52   : > { %1623 = vadd.xlane.f32.xlu1 %v1621_v36  ;;  %1619 = vadd.xlane.f32.xlu0 %v1616_v37  ;;  %v1622_v39 = vmul.f32 %v1616_v37, %v1614_v35 }
 0xb56   : > { %1625 = vadd.xlane.f32.xlu0 %v1622_v39 }
 0xbd7   : > { %v1618_v40 = vpop.xlane.xlu1 %1617 }
 0xbd8   : > { %v1627_v41 = vmul.f32 0.01, %v1618_v40 }
 0xbda   : > { %v1631_v47 = vmul.f32 %v1627_v41, %v1627_v41 }
 0xbdb   : > { %v1624_v43 = vpop.xlane.xlu1 %1623  ;;  %v1620_v46 = vpop.xlane.xlu0 %1619 }
 0xbdc   : > { %v1629_v49 = vmul.f32 0.01, %v1624_v43  ;;  %v1628_v51 = vmul.f32 0.01, %v1620_v46 }
 0xbde   : > { %v1633_v52 = vsub.f32 %v1629_v49, %v1631_v47  ;;  %v1632_v62 = vmul.f32 %v1628_v51, %v1628_v51 }
 0xbdf   : > { %v1626_v55 = vpop.xlane.xlu0 %1625 }
 0xbe0   : > { %v1635_v58 = vadd.f32 1e-05, %v1633_v52  ;;  %v1630_v63 = vmul.f32 0.01, %v1626_v55 }
 0xbe2   : > { %3589 = vrsqrt.f32 %v1635_v58  ;;  %v1634_v3 = vsub.f32 %v1630_v63, %v1632_v62 }
 0xbe4   : > { %v1636_v4 = vadd.f32 1e-05, %v1634_v3 }
 0xbe6   : > { %3591 = vrsqrt.f32 %v1636_v4 }
 0xbef   : > { %v3590_v5 = vpop.eup %3589 }
 0xbf0   : > { %v1639_v6 = vmul.f32 %v3590_v5, %v4044_v18 }
 0xbf2   : > { %v1641_v7 = vmul.f32 %v1639_v6, %v1627_v41 }
 0xbf3   : > { %v3592_v8 = vpop.eup %3591 }
 0xbf4   : > { %1645 = vrot.lane.b32.xlu1 %v1641_v7, %s3746_s21  ;;  %v1640_v9 = vmul.f32 %v3592_v8, %v4049_v20 }
 0xbf6   : > { %v1642_v10 = vmul.f32 %v1640_v9, %v1628_v51 }
 0xbf8   : > { %1655 = vperm.xlu1 %3475, %v1639_v6   ;;  %1647 = vrot.lane.b32.xlu0 %v1642_v10, %s3746_s21 }
 0xbfc   : > { %1660 = vperm.xlu1 %3475, %v1640_v9  }
 0xc00   : > { %3477 = vset.pattern.permute.xlu1 %v3753_v59 }
 0xc66   : > { %v1646_v11 = vpop.permute.xlu1 %1645 }
 0xc67   : > { %v1651_v12 = vsub.f32 %v4044_v18, %v1646_v11  ;;  %v4164_v18 = vld [vmem:[%s4428_s8 + $0x20] sm:$0xff] }
 0xc69   : > { %1667 = vperm.xlu0 %3476, %v1651_v12  }
 0xc6a   : > { %v1648_v13 = vpop.permute.xlu0 %1647 }
 0xc6b   : > { %v1652_v14 = vsub.f32 %v4049_v20, %v1648_v13  ;;  %v4169_v20 = vld [vmem:[%s4428_s8 + $0x28] sm:$0xff] }
 0xc6d   : > { %1672 = vperm.xlu1 %3477, %v1652_v14   ;;  %3479 = vset.pattern.permute.xlu0 %v3744_v19 }
 0xc6e   : > { %1881 = vperm.xlu0 %3479, %v4169_v20  }
 0xc71   : > { %3478 = vset.pattern.permute.xlu1 %v3744_v19 }
 0xc72   : > { %1877 = vperm.xlu1 %3478, %v4164_v18   ;;  %3481 = vset.pattern.permute.xlu0 %v3745_v2 }
 0xc73   : > { %v1656_v15 = vpop.permute.xlu1 %1655 }
 0xc74   : > { %v1663_v21 = vmul.f32 %v1656_v15, %v1613_v30 }
 0xc76   : > { %3480 = vset.pattern.permute.xlu1 %v3742_v1 }
 0xc77   : > { %v1661_v16 = vpop.permute.xlu1 %1660  ;;  %1802 = vperm.xlu1 %3480, %v4164_v18  }
 0xc78   : > { %v1664_v22 = vmul.f32 %v1661_v16, %v1614_v35 }
 0xc7b   : > { %1807 = vperm.xlu1 %3480, %v4169_v20  }
 0xc7f   : > { %3482 = vset.pattern.permute.xlu1 %v3745_v2 }
 0xce4   : > { %v1668_v17 = vpop.permute.xlu0 %1667 }
 0xce5   : > { %v1675_v45 = vadd.f32 %v1668_v17, %v1663_v21 }
 0xce8   : > { %v1673_v23 = vpop.permute.xlu1 %1672 }
 0xce9   : > { %v1676_v53 = vadd.f32 %v1673_v23, %v1664_v22  ;;  %v1882_v36 = vpop.permute.xlu0 %1881 }
 0xceb   : > { %v1680_v34 = vpack.c.bf16 %v1676_v53, %v1675_v45 }
 0xced   : > { %3325 = vmatpush3.bf16.msra.mxu1 %v1680_v34  ;;  %v1878_v30 = vpop.permute.xlu1 %1877 }
 0xcee   : > { %3330 = vmatprep.subr.bf16.mxu1 %v3740_v0 }
 0xcf0   : > { %3327 = vmatmul.mubr.msk.bf16.vlgmr.msra.gmra.mxu1 %vm535_vm4, %v3531_v44 }
 0xcf1   : > { %3332 = vmatprep.mubr.msk.bf16.mxu1 %vm3741_vm0, %v3740_v0 }
 0xcf2   : > { %v1803_v33 = vpop.permute.xlu1 %1802 }
 0xcf6   : > { %v1808_v43 = vpop.permute.xlu1 %1807 }
 0xdb0   : > { %v1723_v24 = vpop.f32.mrf.mxu1 }
 0xdb1   : > { %v4179_v28 = vadd.f32 %v1723_v24, %v4059_v25 }
 0xdb2   : > { %v3328_v27 = vpop.f32.mrf.mxu1 }
 0xdb4   : > { %v1726_v56 = vpop.f32.mrf.mxu1 }
 0xdb5   : > { %v4182_v48 = vadd.f32 %v1726_v56, %v4062_v26 }
 0xdb6   : > { %v3329_v54 = vpop.f32.mrf.mxu1 }
 0xdb7   : > { %v1748_v60 = vpack.c.bf16 %v4182_v48, %v4179_v28 }
 0xdb9   : > { %3331 = vmatpush3.bf16.msra.mxu1 %v1748_v60 }
 0xdbc   : > { %3333 = vmatmul.mubr.msk.bf16.vlgmr.msra.gmra.mxu1 %vm535_vm4, %v3532_v29 }
 0xe7c   : > { %v1791_v31 = vpop.f32.mrf.mxu1 }
 0xe7d   : > { %vm1798_vm6 = vcmp.ge.f32.partialorder %v1791_v31, 0.0  ;;  %v1884_v25 = vmul.f32 %v1878_v30, %v1791_v31  ;;  %v1810_v40 = vmul.f32 %v1803_v33, %v1791_v31 }
 0xe7e   : > { %v3334_v35 = vpop.f32.mrf.mxu1 }
 0xe7f   : > { %v4191_v26 = vsel %vm1798_vm6, %v1791_v31, %v1884_v25  ;;  %v4201_v52 = vsel %vm1798_vm6, %v1791_v31, %v1810_v40 }
 0xe80   : > { %v1794_v37 = vpop.f32.mrf.mxu1  ;;  %v1888_v39 = vmul.f32 %v3946_v42, %v4191_v26  ;;  %v1814_v58 = vmul.f32 %v3946_v42, %v4201_v52 }
 0xe81   : > { %vm1799_vm7 = vcmp.ge.f32.partialorder %v1794_v37, 0.0  ;;  %v1885_v41 = vmul.f32 %v1882_v36, %v1794_v37  ;;  %v1811_v55 = vmul.f32 %v1808_v43, %v1794_v37 }
 0xe82   : > { %1890 = vadd.xlane.f32.xlu0 %v1888_v39  ;;  %v3335_v46 = vpop.f32.mrf.mxu1  ;;  %v1894_v49 = vmul.f32 %v1888_v39, %v4191_v26  ;;  %v1820_v3 = vmul.f32 %v1814_v58, %v4201_v52 }
 0xe83   : > { %v4195_v47 = vsel %vm1799_vm7, %v1794_v37, %v1885_v41  ;;  %v4206_v63 = vsel %vm1799_vm7, %v1794_v37, %v1811_v55 }
 0xe84   : > { %v1889_v51 = vmul.f32 %v3946_v42, %v4195_v47  ;;  %v1815_v4 = vmul.f32 %v3946_v42, %v4206_v63 }
 0xe86   : > { %1896 = vadd.xlane.f32.xlu0 %v1894_v49  ;;  %1892 = vadd.xlane.f32.xlu1 %v1889_v51  ;;  %v1895_v62 = vmul.f32 %v1889_v51, %v4195_v47  ;;  %v1821_v5 = vmul.f32 %v1815_v4, %v4206_v63 }
 0xe8a   : > { %1816 = vadd.xlane.f32.xlu1 %v1814_v58  ;;  %1898 = vadd.xlane.f32.xlu0 %v1895_v62 }
 0xe8e   : > { %1822 = vadd.xlane.f32.xlu1 %v1820_v3  ;;  %1818 = vadd.xlane.f32.xlu0 %v1815_v4 }
 0xe92   : > { %1824 = vadd.xlane.f32.xlu0 %v1821_v5 }
 0xf0b   : > { %v1891_v6 = vpop.xlane.xlu0 %1890 }
 0xf0c   : > { %v1900_v7 = vmul.f32 0.01, %v1891_v6 }
 0xf0e   : > { %v1904_v10 = vmul.f32 %v1900_v7, %v1900_v7 }
 0xf0f   : > { %v1893_v8 = vpop.xlane.xlu1 %1892  ;;  %v1897_v9 = vpop.xlane.xlu0 %1896 }
 0xf10   : > { %v1901_v11 = vmul.f32 0.01, %v1893_v8  ;;  %v1902_v12 = vmul.f32 0.01, %v1897_v9 }
 0xf12   : > { %v1906_v13 = vsub.f32 %v1902_v12, %v1904_v10  ;;  %v1905_v16 = vmul.f32 %v1901_v11, %v1901_v11 }
 0xf13   : > { %v1817_v14 = vpop.xlane.xlu1 %1816  ;;  %v1899_v15 = vpop.xlane.xlu0 %1898 }
 0xf14   : > { %v1908_v17 = vadd.f32 1e-05, %v1906_v13  ;;  %v1826_v21 = vmul.f32 0.01, %v1817_v14  ;;  %v1903_v22 = vmul.f32 0.01, %v1899_v15 }
 0xf16   : > { %3593 = vrsqrt.f32 %v1908_v17  ;;  %v1907_v23 = vsub.f32 %v1903_v22, %v1905_v16  ;;  %v1830_v34 = vmul.f32 %v1826_v21, %v1826_v21 }
 0xf17   : > { %v1823_v45 = vpop.xlane.xlu1 %1822  ;;  %v1819_v53 = vpop.xlane.xlu0 %1818 }
 0xf18   : > { %v1909_v44 = vadd.f32 1e-05, %v1907_v23  ;;  %v1828_v24 = vmul.f32 0.01, %v1823_v45  ;;  %v1827_v27 = vmul.f32 0.01, %v1819_v53 }
 0xf1a   : > { %3595 = vrsqrt.f32 %v1909_v44  ;;  %v1832_v56 = vsub.f32 %v1828_v24, %v1830_v34  ;;  %v1831_v29 = vmul.f32 %v1827_v27, %v1827_v27 }
 0xf1b   : > { %v1825_v54 = vpop.xlane.xlu0 %1824 }
 0xf1c   : > { %v1834_v60 = vadd.f32 1e-05, %v1832_v56  ;;  %v1829_v30 = vmul.f32 0.01, %v1825_v54 }
 0xf1e   : > { %3597 = vrsqrt.f32 %v1834_v60  ;;  %v1833_v33 = vsub.f32 %v1829_v30, %v1831_v29 }
 0xf20   : > { %v1835_v31 = vadd.f32 1e-05, %v1833_v33 }
 0xf22   : > { %3599 = vrsqrt.f32 %v1835_v31 }
 0xf23   : > { %v3594_v25 = vpop.eup %3593 }
 0xf24   : > { %v1912_v35 = vmul.f32 %v3594_v25, %v4164_v18  ;;  %v3539_v25 = vld [vmem:[%s4426_s6 + $0x20] sm:$0xff]  }
 0xf25   : > { %3348 = vmatprep.mubr.msk.bf16.mxu1 %vm966_vm9, %v3539_v25 }
 0xf26   : > { %v1914_v36 = vmul.f32 %v1912_v35, %v1900_v7 }
 0xf27   : > { %v3596_v37 = vpop.eup %3595 }
 0xf28   : > { %1918 = vrot.lane.b32.xlu1 %v1914_v36, %s3746_s21  ;;  %v1913_v39 = vmul.f32 %v3596_v37, %v4169_v20 }
 0xf2a   : > { %v1915_v40 = vmul.f32 %v1913_v39, %v1901_v11 }
 0xf2b   : > { %v3598_v41 = vpop.eup %3597 }
 0xf2c   : > { %1920 = vrot.lane.b32.xlu0 %v1915_v40, %s3746_s21  ;;  %v1838_v43 = vmul.f32 %v3598_v41, %v4164_v18 }
 0xf2e   : > { %v1840_v46 = vmul.f32 %v1838_v43, %v1826_v21 }
 0xf2f   : > { %v3600_v49 = vpop.eup %3599 }
 0xf30   : > { %1844 = vrot.lane.b32.xlu1 %v1840_v46, %s3746_s21  ;;  %1928 = vperm.xlu0 %3481, %v1912_v35   ;;  %v1839_v51 = vmul.f32 %v3600_v49, %v4169_v20 }
 0xf32   : > { %v1841_v55 = vmul.f32 %v1839_v51, %v1827_v27 }
 0xf34   : > { %1846 = vrot.lane.b32.xlu1 %v1841_v55, %s3746_s21  ;;  %3484 = vset.pattern.permute.xlu0 %v3747_v50 }
 0xf38   : > { %1933 = vperm.xlu1 %3482, %v1913_v39  }
 0xf3c   : > { %3483 = vset.pattern.permute.xlu1 %v3747_v50 }
 0xf9a   : > { %v1919_v58 = vpop.permute.xlu1 %1918 }
 0xf9b   : > { %v1924_v62 = vsub.f32 %v4164_v18, %v1919_v58 }
 0xf9d   : > { %1940 = vperm.xlu1 %3483, %v1924_v62  }
 0xf9e   : > { %v1921_v3 = vpop.permute.xlu0 %1920 }
 0xf9f   : > { %v1925_v4 = vsub.f32 %v4169_v20, %v1921_v3 }
 0xfa1   : > { %3485 = vset.pattern.permute.xlu1 %v3748_v57  ;;  %1945 = vperm.xlu0 %3484, %v1925_v4  }
 0xfa2   : > { %v1845_v5 = vpop.permute.xlu1 %1844  ;;  %1854 = vperm.xlu1 %3485, %v1838_v43  }
 0xfa3   : > { %v1850_v6 = vsub.f32 %v4164_v18, %v1845_v5 }
 0xfa5   : > { %3486 = vset.pattern.permute.xlu0 %v3749_v61 }
 0xfa6   : > { %1859 = vperm.xlu1 %3485, %v1839_v51   ;;  %v1847_v7 = vpop.permute.xlu1 %1846  ;;  %1866 = vperm.xlu0 %3486, %v1850_v6  }
 0xfa7   : > { %v1851_v8 = vsub.f32 %v4169_v20, %v1847_v7 }
 0xfaa   : > { %3487 = vset.pattern.permute.xlu1 %v3749_v61  ;;  %3489 = vset.pattern.permute.xlu0 %v3751_v32 }
 0xfab   : > { %1871 = vperm.xlu1 %3487, %v1851_v8   ;;  %v1929_v9 = vpop.permute.xlu0 %1928 }
 0xfac   : > { %v1936_v11 = vmul.f32 %v1929_v9, %v4191_v26 }
 0xfaf   : > { %3488 = vset.pattern.permute.xlu1 %v3751_v32 }
 0xfb3   : > { %v1934_v10 = vpop.permute.xlu1 %1933 }
 0xfb4   : > { %v1937_v14 = vmul.f32 %v1934_v10, %v4195_v47 }
0x1018   : > { %v1941_v12 = vpop.permute.xlu1 %1940 }
0x1019   : > { %v1948_v13 = vadd.f32 %v1941_v12, %v1936_v11 }
0x101b   : > { %v3202_v15 = vpack.c.bf16 %v1948_v13, %v1948_v13 }
0x101c   : > { %v1946_v16 = vpop.permute.xlu0 %1945 }
0x101d   : > { %1968 = vst [vmem:[#allocation2 + $0x14] sm:$0xf] %v3202_v15  ;;  %v1949_v17 = vadd.f32 %v1946_v16, %v1937_v14  ;;  %v1855_v21 = vpop.permute.xlu1 %1854 }
0x101e   : > { %v1862_v23 = vmul.f32 %v1855_v21, %v4201_v52 }
0x101f   : > { %v3203_v22 = vpack.c.bf16 %v1949_v17, %v1949_v17 }
0x1021   : > { %1969 = vst [vmem:[#allocation2 + $0x1c] sm:$0xf] %v3203_v22  ;;  %v1860_v45 = vpop.permute.xlu1 %1859  ;;  %v1867_v53 = vpop.permute.xlu0 %1866  ;;  %v3540_v22 = vld [vmem:[%s4426_s6 + $0x28] sm:$0xff]  }
0x1022   : > { %v1874_v34 = vadd.f32 %v1867_v53, %v1862_v23  ;;  %v1863_v26 = vmul.f32 %v1860_v45, %v4206_v63 }
0x1024   : > { %v3200_v44 = vpack.c.bf16 %v1874_v34, %v1874_v34  ;;  %v2018_v24 = vld [vmem:[#allocation2 + $0x10] sm:$0xff] }
0x1025   : > { %v2038_v27 = vld [vmem:[#allocation2 + $0x14] sm:$0xf]  ;;  %2022 = vrot.lane.b32.xlu1 %v2018_v24, %s3746_s21 }
0x1026   : > { %2040 = vst [vmem:[#allocation3 + $0x28] sm:$0xf] %v2038_v27  ;;  %1958 = vst [vmem:[#allocation2 + $0x4] sm:$0xf] %v3200_v44  ;;  %v1872_v47 = vpop.permute.xlu1 %1871 }
0x1027   : > { %v1875_v56 = vadd.f32 %v1872_v47, %v1863_v26 }
0x1028   : > { %v2019_v54 = vld [vmem:[#allocation2 + $0x18] sm:$0xff] }
0x1029   : > { %v2039_v60 = vld [vmem:[#allocation2 + $0x1c] sm:$0xf]  ;;  %v3201_v29 = vpack.c.bf16 %v1875_v56, %v1875_v56  ;;  %1990 = vrot.lane.b32.xlu1 %v2018_v24, %s3750_s22  ;;  %2024 = vrot.lane.b32.xlu0 %v2019_v54, %s3746_s21 }
0x102a   : > { %2041 = vst [vmem:[#allocation3 + $0x2c] sm:$0xf] %v2039_v60 }
0x102b   : > { %1959 = vst [vmem:[#allocation2 + $0xc] sm:$0xf] %v3201_v29 }
0x102d   : > { %1992 = vrot.lane.b32.xlu0 %v2019_v54, %s3750_s22  ;;  %v2002_v52 = vld [vmem:[#allocation2] sm:$0xff] }
0x102e   : > { %v2034_v30 = vld [vmem:[#allocation2 + $0x4] sm:$0xf]  ;;  %2006 = vrot.lane.b32.xlu1 %v2002_v52, %s3746_s21 }
0x102f   : > { %2036 = vst [vmem:[#allocation3 + $0x10] sm:$0xf] %v2034_v30 }
0x1031   : > { %v3533_v63 = vld [vmem:[#allocation3 + $0x28] sm:$0xff]  }
0x1032   : > { %1974 = vrot.lane.b32.xlu1 %v2002_v52, %s3750_s22  ;;  %3336 = vmatprep.subr.bf16.mxu1 %v3533_v63  ;;  %v2003_v33 = vld [vmem:[#allocation2 + $0x8] sm:$0xff] }
0x1033   : > { %v2035_v31 = vld [vmem:[#allocation2 + $0xc] sm:$0xf]  ;;  %2008 = vrot.lane.b32.xlu0 %v2003_v33, %s3746_s21  ;;  %3337 = vmatpush3.bf16.msra.mxu1 %v3533_v63 }
0x1034   : > { %2037 = vst [vmem:[#allocation3 + $0x14] sm:$0xf] %v2035_v31 }
0x1036   : > { %2177 = vperm.xlu1 %3488, %v4164_v18  }
0x1037   : > { %1976 = vrot.lane.b32.xlu0 %v2003_v33, %s3750_s22 }
0x103a   : > { %3490 = vset.pattern.permute.xlu1 %v3752_v38 }
0x103b   : > { %2181 = vperm.xlu0 %3489, %v4169_v20   ;;  %v3536_v16 = vld [vmem:[#allocation3 + $0x10] sm:$0xff]  }
0x103f   : > { %3491 = vset.pattern.permute.xlu0 %v3753_v59 }
0x1097   : > { %v2023_v35 = vpop.permute.xlu1 %2022 }
0x1098   : > { %v2026_v36 = vrot.slane %v2023_v35, 4 }
0x109a   : > { %v2028_v37 = vsel %vm873_vm10, %v2023_v35, %v2026_v36 }
0x109b   : > { %2032 = vst [vmem:[#allocation3 + $0x20] sm:$0xf] %v2028_v37  ;;  %v1991_v39 = vpop.permute.xlu1 %1990  ;;  %v2025_v40 = vpop.permute.xlu0 %2024 }
0x109c   : > { %v1994_v41 = vrot.slane %v1991_v39, 4  ;;  %v2027_v43 = vrot.slane %v2025_v40, 4 }
0x109e   : > { %v1996_v46 = vsel %vm840_vm11, %v1991_v39, %v1994_v41  ;;  %v2029_v49 = vsel %vm873_vm10, %v2025_v40, %v2027_v43 }
0x109f   : > { %2000 = vst [vmem:[#allocation3 + $0x18] sm:$0xf] %v1996_v46  ;;  %2033 = vst [vmem:[#allocation3 + $0x24] sm:$0xf] %v2029_v49  ;;  %v1993_v51 = vpop.permute.xlu0 %1992 }
0x10a0   : > { %v1995_v55 = vrot.slane %v1993_v51, 4  ;;  %v2007_v58 = vpop.permute.xlu1 %2006 }
0x10a1   : > { %v2010_v62 = vrot.slane %v2007_v58, 4 }
0x10a2   : > { %v1997_v3 = vsel %vm840_vm11, %v1993_v51, %v1995_v55 }
0x10a3   : > { %2001 = vst [vmem:[#allocation3 + $0x1c] sm:$0xf] %v1997_v3  ;;  %v2012_v4 = vsel %vm873_vm10, %v2007_v58, %v2010_v62 }
0x10a4   : > { %2016 = vst [vmem:[#allocation3 + $0x8] sm:$0xf] %v2012_v4  ;;  %v1975_v5 = vpop.permute.xlu1 %1974 }
0x10a5   : > { %v1978_v6 = vrot.slane %v1975_v5, 4  ;;  %v2009_v7 = vpop.permute.xlu0 %2008 }
0x10a6   : > { %v2011_v8 = vrot.slane %v2009_v7, 4  ;;  %v3534_v9 = vld [vmem:[#allocation3 + $0x20] sm:$0xff]  }
0x10a7   : > { %v1980_v10 = vsel %vm840_vm11, %v1975_v5, %v1978_v6  ;;  %3338 = vmatprep.subr.bf16.mxu1 %v3534_v9 }
0x10a8   : > { %1984 = vst [vmem:[#allocation3] sm:$0xf] %v1980_v10  ;;  %v2013_v11 = vsel %vm873_vm10, %v2009_v7, %v2011_v8  ;;  %3339 = vmatpush3.bf16.msra.mxu1 %v3534_v9 }
0x10a9   : > { %2017 = vst [vmem:[#allocation3 + $0xc] sm:$0xf] %v2013_v11  ;;  %v1977_v12 = vpop.permute.xlu0 %1976 }
0x10aa   : > { %v1979_v13 = vrot.slane %v1977_v12, 4  ;;  %v3535_v14 = vld [vmem:[#allocation3 + $0x18] sm:$0xff]  }
0x10ab   : > { %3340 = vmatprep.subr.bf16.mxu1 %v3535_v14 }
0x10ac   : > { %v1981_v15 = vsel %vm840_vm11, %v1977_v12, %v1979_v13  ;;  %3341 = vmatpush3.bf16.msra.mxu1 %v3535_v14 }
0x10ad   : > { %1985 = vst [vmem:[#allocation3 + $0x4] sm:$0xf] %v1981_v15  ;;  %3342 = vmatprep.subr.bf16.mxu1 %v3536_v16 }
0x10b0   : > { %v3537_v17 = vld [vmem:[#allocation3 + $0x8] sm:$0xff]   ;;  %3343 = vmatpush3.bf16.msra.mxu1 %v3536_v16 }
0x10b1   : > { %3344 = vmatprep.subr.bf16.mxu1 %v3537_v17  ;;  %v2178_v54 = vpop.permute.xlu1 %2177 }
0x10b4   : > { %v3538_v21 = vld [vmem:[#allocation3] sm:$0xff]   ;;  %3345 = vmatpush3.bf16.msra.mxu1 %v3537_v17 }
0x10b5   : > { %3346 = vmatprep.subr.bf16.mxu1 %v3538_v21 }
0x10b6   : > { %v2182_v63 = vpop.permute.xlu0 %2181 }
0x10b8   : > { %3347 = vmatpush3.bf16.msra.mxu1 %v3538_v21 }
0x10b9   : > { %3380 = vmatprep.subr.bf16.mxu1 %v3740_v0 }
0x10bb   : > { %3349 = vmatmul.mubr.msk.bf16.vlgmr.msra.gmra.mxu1 %vm966_vm9, %v3540_v22 }
0x10bc   : > { %3382 = vmatprep.mubr.msk.bf16.mxu1 %vm3741_vm0, %v3740_v0 }
0x117b   : > { %v3350_v23 = vpop.f32.mrf.mxu1 }
0x117c   : > { %v3151_v45 = vmul.f32 -1.442695, %v3350_v23 }
0x117d   : > { %v2145_v53 = vpop.f32.mrf.mxu1 }
0x117e   : > { %3601 = vpow2.f32 %v3151_v45 }
0x117f   : > { %v3351_v34 = vpop.f32.mrf.mxu1 }
0x1180   : > { %v3152_v44 = vmul.f32 -1.442695, %v3351_v34 }
0x1181   : > { %v2148_v30 = vpop.f32.mrf.mxu1 }
0x1182   : > { %3603 = vpow2.f32 %v3152_v44 }
0x118b   : > { %v3602_v24 = vpop.eup %3601 }
0x118c   : > { %v2166_v27 = vadd.f32 1.0, %v3602_v24 }
0x118e   : > { %3605 = vrcp.f32 %v2166_v27 }
0x118f   : > { %v3604_v26 = vpop.eup %3603 }
0x1190   : > { %v2167_v47 = vadd.f32 1.0, %v3604_v26 }
0x1192   : > { %3607 = vrcp.f32 %v2167_v47  ;;  %v3541_v47 = vld [vmem:[#allocation10 + $0x10] sm:$0xff]  }
0x119b   : > { %v3606_v56 = vpop.eup %3605 }
0x119c   : > { %v2172_v60 = vmul.f32 %v3606_v56, %v2145_v53 }
0x119e   : > { %vm2174_vm8 = vcmp.ge.f32.partialorder %v2172_v60, 0.0  ;;  %v2184_v29 = vmul.f32 %v2178_v54, %v2172_v60 }
0x119f   : > { %v3608_v52 = vpop.eup %3607 }
0x11a0   : > { %v2173_v33 = vmul.f32 %v3608_v52, %v2148_v30  ;;  %v2186_v31 = vsel %vm2174_vm8, %v2172_v60, %v2184_v29 }
0x11a1   : > { %v2188_v25 = vmul.f32 %v3946_v42, %v2186_v31 }
0x11a2   : > { %vm2175_vm10 = vcmp.ge.f32.partialorder %v2173_v33, 0.0  ;;  %v2185_v35 = vmul.f32 %v2182_v63, %v2173_v33  ;;  %v3542_v63 = vld [vmem:[%s4425_s5 + $0x18] sm:$0xff]  }
0x11a3   : > { %2190 = vadd.xlane.f32.xlu1 %v2188_v25  ;;  %v2194_v37 = vmul.f32 %v2188_v25, %v2186_v31 }
0x11a4   : > { %v2187_v36 = vsel %vm2175_vm10, %v2173_v33, %v2185_v35 }
0x11a5   : > { %v2189_v39 = vmul.f32 %v3946_v42, %v2187_v36 }
0x11a7   : > { %2196 = vadd.xlane.f32.xlu1 %v2194_v37  ;;  %2192 = vadd.xlane.f32.xlu0 %v2189_v39  ;;  %v2195_v40 = vmul.f32 %v2189_v39, %v2187_v36 }
0x11ab   : > { %2198 = vadd.xlane.f32.xlu0 %v2195_v40 }
0x122c   : > { %v2191_v41 = vpop.xlane.xlu1 %2190 }
0x122d   : > { %v2200_v43 = vmul.f32 0.01, %v2191_v41 }
0x122f   : > { %v2204_v51 = vmul.f32 %v2200_v43, %v2200_v43 }
0x1230   : > { %v2197_v46 = vpop.xlane.xlu1 %2196  ;;  %v2193_v49 = vpop.xlane.xlu0 %2192 }
0x1231   : > { %v2202_v55 = vmul.f32 0.01, %v2197_v46  ;;  %v2201_v58 = vmul.f32 0.01, %v2193_v49 }
0x1233   : > { %v2206_v62 = vsub.f32 %v2202_v55, %v2204_v51  ;;  %v2205_v5 = vmul.f32 %v2201_v58, %v2201_v58 }
0x1234   : > { %v2199_v3 = vpop.xlane.xlu0 %2198 }
0x1235   : > { %v2208_v4 = vadd.f32 1e-05, %v2206_v62  ;;  %v2203_v6 = vmul.f32 0.01, %v2199_v3 }
0x1237   : > { %3609 = vrsqrt.f32 %v2208_v4  ;;  %v2207_v7 = vsub.f32 %v2203_v6, %v2205_v5 }
0x1239   : > { %v2209_v8 = vadd.f32 1e-05, %v2207_v7 }
0x123b   : > { %3611 = vrsqrt.f32 %v2209_v8 }
0x1244   : > { %v3610_v9 = vpop.eup %3609 }
0x1245   : > { %v2212_v10 = vmul.f32 %v3610_v9, %v4164_v18 }
0x1247   : > { %v2214_v11 = vmul.f32 %v2212_v10, %v2200_v43 }
0x1248   : > { %v3612_v12 = vpop.eup %3611 }
0x1249   : > { %2218 = vrot.lane.b32.xlu1 %v2214_v11, %s3746_s21  ;;  %v2213_v13 = vmul.f32 %v3612_v12, %v4169_v20 }
0x124b   : > { %v2215_v14 = vmul.f32 %v2213_v13, %v2201_v58 }
0x124d   : > { %2228 = vperm.xlu1 %3490, %v2212_v10   ;;  %2220 = vrot.lane.b32.xlu0 %v2215_v14, %s3746_s21 }
0x1251   : > { %2233 = vperm.xlu1 %3490, %v2213_v13  }
0x1255   : > { %3492 = vset.pattern.permute.xlu1 %v3753_v59 }
0x12bb   : > { %v2219_v15 = vpop.permute.xlu1 %2218 }
0x12bc   : > { %v2224_v16 = vsub.f32 %v4164_v18, %v2219_v15  ;;  %v4289_v18 = vld [vmem:[%s4428_s8 + $0x38] sm:$0xff] }
0x12be   : > { %2240 = vperm.xlu0 %3491, %v2224_v16  }
0x12bf   : > { %v2221_v17 = vpop.permute.xlu0 %2220 }
0x12c0   : > { %v2225_v21 = vsub.f32 %v4169_v20, %v2221_v17 }
0x12c2   : > { %2245 = vperm.xlu1 %3492, %v2225_v21   ;;  %3494 = vset.pattern.permute.xlu0 %v3744_v19 }
0x12c3   : > { %2446 = vperm.xlu0 %3494, %v4289_v18  }
0x12c6   : > { %3493 = vset.pattern.permute.xlu1 %v3744_v19  ;;  %v4284_v19 = vld [vmem:[%s4428_s8 + $0x30] sm:$0xff] }
0x12c7   : > { %2442 = vperm.xlu1 %3493, %v4284_v19   ;;  %3496 = vset.pattern.permute.xlu0 %v3745_v2 }
0x12c8   : > { %v2229_v22 = vpop.permute.xlu1 %2228 }
0x12c9   : > { %v2236_v53 = vmul.f32 %v2229_v22, %v2186_v31 }
0x12cb   : > { %3495 = vset.pattern.permute.xlu1 %v3742_v1 }
0x12cc   : > { %v2234_v23 = vpop.permute.xlu1 %2233  ;;  %2367 = vperm.xlu1 %3495, %v4284_v19  }
0x12cd   : > { %v2237_v34 = vmul.f32 %v2234_v23, %v2187_v36 }
0x12d0   : > { %2372 = vperm.xlu1 %3495, %v4289_v18  }
0x12d4   : > { %3497 = vset.pattern.permute.xlu1 %v3745_v2 }
0x1339   : > { %v2241_v45 = vpop.permute.xlu0 %2240 }
0x133a   : > { %v2248_v24 = vadd.f32 %v2241_v45, %v2236_v53 }
0x133d   : > { %v2246_v44 = vpop.permute.xlu1 %2245 }
0x133e   : > { %v2249_v27 = vadd.f32 %v2246_v44, %v2237_v34  ;;  %v2447_v36 = vpop.permute.xlu0 %2446 }
0x1340   : > { %v2253_v26 = vpack.c.bf16 %v2249_v27, %v2248_v24 }
0x1342   : > { %3353 = vmatpush3.bf16.msra.mxu0 %v2253_v26  ;;  %v2443_v2 = vpop.permute.xlu1 %2442 }
0x1343   : > { %3358 = vmatprep.subr.bf16.mxu0 %v3740_v0 }
0x1345   : > { %3355 = vmatmul.mubr.msk.bf16.vlgmr.msra.gmra.mxu0 %vm535_vm4, %v3541_v47 }
0x1346   : > { %3360 = vmatprep.mubr.msk.bf16.mxu0 %vm3741_vm0, %v3740_v0 }
0x1347   : > { %v2368_v33 = vpop.permute.xlu1 %2367 }
0x134b   : > { %v2373_v46 = vpop.permute.xlu1 %2372 }
0x1405   : > { %v2296_v20 = vpop.f32.mrf.mxu0 }
0x1406   : > { %v4299_v60 = vadd.f32 %v2296_v20, %v4179_v28 }
0x1407   : > { %v3356_v56 = vpop.f32.mrf.mxu0 }
0x1409   : > { %v2299_v54 = vpop.f32.mrf.mxu0 }
0x140a   : > { %v4302_v29 = vadd.f32 %v2299_v54, %v4182_v48 }
0x140b   : > { %v3357_v52 = vpop.f32.mrf.mxu0 }
0x140c   : > { %v2313_v30 = vpack.c.bf16 %v4302_v29, %v4299_v60 }
0x140e   : > { %3359 = vmatpush3.bf16.msra.mxu0 %v2313_v30 }
0x1411   : > { %3361 = vmatmul.mubr.msk.bf16.vlgmr.msra.gmra.mxu0 %vm535_vm4, %v3542_v63 }
0x14d1   : > { %v2356_v31 = vpop.f32.mrf.mxu0 }
0x14d2   : > { %v2449_v25 = vmul.f32 %v2443_v2, %v2356_v31  ;;  %vm2363_vm12 = vcmp.ge.f32.partialorder %v2356_v31, 0.0  ;;  %v2375_v41 = vmul.f32 %v2368_v33, %v2356_v31 }
0x14d3   : > { %v3362_v35 = vpop.f32.mrf.mxu0 }
0x14d4   : > { %v4311_v37 = vsel %vm2363_vm12, %v2356_v31, %v2449_v25  ;;  %v4321_v3 = vsel %vm2363_vm12, %v2356_v31, %v2375_v41 }
0x14d5   : > { %v2359_v39 = vpop.f32.mrf.mxu0  ;;  %v2453_v40 = vmul.f32 %v3946_v42, %v4311_v37  ;;  %v2379_v4 = vmul.f32 %v3946_v42, %v4321_v3 }
0x14d6   : > { %vm2364_vm13 = vcmp.ge.f32.partialorder %v2359_v39, 0.0  ;;  %v2450_v43 = vmul.f32 %v2447_v36, %v2359_v39  ;;  %v2376_v62 = vmul.f32 %v2373_v46, %v2359_v39 }
0x14d7   : > { %2455 = vadd.xlane.f32.xlu0 %v2453_v40  ;;  %v3363_v49 = vpop.f32.mrf.mxu0  ;;  %v2459_v55 = vmul.f32 %v2453_v40, %v4311_v37  ;;  %v2385_v7 = vmul.f32 %v2379_v4, %v4321_v3 }
0x14d8   : > { %v4315_v51 = vsel %vm2364_vm13, %v2359_v39, %v2450_v43  ;;  %v4326_v6 = vsel %vm2364_vm13, %v2359_v39, %v2376_v62 }
0x14d9   : > { %v2454_v58 = vmul.f32 %v3946_v42, %v4315_v51  ;;  %v2380_v8 = vmul.f32 %v3946_v42, %v4326_v6 }
0x14db   : > { %2461 = vadd.xlane.f32.xlu0 %v2459_v55  ;;  %2457 = vadd.xlane.f32.xlu1 %v2454_v58  ;;  %v2460_v5 = vmul.f32 %v2454_v58, %v4315_v51  ;;  %v2386_v9 = vmul.f32 %v2380_v8, %v4326_v6 }
0x14df   : > { %2381 = vadd.xlane.f32.xlu1 %v2379_v4  ;;  %2463 = vadd.xlane.f32.xlu0 %v2460_v5 }
0x14e3   : > { %2387 = vadd.xlane.f32.xlu1 %v2385_v7  ;;  %2383 = vadd.xlane.f32.xlu0 %v2380_v8 }
0x14e7   : > { %2389 = vadd.xlane.f32.xlu0 %v2386_v9 }
0x1560   : > { %v2456_v10 = vpop.xlane.xlu0 %2455 }
0x1561   : > { %v2465_v11 = vmul.f32 0.01, %v2456_v10 }
0x1563   : > { %v2469_v14 = vmul.f32 %v2465_v11, %v2465_v11 }
0x1564   : > { %v2458_v12 = vpop.xlane.xlu1 %2457  ;;  %v2462_v13 = vpop.xlane.xlu0 %2461 }
0x1565   : > { %v2466_v15 = vmul.f32 0.01, %v2458_v12  ;;  %v2467_v16 = vmul.f32 0.01, %v2462_v13 }
0x1567   : > { %v2471_v17 = vsub.f32 %v2467_v16, %v2469_v14  ;;  %v2470_v23 = vmul.f32 %v2466_v15, %v2466_v15 }
0x1568   : > { %v2382_v21 = vpop.xlane.xlu1 %2381  ;;  %v2464_v22 = vpop.xlane.xlu0 %2463 }
0x1569   : > { %v2473_v45 = vadd.f32 1e-05, %v2471_v17  ;;  %v2391_v53 = vmul.f32 0.01, %v2382_v21  ;;  %v2468_v34 = vmul.f32 0.01, %v2464_v22 }
0x156b   : > { %3613 = vrsqrt.f32 %v2473_v45  ;;  %v2472_v44 = vsub.f32 %v2468_v34, %v2470_v23  ;;  %v2395_v26 = vmul.f32 %v2391_v53, %v2391_v53 }
0x156c   : > { %v2388_v24 = vpop.xlane.xlu1 %2387  ;;  %v2384_v27 = vpop.xlane.xlu0 %2383 }
0x156d   : > { %v2474_v47 = vadd.f32 1e-05, %v2472_v44  ;;  %v2393_v20 = vmul.f32 0.01, %v2388_v24  ;;  %v2392_v56 = vmul.f32 0.01, %v2384_v27 }
0x156f   : > { %3615 = vrsqrt.f32 %v2474_v47  ;;  %v2397_v54 = vsub.f32 %v2393_v20, %v2395_v26  ;;  %v2396_v63 = vmul.f32 %v2392_v56, %v2392_v56 }
0x1570   : > { %v2390_v52 = vpop.xlane.xlu0 %2389 }
0x1571   : > { %v2399_v30 = vadd.f32 1e-05, %v2397_v54  ;;  %v2394_v2 = vmul.f32 0.01, %v2390_v52 }
0x1573   : > { %3617 = vrsqrt.f32 %v2399_v30  ;;  %v2398_v33 = vsub.f32 %v2394_v2, %v2396_v63  ;;  %v3549_v63 = vld [vmem:[%s4426_s6 + $0x30] sm:$0xff]  }
0x1574   : > { %3376 = vmatprep.mubr.msk.bf16.mxu0 %vm966_vm9, %v3549_v63 }
0x1575   : > { %v2400_v31 = vadd.f32 1e-05, %v2398_v33 }
0x1577   : > { %3619 = vrsqrt.f32 %v2400_v31 }
0x1578   : > { %v3614_v25 = vpop.eup %3613 }
0x1579   : > { %v2477_v35 = vmul.f32 %v3614_v25, %v4284_v19 }
0x157b   : > { %v2479_v36 = vmul.f32 %v2477_v35, %v2465_v11 }
0x157c   : > { %v3616_v39 = vpop.eup %3615 }
0x157d   : > { %2483 = vrot.lane.b32.xlu1 %v2479_v36, %s3746_s21  ;;  %v2478_v40 = vmul.f32 %v3616_v39, %v4289_v18 }
0x157f   : > { %v2480_v41 = vmul.f32 %v2478_v40, %v2466_v15 }
0x1580   : > { %v3618_v43 = vpop.eup %3617 }
0x1581   : > { %2485 = vrot.lane.b32.xlu0 %v2480_v41, %s3746_s21  ;;  %v2403_v46 = vmul.f32 %v3618_v43, %v4284_v19 }
0x1583   : > { %v2405_v49 = vmul.f32 %v2403_v46, %v2391_v53 }
0x1584   : > { %v3620_v55 = vpop.eup %3619 }
0x1585   : > { %2409 = vrot.lane.b32.xlu1 %v2405_v49, %s3746_s21  ;;  %2493 = vperm.xlu0 %3496, %v2477_v35   ;;  %v2404_v58 = vmul.f32 %v3620_v55, %v4289_v18 }
0x1587   : > { %v2406_v62 = vmul.f32 %v2404_v58, %v2392_v56 }
0x1589   : > { %2411 = vrot.lane.b32.xlu1 %v2406_v62, %s3746_s21  ;;  %3499 = vset.pattern.permute.xlu0 %v3747_v50 }
0x158d   : > { %2498 = vperm.xlu1 %3497, %v2478_v40  }
0x1591   : > { %3498 = vset.pattern.permute.xlu1 %v3747_v50 }
0x15ef   : > { %v2484_v4 = vpop.permute.xlu1 %2483 }
0x15f0   : > { %v2489_v5 = vsub.f32 %v4284_v19, %v2484_v4 }
0x15f2   : > { %2505 = vperm.xlu1 %3498, %v2489_v5  }
0x15f3   : > { %v2486_v7 = vpop.permute.xlu0 %2485 }
0x15f4   : > { %v2490_v8 = vsub.f32 %v4289_v18, %v2486_v7 }
0x15f6   : > { %3500 = vset.pattern.permute.xlu1 %v3748_v57  ;;  %2510 = vperm.xlu0 %3499, %v2490_v8  }
0x15f7   : > { %v2410_v9 = vpop.permute.xlu1 %2409  ;;  %2419 = vperm.xlu1 %3500, %v2403_v46  }
0x15f8   : > { %v2415_v10 = vsub.f32 %v4284_v19, %v2410_v9 }
0x15fa   : > { %3501 = vset.pattern.permute.xlu0 %v3749_v61 }
0x15fb   : > { %2424 = vperm.xlu1 %3500, %v2404_v58   ;;  %v2412_v11 = vpop.permute.xlu1 %2411  ;;  %2431 = vperm.xlu0 %3501, %v2415_v10  }
0x15fc   : > { %v2416_v50 = vsub.f32 %v4289_v18, %v2412_v11 }
0x15ff   : > { %3502 = vset.pattern.permute.xlu1 %v3749_v61  ;;  %3504 = vset.pattern.permute.xlu0 %v3751_v32 }
0x1600   : > { %2436 = vperm.xlu1 %3502, %v2416_v50   ;;  %v2494_v57 = vpop.permute.xlu0 %2493 }
0x1601   : > { %v2501_v13 = vmul.f32 %v2494_v57, %v4311_v37 }
0x1604   : > { %3503 = vset.pattern.permute.xlu1 %v3751_v32 }
0x1608   : > { %v2499_v12 = vpop.permute.xlu1 %2498 }
0x1609   : > { %v2502_v16 = vmul.f32 %v2499_v12, %v4315_v51 }
0x166d   : > { %v2506_v14 = vpop.permute.xlu1 %2505 }
0x166e   : > { %v2513_v15 = vadd.f32 %v2506_v14, %v2501_v13 }
0x1670   : > { %v3206_v17 = vpack.c.bf16 %v2513_v15, %v2513_v15 }
0x1671   : > { %v2511_v21 = vpop.permute.xlu0 %2510 }
0x1672   : > { %2533 = vst [vmem:[#allocation2 + $0x14] sm:$0xf] %v3206_v17  ;;  %v2514_v22 = vadd.f32 %v2511_v21, %v2502_v16  ;;  %v2420_v23 = vpop.permute.xlu1 %2419  ;;  %v3550_v16 = vld [vmem:[%s4426_s6 + $0x38] sm:$0xff]  }
0x1673   : > { %v2427_v61 = vmul.f32 %v2420_v23, %v4321_v3 }
0x1674   : > { %v3207_v45 = vpack.c.bf16 %v2514_v22, %v2514_v22 }
0x1676   : > { %2534 = vst [vmem:[#allocation2 + $0x1c] sm:$0xf] %v3207_v45  ;;  %v2425_v53 = vpop.permute.xlu1 %2424  ;;  %v2432_v34 = vpop.permute.xlu0 %2431 }
0x1677   : > { %v2439_v32 = vadd.f32 %v2432_v34, %v2427_v61  ;;  %v2428_v37 = vmul.f32 %v2425_v53, %v4326_v6 }
0x1679   : > { %v3204_v44 = vpack.c.bf16 %v2439_v32, %v2439_v32  ;;  %v2583_v24 = vld [vmem:[#allocation2 + $0x10] sm:$0xff] }
0x167a   : > { %v2603_v27 = vld [vmem:[#allocation2 + $0x14] sm:$0xf]  ;;  %2587 = vrot.lane.b32.xlu1 %v2583_v24, %s3750_s22 }
0x167b   : > { %2605 = vst [vmem:[#allocation3 + $0x28] sm:$0xf] %v2603_v27  ;;  %2523 = vst [vmem:[#allocation2 + $0x4] sm:$0xf] %v3204_v44  ;;  %v2437_v51 = vpop.permute.xlu1 %2436 }
0x167c   : > { %v2440_v26 = vadd.f32 %v2437_v51, %v2428_v37 }
0x167d   : > { %v2584_v47 = vld [vmem:[#allocation2 + $0x18] sm:$0xff] }
0x167e   : > { %v2604_v20 = vld [vmem:[#allocation2 + $0x1c] sm:$0xf]  ;;  %v3205_v56 = vpack.c.bf16 %v2440_v26, %v2440_v26  ;;  %2555 = vrot.lane.b32.xlu1 %v2583_v24, %s3754_s13  ;;  %2589 = vrot.lane.b32.xlu0 %v2584_v47, %s3750_s22 }
0x167f   : > { %2606 = vst [vmem:[#allocation3 + $0x2c] sm:$0xf] %v2604_v20 }
0x1680   : > { %2524 = vst [vmem:[#allocation2 + $0xc] sm:$0xf] %v3205_v56 }
0x1682   : > { %2557 = vrot.lane.b32.xlu0 %v2584_v47, %s3754_s13  ;;  %v2567_v3 = vld [vmem:[#allocation2] sm:$0xff] }
0x1683   : > { %v2599_v54 = vld [vmem:[#allocation2 + $0x4] sm:$0xf]  ;;  %2571 = vrot.lane.b32.xlu1 %v2567_v3, %s3750_s22 }
0x1684   : > { %2601 = vst [vmem:[#allocation3 + $0x10] sm:$0xf] %v2599_v54 }
0x1686   : > { %v3543_v6 = vld [vmem:[#allocation3 + $0x28] sm:$0xff]  }
0x1687   : > { %2539 = vrot.lane.b32.xlu1 %v2567_v3, %s3754_s13  ;;  %3364 = vmatprep.subr.bf16.mxu0 %v3543_v6  ;;  %v2568_v52 = vld [vmem:[#allocation2 + $0x8] sm:$0xff] }
0x1688   : > { %v2600_v30 = vld [vmem:[#allocation2 + $0xc] sm:$0xf]  ;;  %2573 = vrot.lane.b32.xlu0 %v2568_v52, %s3750_s22  ;;  %3365 = vmatpush3.bf16.msra.mxu0 %v3543_v6 }
0x1689   : > { %2602 = vst [vmem:[#allocation3 + $0x14] sm:$0xf] %v2600_v30 }
0x168b   : > { %2742 = vperm.xlu1 %3503, %v4284_v19  }
0x168c   : > { %2541 = vrot.lane.b32.xlu0 %v2568_v52, %s3754_s13 }
0x168f   : > { %3505 = vset.pattern.permute.xlu1 %v3752_v38 }
0x1690   : > { %2746 = vperm.xlu0 %3504, %v4289_v18   ;;  %v3546_v13 = vld [vmem:[#allocation3 + $0x10] sm:$0xff]  }
0x1694   : > { %3506 = vset.pattern.permute.xlu0 %v3753_v59 }
0x16ec   : > { %v2588_v2 = vpop.permute.xlu1 %2587 }
0x16ed   : > { %v2591_v33 = vrot.slane %v2588_v2, 4 }
0x16ef   : > { %v2593_v31 = vsel %vm840_vm11, %v2588_v2, %v2591_v33 }
0x16f0   : > { %2597 = vst [vmem:[#allocation3 + $0x20] sm:$0xf] %v2593_v31  ;;  %v2556_v25 = vpop.permute.xlu1 %2555  ;;  %v2590_v35 = vpop.permute.xlu0 %2589 }
0x16f1   : > { %v2559_v36 = vrot.slane %v2556_v25, 4  ;;  %v2592_v39 = vrot.slane %v2590_v35, 4 }
0x16f3   : > { %v2561_v40 = vsel %vm1406_vm1, %v2556_v25, %v2559_v36  ;;  %v2594_v41 = vsel %vm840_vm11, %v2590_v35, %v2592_v39 }
0x16f4   : > { %2565 = vst [vmem:[#allocation3 + $0x18] sm:$0xf] %v2561_v40  ;;  %2598 = vst [vmem:[#allocation3 + $0x24] sm:$0xf] %v2594_v41  ;;  %v2558_v38 = vpop.permute.xlu0 %2557 }
0x16f5   : > { %v2560_v43 = vrot.slane %v2558_v38, 4  ;;  %v2572_v46 = vpop.permute.xlu1 %2571 }
0x16f6   : > { %v2575_v49 = vrot.slane %v2572_v46, 4 }
0x16f7   : > { %v2562_v55 = vsel %vm1406_vm1, %v2558_v38, %v2560_v43 }
0x16f8   : > { %2566 = vst [vmem:[#allocation3 + $0x1c] sm:$0xf] %v2562_v55  ;;  %v2577_v58 = vsel %vm840_vm11, %v2572_v46, %v2575_v49 }
0x16f9   : > { %2581 = vst [vmem:[#allocation3 + $0x8] sm:$0xf] %v2577_v58  ;;  %v2540_v62 = vpop.permute.xlu1 %2539 }
0x16fa   : > { %v2543_v4 = vrot.slane %v2540_v62, 4  ;;  %v2574_v5 = vpop.permute.xlu0 %2573 }
0x16fb   : > { %v2576_v7 = vrot.slane %v2574_v5, 4  ;;  %v3544_v8 = vld [vmem:[#allocation3 + $0x20] sm:$0xff]  }
0x16fc   : > { %v2545_v9 = vsel %vm1406_vm1, %v2540_v62, %v2543_v4  ;;  %3366 = vmatprep.subr.bf16.mxu0 %v3544_v8 }
0x16fd   : > { %2549 = vst [vmem:[#allocation3] sm:$0xf] %v2545_v9  ;;  %v2578_v10 = vsel %vm840_vm11, %v2574_v5, %v2576_v7  ;;  %3367 = vmatpush3.bf16.msra.mxu0 %v3544_v8 }
0x16fe   : > { %2582 = vst [vmem:[#allocation3 + $0xc] sm:$0xf] %v2578_v10  ;;  %v2542_v11 = vpop.permute.xlu0 %2541 }
0x16ff   : > { %v2544_v50 = vrot.slane %v2542_v11, 4  ;;  %v3545_v57 = vld [vmem:[#allocation3 + $0x18] sm:$0xff]  }
0x1700   : > { %3368 = vmatprep.subr.bf16.mxu0 %v3545_v57 }
0x1701   : > { %v2546_v12 = vsel %vm1406_vm1, %v2542_v11, %v2544_v50  ;;  %3369 = vmatpush3.bf16.msra.mxu0 %v3545_v57 }
0x1702   : > { %2550 = vst [vmem:[#allocation3 + $0x4] sm:$0xf] %v2546_v12  ;;  %3370 = vmatprep.subr.bf16.mxu0 %v3546_v13 }
0x1705   : > { %v3547_v14 = vld [vmem:[#allocation3 + $0x8] sm:$0xff]   ;;  %3371 = vmatpush3.bf16.msra.mxu0 %v3546_v13 }
0x1706   : > { %3372 = vmatprep.subr.bf16.mxu0 %v3547_v14  ;;  %v2743_v24 = vpop.permute.xlu1 %2742 }
0x1709   : > { %v3548_v15 = vld [vmem:[#allocation3] sm:$0xff]   ;;  %3373 = vmatpush3.bf16.msra.mxu0 %v3547_v14 }
0x170a   : > { %3374 = vmatprep.subr.bf16.mxu0 %v3548_v15 }
0x170b   : > { %v2747_v47 = vpop.permute.xlu0 %2746 }
0x170d   : > { %3375 = vmatpush3.bf16.msra.mxu0 %v3548_v15 }
0x1710   : > { %3377 = vmatmul.mubr.msk.bf16.vlgmr.msra.gmra.mxu0 %vm966_vm9, %v3550_v16 }
0x17d0   : > { %v3378_v17 = vpop.f32.mrf.mxu0 }
0x17d1   : > { %v3179_v21 = vmul.f32 -1.442695, %v3378_v17 }
0x17d2   : > { %v2710_v22 = vpop.f32.mrf.mxu0 }
0x17d3   : > { %3621 = vpow2.f32 %v3179_v21  ;;  %v3551_v21 = vld [vmem:[#allocation10 + $0x18] sm:$0xff]  }
0x17d4   : > { %v3379_v23 = vpop.f32.mrf.mxu0 }
0x17d5   : > { %v3180_v45 = vmul.f32 -1.442695, %v3379_v23 }
0x17d6   : > { %v2713_v26 = vpop.f32.mrf.mxu0 }
0x17d7   : > { %3623 = vpow2.f32 %v3180_v45 }
0x17e0   : > { %v3622_v61 = vpop.eup %3621 }
0x17e1   : > { %v2731_v53 = vadd.f32 1.0, %v3622_v61 }
0x17e3   : > { %3625 = vrcp.f32 %v2731_v53 }
0x17e4   : > { %v3624_v34 = vpop.eup %3623 }
0x17e5   : > { %v2732_v32 = vadd.f32 1.0, %v3624_v34 }
0x17e7   : > { %3627 = vrcp.f32 %v2732_v32 }
0x17f0   : > { %v3626_v44 = vpop.eup %3625 }
0x17f1   : > { %v2737_v27 = vmul.f32 %v3626_v44, %v2710_v22  ;;  %v3552_v44 = vld [vmem:[%s4429_s9] sm:$0x1f]  }
0x17f3   : > { %vm2739_vm11 = vcmp.ge.f32.partialorder %v2737_v27, 0.0  ;;  %v2749_v37 = vmul.f32 %v2743_v24, %v2737_v27 }
0x17f4   : > { %v3628_v51 = vpop.eup %3627 }
0x17f5   : > { %v2738_v20 = vmul.f32 %v3628_v51, %v2713_v26  ;;  %v2751_v56 = vsel %vm2739_vm11, %v2737_v27, %v2749_v37 }
0x17f6   : > { %v2753_v3 = vmul.f32 %v3946_v42, %v2751_v56 }
0x17f7   : > { %vm2740_vm9 = vcmp.ge.f32.partialorder %v2738_v20, 0.0  ;;  %v2750_v54 = vmul.f32 %v2747_v47, %v2738_v20 }
0x17f8   : > { %2755 = vadd.xlane.f32.xlu1 %v2753_v3  ;;  %v2759_v52 = vmul.f32 %v2753_v3, %v2751_v56 }
0x17f9   : > { %v2752_v6 = vsel %vm2740_vm9, %v2738_v20, %v2750_v54 }
0x17fa   : > { %v2754_v30 = vmul.f32 %v3946_v42, %v2752_v6 }
0x17fc   : > { %2761 = vadd.xlane.f32.xlu1 %v2759_v52  ;;  %2757 = vadd.xlane.f32.xlu0 %v2754_v30  ;;  %v2760_v63 = vmul.f32 %v2754_v30, %v2752_v6 }
0x1800   : > { %2763 = vadd.xlane.f32.xlu0 %v2760_v63 }
0x1881   : > { %v2756_v2 = vpop.xlane.xlu1 %2755 }
0x1882   : > { %v2765_v33 = vmul.f32 0.01, %v2756_v2 }
0x1884   : > { %v2769_v35 = vmul.f32 %v2765_v33, %v2765_v33 }
0x1885   : > { %v2762_v31 = vpop.xlane.xlu1 %2761  ;;  %v2758_v25 = vpop.xlane.xlu0 %2757 }
0x1886   : > { %v2767_v36 = vmul.f32 0.01, %v2762_v31  ;;  %v2766_v39 = vmul.f32 0.01, %v2758_v25 }
0x1888   : > { %v2771_v40 = vsub.f32 %v2767_v36, %v2769_v35  ;;  %v2770_v43 = vmul.f32 %v2766_v39, %v2766_v39 }
0x1889   : > { %v2764_v41 = vpop.xlane.xlu0 %2763 }
0x188a   : > { %v2773_v38 = vadd.f32 1e-05, %v2771_v40  ;;  %v2768_v46 = vmul.f32 0.01, %v2764_v41 }
0x188c   : > { %3629 = vrsqrt.f32 %v2773_v38  ;;  %v2772_v49 = vsub.f32 %v2768_v46, %v2770_v43 }
0x188e   : > { %v2774_v55 = vadd.f32 1e-05, %v2772_v49 }
0x1890   : > { %3631 = vrsqrt.f32 %v2774_v55 }
0x1899   : > { %v3630_v42 = vpop.eup %3629 }
0x189a   : > { %v2777_v58 = vmul.f32 %v3630_v42, %v4284_v19 }
0x189c   : > { %v2779_v62 = vmul.f32 %v2777_v58, %v2765_v33 }
0x189d   : > { %v3632_v4 = vpop.eup %3631 }
0x189e   : > { %2783 = vrot.lane.b32.xlu1 %v2779_v62, %s3746_s21  ;;  %v2778_v5 = vmul.f32 %v3632_v4, %v4289_v18 }
0x18a0   : > { %v2780_v7 = vmul.f32 %v2778_v5, %v2766_v39 }
0x18a2   : > { %2793 = vperm.xlu1 %3505, %v2777_v58   ;;  %2785 = vrot.lane.b32.xlu0 %v2780_v7, %s3746_s21 }
0x18a6   : > { %2798 = vperm.xlu1 %3505, %v2778_v5  }
0x18aa   : > { %3507 = vset.pattern.permute.xlu1 %v3753_v59 }
0x1910   : > { %v2784_v8 = vpop.permute.xlu1 %2783 }
0x1911   : > { %v2789_v9 = vsub.f32 %v4284_v19, %v2784_v8  ;;  %v2883_v19 = vld [vmem:[%s4430_s10] sm:$0xff] }
0x1913   : > { %2805 = vperm.xlu0 %3506, %v2789_v9  }
0x1914   : > { %v2786_v10 = vpop.permute.xlu0 %2785 }
0x1915   : > { %v2790_v11 = vsub.f32 %v4289_v18, %v2786_v10 }
0x1917   : > { %2810 = vperm.xlu1 %3507, %v2790_v11   ;;  %3509 = vset.pattern.permute.xlu0 %v3742_v1 }
0x191b   : > { %3508 = vset.pattern.permute.xlu1 %v3742_v1  ;;  %v2884_v1 = vld [vmem:[%s4430_s10 + $0x8] sm:$0x1] }
0x191c   : > { %2892 = vperm.xlu0 %3509, %v2884_v1   ;;  %2887 = vperm.xlu1 %3508, %v2883_v19  }
0x191d   : > { %v2794_v50 = vpop.permute.xlu1 %2793 }
0x191e   : > { %v2801_v13 = vmul.f32 %v2794_v50, %v2751_v56 }
0x1921   : > { %v2799_v57 = vpop.permute.xlu1 %2798 }
0x1922   : > { %v2802_v14 = vmul.f32 %v2799_v57, %v2752_v6 }
0x198e   : > { %v2806_v12 = vpop.permute.xlu0 %2805 }
0x198f   : > { %v2813_v16 = vadd.f32 %v2806_v12, %v2801_v13 }
0x1992   : > { %v2811_v15 = vpop.permute.xlu1 %2810 }
0x1993   : > { %v2814_v59 = vadd.f32 %v2811_v15, %v2802_v14 }
0x1995   : > { %v2818_v17 = vpack.c.bf16 %v2814_v59, %v2813_v16 }
0x1997   : > { %3381 = vmatpush3.bf16.msra.mxu1 %v2818_v17  ;;  %v2888_v24 = vpop.permute.xlu1 %2887  ;;  %v2893_v51 = vpop.permute.xlu0 %2892 }
0x1998   : > { %3386 = vmatprep.subr.bf16.mxu1 %v3740_v0 }
0x199a   : > { %3383 = vmatmul.mubr.msk.bf16.vlgmr.msra.gmra.mxu1 %vm535_vm4, %v3551_v21 }
0x199b   : > { %3388 = vmatprep.mubr.msk.bf16.mxu1 %vm3741_vm0, %v3740_v0  ;;  %vm2957_vm0 = vcmask 811008  }
0x1a5a   : > { %v2861_v18 = vpop.f32.mrf.mxu1 }
0x1a5b   : > { %v2862_v23 = vadd.f32 %v2861_v18, %v4299_v60 }
0x1a5c   : > { %v3384_v22 = vpop.f32.mrf.mxu1 }
0x1a5d   : > { %v2874_v0 = vadd.f32 %v2862_v23, %v4179_v28 }
0x1a5e   : > { %v2864_v45 = vpop.f32.mrf.mxu1 }
0x1a5f   : > { %v2865_v61 = vadd.f32 %v2864_v45, %v4302_v29 }
0x1a60   : > { %v3385_v53 = vpop.f32.mrf.mxu1 }
0x1a61   : > { %v2875_v34 = vadd.f32 %v2865_v61, %v4182_v48 }
0x1a63   : > { %v2882_v32 = vpack.c.bf16 %v2875_v34, %v2874_v0 }
0x1a65   : > { %3387 = vmatpush3.bf16.msra.mxu1 %v2882_v32 }
0x1a68   : > { %3389 = vmatmul.mubr.msk.bf16.vlgmr.msra.gmra.mxu1 %vm535_vm4, %v3552_v44 }
0x1b28   : > { %v2937_v27 = vpop.f32.mrf.mxu1 }
0x1b29   : > { %v2938_v37 = vadd.f32 %v2937_v27, %v2888_v24 }
0x1b2a   : > { %v3390_v60 = vpop.f32.mrf.mxu1 }
0x1b2b   : > { %v3185_v29 = vmul.f32 -1.442695, %v2938_v37 }
0x1b2c   : > { %v2940_v26 = vpop.f32.mrf.mxu1 }
0x1b2d   : > { %3633 = vpow2.f32 %v3185_v29  ;;  %v2941_v28 = vadd.f32 %v2940_v26, %v2893_v51 }
0x1b2e   : > { %v3391_v47 = vpop.f32.mrf.mxu1 }
0x1b2f   : > { %v3186_v48 = vmul.f32 -1.442695, %v2941_v28 }
0x1b31   : > { %3635 = vpow2.f32 %v3186_v48 }
0x1b3a   : > { %v3634_v20 = vpop.eup %3633 }
0x1b3b   : > { %v2950_v56 = vadd.f32 1.0, %v3634_v20 }
0x1b3d   : > { %3637 = vrcp.f32 %v2950_v56 }
0x1b3e   : > { %v3636_v3 = vpop.eup %3635 }
0x1b3f   : > { %v2951_v54 = vadd.f32 1.0, %v3636_v3 }
0x1b41   : > { %3639 = vrcp.f32 %v2951_v54 }
0x1b4a   : > { %v3638_v6 = vpop.eup %3637 }
0x1b4b   : > { %2956 = vst.msk [vmem:[%s450_s15] sm:$0xff] %vm460_vm3, %v3638_v6 }
0x1b4e   : > { %v3640_v52 = vpop.eup %3639 }
0x1b4f   : > { %2958 = vst.msk [vmem:[%s450_s15 + $0x8] sm:$0x1] %vm2957_vm0, %v3640_v52 }
0x1b50 PF: > { %s23_s17 = sadd.s32 1, %s3733_s17  }
0x1b51   : > { %p20_p2 = scmp.ge.s32.totalorder %s23_s17, 4  }
0x1b53   :  { %22 = sbr.rel (!%p20_p2) target bundleno = 2 (0x2), region = 122 }
0x1b58   :  { %2980 = vsyncpa [#allocation7], 1 }
0x1b59   :  { %2982 = vsyncpa [#allocation7 + $0x1], 1 }
0x1b5a   :  { %2983 = vsyncpa [#allocation9], 1 }

</bundles_post_ra>
